<compile_context>
chip_gen: v6e
topology: v6e:2x2x1
jax: 0.10.0
libtpu: 0.0.40
codegen_flags: <defaults>
</compile_context>

<pallas_src>
import jax
import jax.numpy as jnp
from jax import lax
from jax.experimental import pallas as pl
from jax.experimental.pallas import tpu as pltpu

ODE_SOLVER_UNFOLDS = 6


def liquidnet_kernel(x_ref, v0_ref, sens_ref, rec_ref, rows_ref,
                     mask_ref, ssel_ref, esel_ref, out_ref):
    # rec_ref: (4, U, L) = [mu, sigma/2, (W*erev)/2, W/2] tiled over batch lanes
    # sens_ref: (4, I, L) analogous sensory parameters
    # rows_ref: (3, L) = [cm, num_base, den_base]
    # mask_ref: (U, L) with mask[i, b*U+j] = (i == j)
    # ssel_ref: (L, bt), esel_ref: (bt, L) 0/1 relayout selectors
    _, U, L = rec_ref.shape
    f32 = jnp.float32
    hp = lax.Precision.HIGHEST          # keeps the 0/1 selector matmuls exact

    e_sel = esel_ref[...]               # (bt, L) lane-group expander (tiny)
    rows = rows_ref[...]                # (3, L)
    cm_row = rows[0:1]

    # ---- sensory synapses (invariant across unfolds) ----
    # Expand the (I, bt) input block to the (I, L) slab in-kernel (no U-fold
    # repeat in HBM), then reduce over the pre (sublane) axis.
    x_slab = jnp.dot(x_ref[0], e_sel, precision=hp,
                     preferred_element_type=f32)                       # (I, L)
    s_t = jnp.tanh((x_slab - sens_ref[0]) * sens_ref[1])               # EUP slot
    num_base = rows[1:2] + jnp.sum(s_t * sens_ref[2], axis=0, keepdims=True)
    den_base = rows[2:3] + jnp.sum(s_t * sens_ref[3], axis=0, keepdims=True)

    # ---- semi-implicit Euler unfolds ----
    v_row = v0_ref[...].astype(f32)     # (1, L), lane b*U + j = v_pre[b, j]
    for _ in range(ODE_SOLVER_UNFOLDS):
        # Relayout v_row -> vp[i, b*U+j] = v_pre[b, i] via two small selector
        # matmuls (MXU is otherwise idle); replaces the old (L, L) gather.
        masked = jnp.broadcast_to(v_row, (U, L)) * mask_ref[...]
        v_cols = jnp.dot(masked, ssel_ref[...], precision=hp,
                         preferred_element_type=f32)                   # (U, bt)
        vp = jnp.dot(v_cols, e_sel, precision=hp,
                     preferred_element_type=f32)                       # (U, L)

        # tanh-folded sigmoid; parameter slabs re-read from VMEM each unfold
        # (no long live ranges across the unrolled loop -> no vreg spills).
        t = jnp.tanh((vp - rec_ref[0]) * rec_ref[1])
        w_num = jnp.sum(t * rec_ref[2], axis=0, keepdims=True)         # (1, L)
        w_den = jnp.sum(t * rec_ref[3], axis=0, keepdims=True)         # (1, L)
        v_row = (cm_row * v_row + num_base + w_num) / (den_base + w_den)

    out_ref[...] = v_row.astype(out_ref.dtype)   # lane-dense unmasked store


def _choose_batch_tile(batch, num_units, input_size, itemsize=4,
                       vmem_budget_bytes=24 * 1024 * 1024, max_lanes=2048):
    """Pick the batch tile (bt) for the lane-dense layout.

    Preference order (per perf review): lane-dense (bt*U % 128 == 0), working
    set within a v7x-safe VMEM budget, grid >= 2 so "parallel" can shard tiles
    across the two v7x TensorCores, lane width <= max_lanes to amortize
    per-grid-step overhead, then the largest tile.  Falls back to a single
    whole-batch block (always legal; masked stores, grid=1) if no lane-dense
    divisor exists.
    """
    def est_vmem(bt):
        L = bt * num_units
        const = (5 * num_units + 4 * input_size + 3 + 2 * bt) * L   # params+mask+selectors+rows
        per_tile = input_size * bt + 2 * L                          # x, state, out blocks
        work = 4 * max(num_units, input_size) * L                   # in-flight compute slabs
        return (2 * (const + per_tile) + work) * itemsize           # 2x: default double-buffering

    dense = [bt for bt in range(1, batch + 1)
             if batch % bt == 0 and (bt * num_units) % 128 == 0]
    if not dense:
        return batch                              # whole-batch fallback
    feasible = [bt for bt in dense if est_vmem(bt) <= vmem_budget_bytes]
    if not feasible:
        return min(dense)                         # best effort
    key = lambda bt: (batch // bt >= 2, bt * num_units <= max_lanes, bt)
    return max(feasible, key=key)


@jax.jit
def liquidnet_forward(inputs, state, params):
    """Single LTC cell step. Returns (outputs, next_state), both [B, num_units]."""
    B, I = inputs.shape
    U = state.shape[-1]
    f32 = jnp.float32

    bt = _choose_batch_tile(B, U, I)
    nt = B // bt
    L = bt * U

    inputs = inputs.astype(f32)
    state = state.astype(f32)

    # ---- layout plumbing + loop-invariant precompute (cheap XLA, outside kernel) ----
    # MappingType.Affine input map (tiny elementwise op on (B, I)).
    x_aff = inputs * params["input_w"] + params["input_b"]               # (B, I)
    x_tiles = x_aff.T.reshape(I, nt, bt).transpose(1, 0, 2)              # (nt, I, bt)
    state_row = state.reshape(1, B * U)                                  # (1, B*U)

    tile_b = lambda m: jnp.tile(m.astype(f32), (1, bt))   # (P,U)->(P,L): [p, b*U+j] = m[p, j]

    W, erev = params["W"], params["erev"]
    sW, serev = params["sensory_W"], params["sensory_erev"]

    sens = jnp.stack([tile_b(params["sensory_mu"]),
                      tile_b(0.5 * params["sensory_sigma"]),
                      tile_b(0.5 * sW * serev),
                      tile_b(0.5 * sW)])                                 # (4, I, L)
    rec = jnp.stack([tile_b(params["mu"]),
                     tile_b(0.5 * params["sigma"]),
                     tile_b(0.5 * W * erev),
                     tile_b(0.5 * W)])                                   # (4, U, L)

    # sigmoid(z) = 0.5*tanh(z/2) + 0.5  =>  sum_i W*sig = sum_i (W/2)*tanh + sum_i W/2
    # The constant halves (recurrent + sensory) fold into the num/den bases.
    num_base = (params["gleak"] * params["vleak"]
                + 0.5 * jnp.sum(W * erev, axis=0, keepdims=True)
                + 0.5 * jnp.sum(sW * serev, axis=0, keepdims=True))      # (1, U)
    den_base = (params["cm_t"] + params["gleak"]
                + 0.5 * jnp.sum(W, axis=0, keepdims=True)
                + 0.5 * jnp.sum(sW, axis=0, keepdims=True))              # (1, U)
    rows = jnp.concatenate([tile_b(params["cm_t"]),
                            tile_b(num_base),
                            tile_b(den_base)], axis=0)                   # (3, L)

    # Small 0/1 selectors for the per-unfold relayout (replaces the (L, L) kron).
    mask_u = jnp.tile(jnp.eye(U, dtype=f32), (1, bt))                    # (U, L)
    e_sel = jnp.kron(jnp.eye(bt, dtype=f32), jnp.ones((1, U), f32))      # (bt, L)
    s_sel = e_sel.T                                                      # (L, bt)

    batch_map = lambda g: (0, g)
    const2 = lambda g: (0, 0)
    const3 = lambda g: (0, 0, 0)

    next_row = pl.pallas_call(
        liquidnet_kernel,
        grid=(nt,),
        in_specs=[
            pl.BlockSpec((1, I, bt), lambda g: (g, 0, 0)),   # x tile (no HBM repeat)
            pl.BlockSpec((1, L), batch_map),                 # initial state row
            pl.BlockSpec((4, I, L), const3),                 # sensory [mu, sig/2, We/2, W/2]
            pl.BlockSpec((4, U, L), const3),                 # recurrent [mu, sig/2, We/2, W/2]
            pl.BlockSpec((3, L), const2),                    # [cm, num_base, den_base]
            pl.BlockSpec((U, L), const2),                    # mask_u
            pl.BlockSpec((L, bt), const2),                   # s_sel
            pl.BlockSpec((bt, L), const2),                   # e_sel
        ],
        out_specs=pl.BlockSpec((1, L), batch_map),
        out_shape=jax.ShapeDtypeStruct((1, B * U), state.dtype),
        compiler_params=pltpu.CompilerParams(
            dimension_semantics=("parallel",),
            vmem_limit_bytes=64 * 1024 * 1024),
    )(x_tiles, state_row, sens, rec, rows, mask_u, s_sel, e_sel)

    next_state = next_row.reshape(B, U)
    return next_state, next_state


def reference_forward(inputs, state, params):
    """Pure-JAX reference mirroring the PyTorch forward (for verification)."""
    x = inputs * params["input_w"] + params["input_b"]
    v_pre = state
    xi = x[:, :, None]
    s_act = params["sensory_W"][None] * jax.nn.sigmoid(
        (xi - params["sensory_mu"][None]) * params["sensory_sigma"][None])
    w_num_s = jnp.sum(s_act * params["sensory_erev"][None], axis=1)
    w_den_s = jnp.sum(s_act, axis=1)
    for _ in range(ODE_SOLVER_UNFOLDS):
        vp = v_pre[:, :, None]
        w_act = params["W"][None] * jax.nn.sigmoid(
            (vp - params["mu"][None]) * params["sigma"][None])
        w_num = jnp.sum(w_act * params["erev"][None], axis=1) + w_num_s
        w_den = jnp.sum(w_act, axis=1) + w_den_s
        num = params["cm_t"] * v_pre + params["gleak"] * params["vleak"] + w_num
        den = params["cm_t"] + params["gleak"] + w_den
        v_pre = num / den
    return v_pre


def init_params(key, input_size, num_units, dtype=jnp.float32):
    """Deterministic init matching LiquidNet2._get_variables shapes/ranges."""
    ks = jax.random.split(key, 10)
    I, U = input_size, num_units
    params = {
        # _map_inputs (Affine)
        "input_w": jnp.ones((1, I), dtype),
        "input_b": jnp.zeros((1, I), dtype),
        # sensory synapses
        "sensory_mu": jax.random.uniform(ks[0], (I, U), dtype, 0.3, 0.8),
        "sensory_sigma": jax.random.uniform(ks[1], (I, U), dtype, 3.0, 8.0),
        "sensory_W": jax.random.uniform(ks[2], (I, U), dtype, 0.01, 1.0),
        "sensory_erev": (2.0 * jax.random.randint(ks[3], (I, U), 0, 2) - 1.0).astype(dtype),
        # recurrent synapses
        "mu": jax.random.uniform(ks[4], (U, U), dtype, 0.3, 0.8),
        "sigma": jax.random.uniform(ks[5], (U, U), dtype, 3.0, 8.0),
        "W": jax.random.uniform(ks[6], (U, U), dtype, 0.01, 1.0),
        "erev": (2.0 * jax.random.randint(ks[7], (U, U), 0, 2) - 1.0).astype(dtype),
        # per-unit params (gleak_init_min == max == 1 -> ones; cm fixed at 0.5)
        "vleak": jax.random.uniform(ks[8], (1, U), dtype, -0.2, 0.2),
        "gleak": jnp.ones((1, U), dtype),
        "cm_t": jnp.full((1, U), 0.5, dtype),
    }
    return params


if __name__ == "__main__":
    # B=8 with U=32 gives two lane-dense batch tiles (bt=4, L=128, grid=2),
    # exercising the multi-tile / megacore-parallel path.
    B, INPUT_SIZE, NUM_UNITS = 8, 8, 32

    key = jax.random.PRNGKey(0)
    k_in, k_params = jax.random.split(key)

    params = init_params(k_params, INPUT_SIZE, NUM_UNITS)
    inputs = jax.random.normal(k_in, (B, INPUT_SIZE), jnp.float32)
    state = jnp.zeros((B, NUM_UNITS), jnp.float32)   # hx = zeros (as in the example)

    outputs, next_state = liquidnet_forward(inputs, state, params)
    outputs = jax.block_until_ready(outputs)

    # correctness check against pure-JAX reference of the PyTorch semantics
    # (tolerance covers f32 reassociation + tanh-form sigmoid vs logistic)
    ref = reference_forward(inputs, state, params)
    assert outputs.shape == (B, NUM_UNITS)
    assert jnp.allclose(outputs, ref, rtol=1e-4, atol=1e-4), "mismatch vs reference"

    print("KERNEL_OK")
</pallas_src>

<mosaic_0001>
module attributes {stable_mosaic.version = 11 : i64} {
  func.func @liquidnet_kernel(%arg0: i32, %arg1: memref<1x8x4xf32, #tpu.memory_space<vmem>>, %arg2: memref<1x128xf32, #tpu.memory_space<vmem>>, %arg3: memref<4x8x128xf32, #tpu.memory_space<vmem>>, %arg4: memref<4x32x128xf32, #tpu.memory_space<vmem>>, %arg5: memref<3x128xf32, #tpu.memory_space<vmem>>, %arg6: memref<32x128xf32, #tpu.memory_space<vmem>>, %arg7: memref<128x4xf32, #tpu.memory_space<vmem>>, %arg8: memref<4x128xf32, #tpu.memory_space<vmem>>, %arg9: memref<1x128xf32, #tpu.memory_space<vmem>>) attributes {dimension_semantics = [#tpu.dimension_semantics<parallel>], iteration_bounds = array<i64: 2>, scalar_prefetch = 0 : i64, scratch_operands = 0 : i64, tpu.core_type = #tpu.core_type<tc>, window_params = [{transform_indices = @transform_0, window_bounds = array<i64: 1, 8, 4>}, {transform_indices = @transform_1, window_bounds = array<i64: 1, 128>}, {pipeline_mode = #tpu.pipeline_mode<synchronous>, transform_indices = @transform_2, window_bounds = array<i64: 4, 8, 128>}, {pipeline_mode = #tpu.pipeline_mode<synchronous>, transform_indices = @transform_3, window_bounds = array<i64: 4, 32, 128>}, {pipeline_mode = #tpu.pipeline_mode<synchronous>, transform_indices = @transform_4, window_bounds = array<i64: 3, 128>}, {pipeline_mode = #tpu.pipeline_mode<synchronous>, transform_indices = @transform_5, window_bounds = array<i64: 32, 128>}, {pipeline_mode = #tpu.pipeline_mode<synchronous>, transform_indices = @transform_6, window_bounds = array<i64: 128, 4>}, {pipeline_mode = #tpu.pipeline_mode<synchronous>, transform_indices = @transform_7, window_bounds = array<i64: 4, 128>}, {transform_indices = @transform_8, window_bounds = array<i64: 1, 128>}]} {
    %c0 = arith.constant 0 : index
    %c0_0 = arith.constant 0 : index
    %0 = vector.load %arg8[%c0, %c0_0] : memref<4x128xf32, #tpu.memory_space<vmem>>, vector<4x128xf32>
    %c0_1 = arith.constant 0 : index
    %c0_2 = arith.constant 0 : index
    %1 = vector.load %arg5[%c0_1, %c0_2] : memref<3x128xf32, #tpu.memory_space<vmem>>, vector<3x128xf32>
    %2 = vector.extract_strided_slice %1 {offsets = [0, 0], sizes = [1, 128], strides = [1, 1]} : vector<3x128xf32> to vector<1x128xf32>
    %c0_3 = arith.constant 0 : index
    %c0_4 = arith.constant 0 : index
    %c0_5 = arith.constant 0 : index
    %3 = vector.load %arg1[%c0_3, %c0_4, %c0_5] : memref<1x8x4xf32, #tpu.memory_space<vmem>>, vector<1x8x4xf32>
    %4 = vector.shape_cast %3 : vector<1x8x4xf32> to vector<8x4xf32>
    %cst = arith.constant dense<0.000000e+00> : vector<8x128xf32>
    %5 = tpu.matmul %4, %0, %cst {dimension_numbers = #tpu.dot_dimension_numbers<[1], [0], [0], [1], [0, 0, 1, 1], [], []>, precision = #tpu.contract_precision<fp32>} : vector<8x4xf32>, vector<4x128xf32>, vector<8x128xf32> -> vector<8x128xf32>
    %c0_6 = arith.constant 0 : index
    %c0_7 = arith.constant 0 : index
    %c0_8 = arith.constant 0 : index
    %6 = vector.load %arg3[%c0_6, %c0_7, %c0_8] : memref<4x8x128xf32, #tpu.memory_space<vmem>>, vector<1x8x128xf32>
    %7 = vector.shape_cast %6 : vector<1x8x128xf32> to vector<8x128xf32>
    %8 = arith.subf %5, %7 : vector<8x128xf32>
    %c1 = arith.constant 1 : index
    %c0_9 = arith.constant 0 : index
    %c0_10 = arith.constant 0 : index
    %9 = vector.load %arg3[%c1, %c0_9, %c0_10] : memref<4x8x128xf32, #tpu.memory_space<vmem>>, vector<1x8x128xf32>
    %10 = vector.shape_cast %9 : vector<1x8x128xf32> to vector<8x128xf32>
    %11 = arith.mulf %8, %10 : vector<8x128xf32>
    %12 = math.tanh %11 : vector<8x128xf32>
    %13 = vector.extract_strided_slice %1 {offsets = [1, 0], sizes = [1, 128], strides = [1, 1]} : vector<3x128xf32> to vector<1x128xf32>
    %c2 = arith.constant 2 : index
    %c0_11 = arith.constant 0 : index
    %c0_12 = arith.constant 0 : index
    %14 = vector.load %arg3[%c2, %c0_11, %c0_12] : memref<4x8x128xf32, #tpu.memory_space<vmem>>, vector<1x8x128xf32>
    %15 = vector.shape_cast %14 : vector<1x8x128xf32> to vector<8x128xf32>
    %16 = arith.mulf %12, %15 : vector<8x128xf32>
    %cst_13 = arith.constant dense<0.000000e+00> : vector<128xf32>
    %17 = vector.multi_reduction <add>, %16, %cst_13 [0] : vector<8x128xf32> to vector<128xf32>
    %18 = vector.shape_cast %17 : vector<128xf32> to vector<1x128xf32>
    %19 = arith.addf %13, %18 : vector<1x128xf32>
    %20 = vector.extract_strided_slice %1 {offsets = [2, 0], sizes = [1, 128], strides = [1, 1]} : vector<3x128xf32> to vector<1x128xf32>
    %c3 = arith.constant 3 : index
    %c0_14 = arith.constant 0 : index
    %c0_15 = arith.constant 0 : index
    %21 = vector.load %arg3[%c3, %c0_14, %c0_15] : memref<4x8x128xf32, #tpu.memory_space<vmem>>, vector<1x8x128xf32>
    %22 = vector.shape_cast %21 : vector<1x8x128xf32> to vector<8x128xf32>
    %23 = arith.mulf %12, %22 : vector<8x128xf32>
    %cst_16 = arith.constant dense<0.000000e+00> : vector<128xf32>
    %24 = vector.multi_reduction <add>, %23, %cst_16 [0] : vector<8x128xf32> to vector<128xf32>
    %25 = vector.shape_cast %24 : vector<128xf32> to vector<1x128xf32>
    %26 = arith.addf %20, %25 : vector<1x128xf32>
    %c0_17 = arith.constant 0 : index
    %c0_18 = arith.constant 0 : index
    %27 = vector.load %arg2[%c0_17, %c0_18] : memref<1x128xf32, #tpu.memory_space<vmem>>, vector<1x128xf32>
    %28 = vector.shape_cast %27 : vector<1x128xf32> to vector<1x128xf32>
    %29 = vector.broadcast %28 : vector<1x128xf32> to vector<32x128xf32>
    %c0_19 = arith.constant 0 : index
    %c0_20 = arith.constant 0 : index
    %30 = vector.load %arg6[%c0_19, %c0_20] : memref<32x128xf32, #tpu.memory_space<vmem>>, vector<32x128xf32>
    %31 = arith.mulf %29, %30 : vector<32x128xf32>
    %c0_21 = arith.constant 0 : index
    %c0_22 = arith.constant 0 : index
    %32 = vector.load %arg7[%c0_21, %c0_22] : memref<128x4xf32, #tpu.memory_space<vmem>>, vector<128x4xf32>
    %cst_23 = arith.constant dense<0.000000e+00> : vector<32x4xf32>
    %33 = tpu.matmul %31, %32, %cst_23 {dimension_numbers = #tpu.dot_dimension_numbers<[1], [0], [0], [1], [0, 0, 1, 1], [], []>, precision = #tpu.contract_precision<fp32>} : vector<32x128xf32>, vector<128x4xf32>, vector<32x4xf32> -> vector<32x4xf32>
    %cst_24 = arith.constant dense<0.000000e+00> : vector<32x128xf32>
    %34 = tpu.matmul %33, %0, %cst_24 {dimension_numbers = #tpu.dot_dimension_numbers<[1], [0], [0], [1], [0, 0, 1, 1], [], []>, precision = #tpu.contract_precision<fp32>} : vector<32x4xf32>, vector<4x128xf32>, vector<32x128xf32> -> vector<32x128xf32>
    %c0_25 = arith.constant 0 : index
    %c0_26 = arith.constant 0 : index
    %c0_27 = arith.constant 0 : index
    %35 = vector.load %arg4[%c0_25, %c0_26, %c0_27] : memref<4x32x128xf32, #tpu.memory_space<vmem>>, vector<1x32x128xf32>
    %36 = vector.shape_cast %35 : vector<1x32x128xf32> to vector<32x128xf32>
    %37 = arith.subf %34, %36 : vector<32x128xf32>
    %c1_28 = arith.constant 1 : index
    %c0_29 = arith.constant 0 : index
    %c0_30 = arith.constant 0 : index
    %38 = vector.load %arg4[%c1_28, %c0_29, %c0_30] : memref<4x32x128xf32, #tpu.memory_space<vmem>>, vector<1x32x128xf32>
    %39 = vector.shape_cast %38 : vector<1x32x128xf32> to vector<32x128xf32>
    %40 = arith.mulf %37, %39 : vector<32x128xf32>
    %41 = math.tanh %40 : vector<32x128xf32>
    %c2_31 = arith.constant 2 : index
    %c0_32 = arith.constant 0 : index
    %c0_33 = arith.constant 0 : index
    %42 = vector.load %arg4[%c2_31, %c0_32, %c0_33] : memref<4x32x128xf32, #tpu.memory_space<vmem>>, vector<1x32x128xf32>
    %43 = vector.shape_cast %42 : vector<1x32x128xf32> to vector<32x128xf32>
    %44 = arith.mulf %41, %43 : vector<32x128xf32>
    %cst_34 = arith.constant dense<0.000000e+00> : vector<128xf32>
    %45 = vector.multi_reduction <add>, %44, %cst_34 [0] : vector<32x128xf32> to vector<128xf32>
    %46 = vector.shape_cast %45 : vector<128xf32> to vector<1x128xf32>
    %c3_35 = arith.constant 3 : index
    %c0_36 = arith.constant 0 : index
    %c0_37 = arith.constant 0 : index
    %47 = vector.load %arg4[%c3_35, %c0_36, %c0_37] : memref<4x32x128xf32, #tpu.memory_space<vmem>>, vector<1x32x128xf32>
    %48 = vector.shape_cast %47 : vector<1x32x128xf32> to vector<32x128xf32>
    %49 = arith.mulf %41, %48 : vector<32x128xf32>
    %cst_38 = arith.constant dense<0.000000e+00> : vector<128xf32>
    %50 = vector.multi_reduction <add>, %49, %cst_38 [0] : vector<32x128xf32> to vector<128xf32>
    %51 = vector.shape_cast %50 : vector<128xf32> to vector<1x128xf32>
    %52 = arith.mulf %2, %27 : vector<1x128xf32>
    %53 = arith.addf %52, %19 : vector<1x128xf32>
    %54 = arith.addf %53, %46 : vector<1x128xf32>
    %55 = arith.addf %26, %51 : vector<1x128xf32>
    %56 = arith.divf %54, %55 : vector<1x128xf32>
    %57 = vector.shape_cast %56 : vector<1x128xf32> to vector<1x128xf32>
    %58 = vector.broadcast %57 : vector<1x128xf32> to vector<32x128xf32>
    %c0_39 = arith.constant 0 : index
    %c0_40 = arith.constant 0 : index
    %59 = vector.load %arg6[%c0_39, %c0_40] : memref<32x128xf32, #tpu.memory_space<vmem>>, vector<32x128xf32>
    %60 = arith.mulf %58, %59 : vector<32x128xf32>
    %c0_41 = arith.constant 0 : index
    %c0_42 = arith.constant 0 : index
    %61 = vector.load %arg7[%c0_41, %c0_42] : memref<128x4xf32, #tpu.memory_space<vmem>>, vector<128x4xf32>
    %cst_43 = arith.constant dense<0.000000e+00> : vector<32x4xf32>
    %62 = tpu.matmul %60, %61, %cst_43 {dimension_numbers = #tpu.dot_dimension_numbers<[1], [0], [0], [1], [0, 0, 1, 1], [], []>, precision = #tpu.contract_precision<fp32>} : vector<32x128xf32>, vector<128x4xf32>, vector<32x4xf32> -> vector<32x4xf32>
    %cst_44 = arith.constant dense<0.000000e+00> : vector<32x128xf32>
    %63 = tpu.matmul %62, %0, %cst_44 {dimension_numbers = #tpu.dot_dimension_numbers<[1], [0], [0], [1], [0, 0, 1, 1], [], []>, precision = #tpu.contract_precision<fp32>} : vector<32x4xf32>, vector<4x128xf32>, vector<32x128xf32> -> vector<32x128xf32>
    %c0_45 = arith.constant 0 : index
    %c0_46 = arith.constant 0 : index
    %c0_47 = arith.constant 0 : index
    %64 = vector.load %arg4[%c0_45, %c0_46, %c0_47] : memref<4x32x128xf32, #tpu.memory_space<vmem>>, vector<1x32x128xf32>
    %65 = vector.shape_cast %64 : vector<1x32x128xf32> to vector<32x128xf32>
    %66 = arith.subf %63, %65 : vector<32x128xf32>
    %c1_48 = arith.constant 1 : index
    %c0_49 = arith.constant 0 : index
    %c0_50 = arith.constant 0 : index
    %67 = vector.load %arg4[%c1_48, %c0_49, %c0_50] : memref<4x32x128xf32, #tpu.memory_space<vmem>>, vector<1x32x128xf32>
    %68 = vector.shape_cast %67 : vector<1x32x128xf32> to vector<32x128xf32>
    %69 = arith.mulf %66, %68 : vector<32x128xf32>
    %70 = math.tanh %69 : vector<32x128xf32>
    %c2_51 = arith.constant 2 : index
    %c0_52 = arith.constant 0 : index
    %c0_53 = arith.constant 0 : index
    %71 = vector.load %arg4[%c2_51, %c0_52, %c0_53] : memref<4x32x128xf32, #tpu.memory_space<vmem>>, vector<1x32x128xf32>
    %72 = vector.shape_cast %71 : vector<1x32x128xf32> to vector<32x128xf32>
    %73 = arith.mulf %70, %72 : vector<32x128xf32>
    %cst_54 = arith.constant dense<0.000000e+00> : vector<128xf32>
    %74 = vector.multi_reduction <add>, %73, %cst_54 [0] : vector<32x128xf32> to vector<128xf32>
    %75 = vector.shape_cast %74 : vector<128xf32> to vector<1x128xf32>
    %c3_55 = arith.constant 3 : index
    %c0_56 = arith.constant 0 : index
    %c0_57 = arith.constant 0 : index
    %76 = vector.load %arg4[%c3_55, %c0_56, %c0_57] : memref<4x32x128xf32, #tpu.memory_space<vmem>>, vector<1x32x128xf32>
    %77 = vector.shape_cast %76 : vector<1x32x128xf32> to vector<32x128xf32>
    %78 = arith.mulf %70, %77 : vector<32x128xf32>
    %cst_58 = arith.constant dense<0.000000e+00> : vector<128xf32>
    %79 = vector.multi_reduction <add>, %78, %cst_58 [0] : vector<32x128xf32> to vector<128xf32>
    %80 = vector.shape_cast %79 : vector<128xf32> to vector<1x128xf32>
    %81 = arith.mulf %2, %56 : vector<1x128xf32>
    %82 = arith.addf %81, %19 : vector<1x128xf32>
    %83 = arith.addf %82, %75 : vector<1x128xf32>
    %84 = arith.addf %26, %80 : vector<1x128xf32>
    %85 = arith.divf %83, %84 : vector<1x128xf32>
    %86 = vector.shape_cast %85 : vector<1x128xf32> to vector<1x128xf32>
    %87 = vector.broadcast %86 : vector<1x128xf32> to vector<32x128xf32>
    %c0_59 = arith.constant 0 : index
    %c0_60 = arith.constant 0 : index
    %88 = vector.load %arg6[%c0_59, %c0_60] : memref<32x128xf32, #tpu.memory_space<vmem>>, vector<32x128xf32>
    %89 = arith.mulf %87, %88 : vector<32x128xf32>
    %c0_61 = arith.constant 0 : index
    %c0_62 = arith.constant 0 : index
    %90 = vector.load %arg7[%c0_61, %c0_62] : memref<128x4xf32, #tpu.memory_space<vmem>>, vector<128x4xf32>
    %cst_63 = arith.constant dense<0.000000e+00> : vector<32x4xf32>
    %91 = tpu.matmul %89, %90, %cst_63 {dimension_numbers = #tpu.dot_dimension_numbers<[1], [0], [0], [1], [0, 0, 1, 1], [], []>, precision = #tpu.contract_precision<fp32>} : vector<32x128xf32>, vector<128x4xf32>, vector<32x4xf32> -> vector<32x4xf32>
    %cst_64 = arith.constant dense<0.000000e+00> : vector<32x128xf32>
    %92 = tpu.matmul %91, %0, %cst_64 {dimension_numbers = #tpu.dot_dimension_numbers<[1], [0], [0], [1], [0, 0, 1, 1], [], []>, precision = #tpu.contract_precision<fp32>} : vector<32x4xf32>, vector<4x128xf32>, vector<32x128xf32> -> vector<32x128xf32>
    %c0_65 = arith.constant 0 : index
    %c0_66 = arith.constant 0 : index
    %c0_67 = arith.constant 0 : index
    %93 = vector.load %arg4[%c0_65, %c0_66, %c0_67] : memref<4x32x128xf32, #tpu.memory_space<vmem>>, vector<1x32x128xf32>
    %94 = vector.shape_cast %93 : vector<1x32x128xf32> to vector<32x128xf32>
    %95 = arith.subf %92, %94 : vector<32x128xf32>
    %c1_68 = arith.constant 1 : index
    %c0_69 = arith.constant 0 : index
    %c0_70 = arith.constant 0 : index
    %96 = vector.load %arg4[%c1_68, %c0_69, %c0_70] : memref<4x32x128xf32, #tpu.memory_space<vmem>>, vector<1x32x128xf32>
    %97 = vector.shape_cast %96 : vector<1x32x128xf32> to vector<32x128xf32>
    %98 = arith.mulf %95, %97 : vector<32x128xf32>
    %99 = math.tanh %98 : vector<32x128xf32>
    %c2_71 = arith.constant 2 : index
    %c0_72 = arith.constant 0 : index
    %c0_73 = arith.constant 0 : index
    %100 = vector.load %arg4[%c2_71, %c0_72, %c0_73] : memref<4x32x128xf32, #tpu.memory_space<vmem>>, vector<1x32x128xf32>
    %101 = vector.shape_cast %100 : vector<1x32x128xf32> to vector<32x128xf32>
    %102 = arith.mulf %99, %101 : vector<32x128xf32>
    %cst_74 = arith.constant dense<0.000000e+00> : vector<128xf32>
    %103 = vector.multi_reduction <add>, %102, %cst_74 [0] : vector<32x128xf32> to vector<128xf32>
    %104 = vector.shape_cast %103 : vector<128xf32> to vector<1x128xf32>
    %c3_75 = arith.constant 3 : index
    %c0_76 = arith.constant 0 : index
    %c0_77 = arith.constant 0 : index
    %105 = vector.load %arg4[%c3_75, %c0_76, %c0_77] : memref<4x32x128xf32, #tpu.memory_space<vmem>>, vector<1x32x128xf32>
    %106 = vector.shape_cast %105 : vector<1x32x128xf32> to vector<32x128xf32>
    %107 = arith.mulf %99, %106 : vector<32x128xf32>
    %cst_78 = arith.constant dense<0.000000e+00> : vector<128xf32>
    %108 = vector.multi_reduction <add>, %107, %cst_78 [0] : vector<32x128xf32> to vector<128xf32>
    %109 = vector.shape_cast %108 : vector<128xf32> to vector<1x128xf32>
    %110 = arith.mulf %2, %85 : vector<1x128xf32>
    %111 = arith.addf %110, %19 : vector<1x128xf32>
    %112 = arith.addf %111, %104 : vector<1x128xf32>
    %113 = arith.addf %26, %109 : vector<1x128xf32>
    %114 = arith.divf %112, %113 : vector<1x128xf32>
    %115 = vector.shape_cast %114 : vector<1x128xf32> to vector<1x128xf32>
    %116 = vector.broadcast %115 : vector<1x128xf32> to vector<32x128xf32>
    %c0_79 = arith.constant 0 : index
    %c0_80 = arith.constant 0 : index
    %117 = vector.load %arg6[%c0_79, %c0_80] : memref<32x128xf32, #tpu.memory_space<vmem>>, vector<32x128xf32>
    %118 = arith.mulf %116, %117 : vector<32x128xf32>
    %c0_81 = arith.constant 0 : index
    %c0_82 = arith.constant 0 : index
    %119 = vector.load %arg7[%c0_81, %c0_82] : memref<128x4xf32, #tpu.memory_space<vmem>>, vector<128x4xf32>
    %cst_83 = arith.constant dense<0.000000e+00> : vector<32x4xf32>
    %120 = tpu.matmul %118, %119, %cst_83 {dimension_numbers = #tpu.dot_dimension_numbers<[1], [0], [0], [1], [0, 0, 1, 1], [], []>, precision = #tpu.contract_precision<fp32>} : vector<32x128xf32>, vector<128x4xf32>, vector<32x4xf32> -> vector<32x4xf32>
    %cst_84 = arith.constant dense<0.000000e+00> : vector<32x128xf32>
    %121 = tpu.matmul %120, %0, %cst_84 {dimension_numbers = #tpu.dot_dimension_numbers<[1], [0], [0], [1], [0, 0, 1, 1], [], []>, precision = #tpu.contract_precision<fp32>} : vector<32x4xf32>, vector<4x128xf32>, vector<32x128xf32> -> vector<32x128xf32>
    %c0_85 = arith.constant 0 : index
    %c0_86 = arith.constant 0 : index
    %c0_87 = arith.constant 0 : index
    %122 = vector.load %arg4[%c0_85, %c0_86, %c0_87] : memref<4x32x128xf32, #tpu.memory_space<vmem>>, vector<1x32x128xf32>
    %123 = vector.shape_cast %122 : vector<1x32x128xf32> to vector<32x128xf32>
    %124 = arith.subf %121, %123 : vector<32x128xf32>
    %c1_88 = arith.constant 1 : index
    %c0_89 = arith.constant 0 : index
    %c0_90 = arith.constant 0 : index
    %125 = vector.load %arg4[%c1_88, %c0_89, %c0_90] : memref<4x32x128xf32, #tpu.memory_space<vmem>>, vector<1x32x128xf32>
    %126 = vector.shape_cast %125 : vector<1x32x128xf32> to vector<32x128xf32>
    %127 = arith.mulf %124, %126 : vector<32x128xf32>
    %128 = math.tanh %127 : vector<32x128xf32>
    %c2_91 = arith.constant 2 : index
    %c0_92 = arith.constant 0 : index
    %c0_93 = arith.constant 0 : index
    %129 = vector.load %arg4[%c2_91, %c0_92, %c0_93] : memref<4x32x128xf32, #tpu.memory_space<vmem>>, vector<1x32x128xf32>
    %130 = vector.shape_cast %129 : vector<1x32x128xf32> to vector<32x128xf32>
    %131 = arith.mulf %128, %130 : vector<32x128xf32>
    %cst_94 = arith.constant dense<0.000000e+00> : vector<128xf32>
    %132 = vector.multi_reduction <add>, %131, %cst_94 [0] : vector<32x128xf32> to vector<128xf32>
    %133 = vector.shape_cast %132 : vector<128xf32> to vector<1x128xf32>
    %c3_95 = arith.constant 3 : index
    %c0_96 = arith.constant 0 : index
    %c0_97 = arith.constant 0 : index
    %134 = vector.load %arg4[%c3_95, %c0_96, %c0_97] : memref<4x32x128xf32, #tpu.memory_space<vmem>>, vector<1x32x128xf32>
    %135 = vector.shape_cast %134 : vector<1x32x128xf32> to vector<32x128xf32>
    %136 = arith.mulf %128, %135 : vector<32x128xf32>
    %cst_98 = arith.constant dense<0.000000e+00> : vector<128xf32>
    %137 = vector.multi_reduction <add>, %136, %cst_98 [0] : vector<32x128xf32> to vector<128xf32>
    %138 = vector.shape_cast %137 : vector<128xf32> to vector<1x128xf32>
    %139 = arith.mulf %2, %114 : vector<1x128xf32>
    %140 = arith.addf %139, %19 : vector<1x128xf32>
    %141 = arith.addf %140, %133 : vector<1x128xf32>
    %142 = arith.addf %26, %138 : vector<1x128xf32>
    %143 = arith.divf %141, %142 : vector<1x128xf32>
    %144 = vector.shape_cast %143 : vector<1x128xf32> to vector<1x128xf32>
    %145 = vector.broadcast %144 : vector<1x128xf32> to vector<32x128xf32>
    %c0_99 = arith.constant 0 : index
    %c0_100 = arith.constant 0 : index
    %146 = vector.load %arg6[%c0_99, %c0_100] : memref<32x128xf32, #tpu.memory_space<vmem>>, vector<32x128xf32>
    %147 = arith.mulf %145, %146 : vector<32x128xf32>
    %c0_101 = arith.constant 0 : index
    %c0_102 = arith.constant 0 : index
    %148 = vector.load %arg7[%c0_101, %c0_102] : memref<128x4xf32, #tpu.memory_space<vmem>>, vector<128x4xf32>
    %cst_103 = arith.constant dense<0.000000e+00> : vector<32x4xf32>
    %149 = tpu.matmul %147, %148, %cst_103 {dimension_numbers = #tpu.dot_dimension_numbers<[1], [0], [0], [1], [0, 0, 1, 1], [], []>, precision = #tpu.contract_precision<fp32>} : vector<32x128xf32>, vector<128x4xf32>, vector<32x4xf32> -> vector<32x4xf32>
    %cst_104 = arith.constant dense<0.000000e+00> : vector<32x128xf32>
    %150 = tpu.matmul %149, %0, %cst_104 {dimension_numbers = #tpu.dot_dimension_numbers<[1], [0], [0], [1], [0, 0, 1, 1], [], []>, precision = #tpu.contract_precision<fp32>} : vector<32x4xf32>, vector<4x128xf32>, vector<32x128xf32> -> vector<32x128xf32>
    %c0_105 = arith.constant 0 : index
    %c0_106 = arith.constant 0 : index
    %c0_107 = arith.constant 0 : index
    %151 = vector.load %arg4[%c0_105, %c0_106, %c0_107] : memref<4x32x128xf32, #tpu.memory_space<vmem>>, vector<1x32x128xf32>
    %152 = vector.shape_cast %151 : vector<1x32x128xf32> to vector<32x128xf32>
    %153 = arith.subf %150, %152 : vector<32x128xf32>
    %c1_108 = arith.constant 1 : index
    %c0_109 = arith.constant 0 : index
    %c0_110 = arith.constant 0 : index
    %154 = vector.load %arg4[%c1_108, %c0_109, %c0_110] : memref<4x32x128xf32, #tpu.memory_space<vmem>>, vector<1x32x128xf32>
    %155 = vector.shape_cast %154 : vector<1x32x128xf32> to vector<32x128xf32>
    %156 = arith.mulf %153, %155 : vector<32x128xf32>
    %157 = math.tanh %156 : vector<32x128xf32>
    %c2_111 = arith.constant 2 : index
    %c0_112 = arith.constant 0 : index
    %c0_113 = arith.constant 0 : index
    %158 = vector.load %arg4[%c2_111, %c0_112, %c0_113] : memref<4x32x128xf32, #tpu.memory_space<vmem>>, vector<1x32x128xf32>
    %159 = vector.shape_cast %158 : vector<1x32x128xf32> to vector<32x128xf32>
    %160 = arith.mulf %157, %159 : vector<32x128xf32>
    %cst_114 = arith.constant dense<0.000000e+00> : vector<128xf32>
    %161 = vector.multi_reduction <add>, %160, %cst_114 [0] : vector<32x128xf32> to vector<128xf32>
    %162 = vector.shape_cast %161 : vector<128xf32> to vector<1x128xf32>
    %c3_115 = arith.constant 3 : index
    %c0_116 = arith.constant 0 : index
    %c0_117 = arith.constant 0 : index
    %163 = vector.load %arg4[%c3_115, %c0_116, %c0_117] : memref<4x32x128xf32, #tpu.memory_space<vmem>>, vector<1x32x128xf32>
    %164 = vector.shape_cast %163 : vector<1x32x128xf32> to vector<32x128xf32>
    %165 = arith.mulf %157, %164 : vector<32x128xf32>
    %cst_118 = arith.constant dense<0.000000e+00> : vector<128xf32>
    %166 = vector.multi_reduction <add>, %165, %cst_118 [0] : vector<32x128xf32> to vector<128xf32>
    %167 = vector.shape_cast %166 : vector<128xf32> to vector<1x128xf32>
    %168 = arith.mulf %2, %143 : vector<1x128xf32>
    %169 = arith.addf %168, %19 : vector<1x128xf32>
    %170 = arith.addf %169, %162 : vector<1x128xf32>
    %171 = arith.addf %26, %167 : vector<1x128xf32>
    %172 = arith.divf %170, %171 : vector<1x128xf32>
    %173 = vector.shape_cast %172 : vector<1x128xf32> to vector<1x128xf32>
    %174 = vector.broadcast %173 : vector<1x128xf32> to vector<32x128xf32>
    %c0_119 = arith.constant 0 : index
    %c0_120 = arith.constant 0 : index
    %175 = vector.load %arg6[%c0_119, %c0_120] : memref<32x128xf32, #tpu.memory_space<vmem>>, vector<32x128xf32>
    %176 = arith.mulf %174, %175 : vector<32x128xf32>
    %c0_121 = arith.constant 0 : index
    %c0_122 = arith.constant 0 : index
    %177 = vector.load %arg7[%c0_121, %c0_122] : memref<128x4xf32, #tpu.memory_space<vmem>>, vector<128x4xf32>
    %cst_123 = arith.constant dense<0.000000e+00> : vector<32x4xf32>
    %178 = tpu.matmul %176, %177, %cst_123 {dimension_numbers = #tpu.dot_dimension_numbers<[1], [0], [0], [1], [0, 0, 1, 1], [], []>, precision = #tpu.contract_precision<fp32>} : vector<32x128xf32>, vector<128x4xf32>, vector<32x4xf32> -> vector<32x4xf32>
    %cst_124 = arith.constant dense<0.000000e+00> : vector<32x128xf32>
    %179 = tpu.matmul %178, %0, %cst_124 {dimension_numbers = #tpu.dot_dimension_numbers<[1], [0], [0], [1], [0, 0, 1, 1], [], []>, precision = #tpu.contract_precision<fp32>} : vector<32x4xf32>, vector<4x128xf32>, vector<32x128xf32> -> vector<32x128xf32>
    %c0_125 = arith.constant 0 : index
    %c0_126 = arith.constant 0 : index
    %c0_127 = arith.constant 0 : index
    %180 = vector.load %arg4[%c0_125, %c0_126, %c0_127] : memref<4x32x128xf32, #tpu.memory_space<vmem>>, vector<1x32x128xf32>
    %181 = vector.shape_cast %180 : vector<1x32x128xf32> to vector<32x128xf32>
    %182 = arith.subf %179, %181 : vector<32x128xf32>
    %c1_128 = arith.constant 1 : index
    %c0_129 = arith.constant 0 : index
    %c0_130 = arith.constant 0 : index
    %183 = vector.load %arg4[%c1_128, %c0_129, %c0_130] : memref<4x32x128xf32, #tpu.memory_space<vmem>>, vector<1x32x128xf32>
    %184 = vector.shape_cast %183 : vector<1x32x128xf32> to vector<32x128xf32>
    %185 = arith.mulf %182, %184 : vector<32x128xf32>
    %186 = math.tanh %185 : vector<32x128xf32>
    %c2_131 = arith.constant 2 : index
    %c0_132 = arith.constant 0 : index
    %c0_133 = arith.constant 0 : index
    %187 = vector.load %arg4[%c2_131, %c0_132, %c0_133] : memref<4x32x128xf32, #tpu.memory_space<vmem>>, vector<1x32x128xf32>
    %188 = vector.shape_cast %187 : vector<1x32x128xf32> to vector<32x128xf32>
    %189 = arith.mulf %186, %188 : vector<32x128xf32>
    %cst_134 = arith.constant dense<0.000000e+00> : vector<128xf32>
    %190 = vector.multi_reduction <add>, %189, %cst_134 [0] : vector<32x128xf32> to vector<128xf32>
    %191 = vector.shape_cast %190 : vector<128xf32> to vector<1x128xf32>
    %c3_135 = arith.constant 3 : index
    %c0_136 = arith.constant 0 : index
    %c0_137 = arith.constant 0 : index
    %192 = vector.load %arg4[%c3_135, %c0_136, %c0_137] : memref<4x32x128xf32, #tpu.memory_space<vmem>>, vector<1x32x128xf32>
    %193 = vector.shape_cast %192 : vector<1x32x128xf32> to vector<32x128xf32>
    %194 = arith.mulf %186, %193 : vector<32x128xf32>
    %cst_138 = arith.constant dense<0.000000e+00> : vector<128xf32>
    %195 = vector.multi_reduction <add>, %194, %cst_138 [0] : vector<32x128xf32> to vector<128xf32>
    %196 = vector.shape_cast %195 : vector<128xf32> to vector<1x128xf32>
    %197 = arith.mulf %2, %172 : vector<1x128xf32>
    %198 = arith.addf %197, %19 : vector<1x128xf32>
    %199 = arith.addf %198, %191 : vector<1x128xf32>
    %200 = arith.addf %26, %196 : vector<1x128xf32>
    %201 = arith.divf %199, %200 : vector<1x128xf32>
    %c0_139 = arith.constant 0 : index
    %c0_140 = arith.constant 0 : index
    %202 = vector.load %arg9[%c0_139, %c0_140] : memref<1x128xf32, #tpu.memory_space<vmem>>, vector<1x128xf32>
    tpu.vector_store %arg9[%c0_139, %c0_140], %201 {strides = array<i32>} : memref<1x128xf32, #tpu.memory_space<vmem>>, vector<1x128xf32>,
    return
  }
  func.func @transform_0(%arg0: i32) -> (i32, i32, i32) {
    %c0_i32 = arith.constant 0 : i32
    %c0_i32_0 = arith.constant 0 : i32
    %c0_i32_1 = arith.constant 0 : i32
    return %arg0, %c0_i32, %c0_i32_0 : i32, i32, i32
  }
  func.func @transform_1(%arg0: i32) -> (i32, i32) {
    %c0_i32 = arith.constant 0 : i32
    %c0_i32_0 = arith.constant 0 : i32
    return %c0_i32, %arg0 : i32, i32
  }
  func.func @transform_2(%arg0: i32) -> (i32, i32, i32) {
    %c0_i32 = arith.constant 0 : i32
    %c0_i32_0 = arith.constant 0 : i32
    %c0_i32_1 = arith.constant 0 : i32
    %c0_i32_2 = arith.constant 0 : i32
    return %c0_i32, %c0_i32_0, %c0_i32_1 : i32, i32, i32
  }
  func.func @transform_3(%arg0: i32) -> (i32, i32, i32) {
    %c0_i32 = arith.constant 0 : i32
    %c0_i32_0 = arith.constant 0 : i32
    %c0_i32_1 = arith.constant 0 : i32
    %c0_i32_2 = arith.constant 0 : i32
    return %c0_i32, %c0_i32_0, %c0_i32_1 : i32, i32, i32
  }
  func.func @transform_4(%arg0: i32) -> (i32, i32) {
    %c0_i32 = arith.constant 0 : i32
    %c0_i32_0 = arith.constant 0 : i32
    %c0_i32_1 = arith.constant 0 : i32
    return %c0_i32, %c0_i32_0 : i32, i32
  }
  func.func @transform_5(%arg0: i32) -> (i32, i32) {
    %c0_i32 = arith.constant 0 : i32
    %c0_i32_0 = arith.constant 0 : i32
    %c0_i32_1 = arith.constant 0 : i32
    return %c0_i32, %c0_i32_0 : i32, i32
  }
  func.func @transform_6(%arg0: i32) -> (i32, i32) {
    %c0_i32 = arith.constant 0 : i32
    %c0_i32_0 = arith.constant 0 : i32
    %c0_i32_1 = arith.constant 0 : i32
    return %c0_i32, %c0_i32_0 : i32, i32
  }
  func.func @transform_7(%arg0: i32) -> (i32, i32) {
    %c0_i32 = arith.constant 0 : i32
    %c0_i32_0 = arith.constant 0 : i32
    %c0_i32_1 = arith.constant 0 : i32
    return %c0_i32, %c0_i32_0 : i32, i32
  }
  func.func @transform_8(%arg0: i32) -> (i32, i32) {
    %c0_i32 = arith.constant 0 : i32
    %c0_i32_0 = arith.constant 0 : i32
    return %c0_i32, %arg0 : i32, i32
  }
}

</mosaic_0001>

<bundles_post_ra>
// kernel: tile.119
= control target key start
LH: loop header
LB: loop body
LE: loop exit
PB: predicated region body
PF: predicated region fallthrough
CT: control target
= control target key end

     0   :  { %vm163_vm0 = vcmask 1047556   ;;  %s399_s10 = smov 96   ;;  %vm165_vm1 = vcmask 261120   ;;  %s401_s21 = smov 32   ;;  %vm202_vm2 = vcmask 1048320   ;;  %vm245_vm3 = vcmask 785920   ;;  %s580_s0 = inlined_call_operand.vmem [shape: f32[32,4,32], index: 0, kind: input, shape index: {}]   ;;  %s581_s1 = inlined_call_operand.vmem [shape: f32[32,128], index: 1, kind: output, shape index: {}]  }
   0x1   :  { %v377_v0 = vld [vmem:[%s580_s0 + $0x1c] sm:$0xf]  ;;  %v378_v1 = vld [vmem:[%s580_s0 + $0x18] sm:$0xf]  ;;  %v379_v2 = vld [vmem:[%s580_s0 + $0x14] sm:$0xf] }
   0x2   :  { %129 = vst [vmem:[#allocation0 + $0x38] sm:$0xf] %v377_v0  ;;  %134 = vst [vmem:[#allocation0 + $0x30] sm:$0xf] %v378_v1  ;;  %v380_v3 = vld [vmem:[%s580_s0 + $0x10] sm:$0xf] }
   0x3   :  { %139 = vst [vmem:[#allocation0 + $0x28] sm:$0xf] %v379_v2  ;;  %v381_v4 = vld [vmem:[%s580_s0 + $0xc] sm:$0xf]  ;;  %v382_v5 = vld [vmem:[%s580_s0 + $0x8] sm:$0xf] }
   0x4   :  { %144 = vst [vmem:[#allocation0 + $0x20] sm:$0xf] %v380_v3  ;;  %149 = vst [vmem:[#allocation0 + $0x18] sm:$0xf] %v381_v4  ;;  %v383_v6 = vld [vmem:[%s580_s0 + $0x4] sm:$0xf] }
   0x5   :  { %154 = vst [vmem:[#allocation0 + $0x10] sm:$0xf] %v382_v5  ;;  %v159_v7 = vld [vmem:[%s580_s0] sm:$0xf]  ;;  %158 = vst [vmem:[#allocation0 + $0x8] sm:$0xf] %v383_v6 }
   0x6   :  { %160 = vst [vmem:[#allocation0] sm:$0xf] %v159_v7  ;;  %v361_v8 = vld [vmem:[%s580_s0 + $0x5c] sm:$0xf]  ;;  %v362_v9 = vld [vmem:[%s580_s0 + $0x58] sm:$0xf] }
   0x7   :  { %v363_v10 = vld [vmem:[%s580_s0 + $0x54] sm:$0xf]  ;;  %49 = vst [vmem:[#allocation0 + $0xb8] sm:$0xf] %v361_v8  ;;  %54 = vst [vmem:[#allocation0 + $0xb0] sm:$0xf] %v362_v9 }
   0x8   :  { %59 = vst [vmem:[#allocation0 + $0xa8] sm:$0xf] %v363_v10  ;;  %v364_v11 = vld [vmem:[%s580_s0 + $0x50] sm:$0xf]  ;;  %v365_v12 = vld [vmem:[%s580_s0 + $0x4c] sm:$0xf] }
   0x9   :  { %v366_v13 = vld [vmem:[%s580_s0 + $0x48] sm:$0xf]  ;;  %64 = vst [vmem:[#allocation0 + $0xa0] sm:$0xf] %v364_v11  ;;  %69 = vst [vmem:[#allocation0 + $0x98] sm:$0xf] %v365_v12 }
   0xa   :  { %74 = vst [vmem:[#allocation0 + $0x90] sm:$0xf] %v366_v13  ;;  %v367_v14 = vld [vmem:[%s580_s0 + $0x44] sm:$0xf]  ;;  %v368_v15 = vld [vmem:[%s580_s0 + $0x40] sm:$0xf] }
   0xb   :  { %v369_v16 = vld [vmem:[%s580_s0 + $0x3c] sm:$0xf]  ;;  %79 = vst [vmem:[#allocation0 + $0x88] sm:$0xf] %v367_v14  ;;  %84 = vst [vmem:[#allocation0 + $0x80] sm:$0xf] %v368_v15 }
   0xc   :  { %89 = vst [vmem:[#allocation0 + $0x78] sm:$0xf] %v369_v16  ;;  %v370_v17 = vld [vmem:[%s580_s0 + $0x38] sm:$0xf]  ;;  %v371_v18 = vld [vmem:[%s580_s0 + $0x34] sm:$0xf] }
   0xd   :  { %v372_v19 = vld [vmem:[%s580_s0 + $0x30] sm:$0xf]  ;;  %94 = vst [vmem:[#allocation0 + $0x70] sm:$0xf] %v370_v17  ;;  %99 = vst [vmem:[#allocation0 + $0x68] sm:$0xf] %v371_v18 }
   0xe   :  { %104 = vst [vmem:[#allocation0 + $0x60] sm:$0xf] %v372_v19  ;;  %v373_v20 = vld [vmem:[%s580_s0 + $0x2c] sm:$0xf]  ;;  %v374_v21 = vld [vmem:[%s580_s0 + $0x28] sm:$0xf] }
   0xf   :  { %v375_v22 = vld [vmem:[%s580_s0 + $0x24] sm:$0xf]  ;;  %109 = vst [vmem:[#allocation0 + $0x58] sm:$0xf] %v373_v20  ;;  %114 = vst [vmem:[#allocation0 + $0x50] sm:$0xf] %v374_v21 }
  0x10   :  { %119 = vst [vmem:[#allocation0 + $0x48] sm:$0xf] %v375_v22  ;;  %v376_v23 = vld [vmem:[%s580_s0 + $0x20] sm:$0xf]  ;;  %v353_v24 = vld [vmem:[%s580_s0 + $0x7c] sm:$0xf] }
  0x11   :  { %v354_v25 = vld [vmem:[%s580_s0 + $0x78] sm:$0xf]  ;;  %124 = vst [vmem:[#allocation0 + $0x40] sm:$0xf] %v376_v23  ;;  %9 = vst [vmem:[#allocation0 + $0xf8] sm:$0xf] %v353_v24 }
  0x12   :  { %v197_v26 = vld [vmem:[#allocation0 + $0x3] ss:$8 sm:$0xf0]   ;;  %14 = vst [vmem:[#allocation0 + $0xf0] sm:$0xf] %v354_v25  ;;  %vm288_vm4 = vcmask 523520  }
  0x13   :  { %v355_v27 = vld [vmem:[%s580_s0 + $0x74] sm:$0xf]  ;;  %v195_v28 = vld [vmem:[#allocation0 + $0x3] ss:$8 sm:$0xf]  }
  0x14   :  { %19 = vst [vmem:[#allocation0 + $0xe8] sm:$0xf] %v355_v27  ;;  %v356_v29 = vld [vmem:[%s580_s0 + $0x70] sm:$0xf]  ;;  %v199_v30 = vsel %vm163_vm0, %v197_v26, %v195_v28  ;;  %v357_v31 = vld [vmem:[%s580_s0 + $0x6c] sm:$0xf] }
  0x15   :  { %24 = vst [vmem:[#allocation0 + $0xe0] sm:$0xf] %v356_v29  ;;  %v358_v32 = vld [vmem:[%s580_s0 + $0x68] sm:$0xf]  ;;  %v359_v33 = vld [vmem:[%s580_s0 + $0x64] sm:$0xf]  ;;  %200 = vrot.lane.b32.xlu0 %v199_v30, %s399_s10 }
  0x16   :  { %v218_v34 = vld [vmem:[#allocation0 + $0x83] ss:$8 sm:$0xf0]   ;;  %29 = vst [vmem:[#allocation0 + $0xd8] sm:$0xf] %v357_v31 }
  0x17   :  { %34 = vst [vmem:[#allocation0 + $0xd0] sm:$0xf] %v358_v32  ;;  %39 = vst [vmem:[#allocation0 + $0xc8] sm:$0xf] %v359_v33  ;;  %v360_v35 = vld [vmem:[%s580_s0 + $0x60] sm:$0xf] }
  0x18   :  { %v216_v36 = vld [vmem:[#allocation0 + $0x83] ss:$8 sm:$0xf]   ;;  %44 = vst [vmem:[#allocation0 + $0xc0] sm:$0xf] %v360_v35  ;;  %s400_s0 = smov 64  }
  0x19   :  { %v220_v37 = vsel %vm163_vm0, %v218_v34, %v216_v36  ;;  %v207_v38 = vld [vmem:[#allocation0 + $0x43] ss:$8 sm:$0xf0]   ;;  %v238_v39 = vld [vmem:[#allocation0 + $0x2] ss:$8 sm:$0xf]  }
  0x1a   :  { %221 = vrot.lane.b32.xlu1 %v220_v37, %s399_s10  ;;  %v205_v40 = vld [vmem:[#allocation0 + $0x43] ss:$8 sm:$0xf]   ;;  %v240_v41 = vld [vmem:[#allocation0 + $0x2] ss:$8 sm:$0xf0]  }
  0x1b   :  { %v209_v42 = vsel %vm163_vm0, %v207_v38, %v205_v40  ;;  %v250_v44 = vld [vmem:[#allocation0 + $0x42] ss:$8 sm:$0xf0]   ;;  %v242_v45 = vsel %vm163_vm0, %v240_v41, %v238_v39  ;;  %v281_v52 = vld [vmem:[#allocation0 + $0x1] ss:$8 sm:$0xf]  }
  0x1c   :  { %210 = vrot.lane.b32.xlu0 %v209_v42, %s399_s10  ;;  %v229_v43 = vld [vmem:[#allocation0 + $0xc3] ss:$8 sm:$0xf0]   ;;  %v248_v46 = vld [vmem:[#allocation0 + $0x42] ss:$8 sm:$0xf]  }
  0x1d   :  { %v259_v47 = vld [vmem:[#allocation0 + $0x82] ss:$8 sm:$0xf]   ;;  %v252_v53 = vsel %vm163_vm0, %v250_v44, %v248_v46  ;;  %v283_v55 = vld [vmem:[#allocation0 + $0x1] ss:$8 sm:$0xf0]  }
  0x1e   :  { %v261_v49 = vld [vmem:[#allocation0 + $0x82] ss:$8 sm:$0xf0]   ;;  %v161_v56 = vld [vmem:[#allocation0] ss:$8 sm:$0xf]   ;;  %v285_v4 = vsel %vm163_vm0, %v283_v55, %v281_v52 }
  0x1f   :  { %v227_v48 = vld [vmem:[#allocation0 + $0xc3] ss:$8 sm:$0xf]   ;;  %v272_v51 = vld [vmem:[#allocation0 + $0xc2] ss:$8 sm:$0xf0]   ;;  %v263_v54 = vsel %vm163_vm0, %v261_v49, %v259_v47 }
  0x20   :  { %v231_v50 = vsel %vm163_vm0, %v229_v43, %v227_v48  ;;  %243 = vrot.lane.b32.xlu0 %v242_v45, %s400_s0  ;;  %v270_v57 = vld [vmem:[#allocation0 + $0xc2] ss:$8 sm:$0xf]   ;;  %v162_v58 = vld [vmem:[#allocation0] ss:$8 sm:$0xf0]  }
  0x21   :  { %232 = vrot.lane.b32.xlu1 %v231_v50, %s399_s10  ;;  %v164_v59 = vsel %vm163_vm0, %v162_v58, %v161_v56  ;;  %v177_v60 = vld [vmem:[#allocation0 + $0x80] ss:$8 sm:$0xf]   ;;  %v291_v62 = vld [vmem:[#allocation0 + $0x41] ss:$8 sm:$0xf]   ;;  %v274_v3 = vsel %vm163_vm0, %v272_v51, %v270_v57 }
  0x22   :  { %v179_v61 = vld [vmem:[#allocation0 + $0x80] ss:$8 sm:$0xf0]   ;;  %v293_v63 = vld [vmem:[#allocation0 + $0x41] ss:$8 sm:$0xf0]  }
  0x23   :  { %166 = vst.msk [vmem:[%s581_s1] sm:$0xff] %vm165_vm1, %v164_v59   ;;  %v181_v0 = vsel %vm163_vm0, %v179_v61, %v177_v60  ;;  %v168_v1 = vld [vmem:[#allocation0 + $0x40] ss:$8 sm:$0xf]   ;;  %v295_v11 = vsel %vm163_vm0, %v293_v63, %v291_v62 }
  0x24   :  { %264 = vrot.lane.b32.xlu0 %v263_v54, %s400_s0  ;;  %v170_v2 = vld [vmem:[#allocation0 + $0x40] ss:$8 sm:$0xf0]   ;;  %385 = vst.msk [vmem:[%s581_s1 + $0x10] sm:$0xff] %vm165_vm1, %v181_v0  }
  0x25   :  { %253 = vrot.lane.b32.xlu1 %v252_v53, %s400_s0  ;;  %v172_v5 = vsel %vm163_vm0, %v170_v2, %v168_v1  ;;  %v186_v6 = vld [vmem:[#allocation0 + $0xc0] ss:$8 sm:$0xf]   ;;  %v302_v8 = vld [vmem:[#allocation0 + $0x81] ss:$8 sm:$0xf]  }
  0x26   :  { %v188_v7 = vld [vmem:[#allocation0 + $0xc0] ss:$8 sm:$0xf0]   ;;  %v304_v9 = vld [vmem:[#allocation0 + $0x81] ss:$8 sm:$0xf0]  }
  0x27   :  { %384 = vst.msk [vmem:[%s581_s1 + $0x8] sm:$0xff] %vm165_vm1, %v172_v5   ;;  %v190_v10 = vsel %vm163_vm0, %v188_v7, %v186_v6  ;;  %v306_v12 = vsel %vm163_vm0, %v304_v9, %v302_v8  ;;  %v313_v13 = vld [vmem:[#allocation0 + $0xc1] ss:$8 sm:$0xf]  }
  0x28   :  { %386 = vst.msk [vmem:[%s581_s1 + $0x18] sm:$0xff] %vm165_vm1, %v190_v10   ;;  %286 = vrot.lane.b32.xlu0 %v285_v4, %s401_s21  ;;  %v315_v14 = vld [vmem:[#allocation0 + $0xc1] ss:$8 sm:$0xf0]  }
  0x29   :  { %275 = vrot.lane.b32.xlu1 %v274_v3, %s400_s0  ;;  %v317_v15 = vsel %vm163_vm0, %v315_v14, %v313_v13 }
  0x2c   :  { %307 = vrot.lane.b32.xlu0 %v306_v12, %s401_s21 }
  0x2d   :  { %296 = vrot.lane.b32.xlu1 %v295_v11, %s401_s21 }
  0x31   :  { %318 = vrot.lane.b32.xlu1 %v317_v15, %s401_s21 }
  0x87   :  { %v201_v16 = vpop.permute.xlu0 %200  }
  0x88   :  { %203 = vst.msk [vmem:[%s581_s1] sm:$0xff] %vm202_vm2, %v201_v16  }
  0x8c   :  { %v222_v17 = vpop.permute.xlu1 %221  }
  0x8d   :  { %388 = vst.msk [vmem:[%s581_s1 + $0x10] sm:$0xff] %vm202_vm2, %v222_v17  }
  0x8e   :  { %v211_v18 = vpop.permute.xlu0 %210  }
  0x8f   :  { %387 = vst.msk [vmem:[%s581_s1 + $0x8] sm:$0xff] %vm202_vm2, %v211_v18  }
  0x92   :  { %v244_v20 = vpop.permute.xlu0 %243  }
  0x93   :  { %v233_v19 = vpop.permute.xlu1 %232   ;;  %246 = vst.msk [vmem:[%s581_s1] sm:$0xff] %vm245_vm3, %v244_v20  }
  0x94   :  { %389 = vst.msk [vmem:[%s581_s1 + $0x18] sm:$0xff] %vm202_vm2, %v233_v19  }
  0x96   :  { %v265_v22 = vpop.permute.xlu0 %264  }
  0x97   :  { %v254_v21 = vpop.permute.xlu1 %253   ;;  %391 = vst.msk [vmem:[%s581_s1 + $0x10] sm:$0xff] %vm245_vm3, %v265_v22  }
  0x98   :  { %390 = vst.msk [vmem:[%s581_s1 + $0x8] sm:$0xff] %vm245_vm3, %v254_v21  }
  0x9a   :  { %v287_v24 = vpop.permute.xlu0 %286  }
  0x9b   :  { %v276_v23 = vpop.permute.xlu1 %275   ;;  %289 = vst.msk [vmem:[%s581_s1] sm:$0xff] %vm288_vm4, %v287_v24  }
  0x9c   :  { %392 = vst.msk [vmem:[%s581_s1 + $0x18] sm:$0xff] %vm245_vm3, %v276_v23  }
  0x9e   :  { %v308_v26 = vpop.permute.xlu0 %307  }
  0x9f   :  { %v297_v25 = vpop.permute.xlu1 %296   ;;  %394 = vst.msk [vmem:[%s581_s1 + $0x10] sm:$0xff] %vm288_vm4, %v308_v26  }
  0xa0   :  { %393 = vst.msk [vmem:[%s581_s1 + $0x8] sm:$0xff] %vm288_vm4, %v297_v25  }
  0xa3   :  { %v319_v27 = vpop.permute.xlu1 %318  }
  0xa4   :  { %395 = vst.msk [vmem:[%s581_s1 + $0x18] sm:$0xff] %vm288_vm4, %v319_v27  }

// kernel: liquidnet_forward.1
= control target key start
LH: loop header
LB: loop body
LE: loop exit
PB: predicated region body
PF: predicated region fallthrough
CT: control target
= control target key end

     0   :  { %s12164_s27 = smov 0   ;;  %s14539_s0 = inlined_call_operand.vmem [shape: f32[2,8,4], index: 0, kind: input, shape index: {}]   ;;  %s14540_s1 = inlined_call_operand.vmem [shape: f32[1,256], index: 1, kind: input, shape index: {}]   ;;  %s14541_s2 = inlined_call_operand.vmem [shape: f32[4,8,128], index: 2, kind: input, shape index: {}]   ;;  %s14542_s3 = inlined_call_operand.vmem [shape: f32[4,32,128], index: 3, kind: input, shape index: {}]   ;;  %s14543_s4 = inlined_call_operand.vmem [shape: f32[3,128], index: 4, kind: input, shape index: {}]   ;;  %s14544_s5 = inlined_call_operand.vmem [shape: f32[32,128], index: 5, kind: input, shape index: {}]   ;;  %s14545_s6 = inlined_call_operand.vmem [shape: f32[128,4], index: 6, kind: input, shape index: {}]   ;;  %s14546_s7 = inlined_call_operand.vmem [shape: f32[4,128], index: 7, kind: input, shape index: {}]   ;;  %s14547_s8 = inlined_call_operand.vmem [shape: f32[1,256], index: 8, kind: output, shape index: {}]  }
   0x1 LB: > { %s9370_s28 = sadd.s32 4294967295, %s12115_s27   ;;  %p9374_p0 = scmp.ge.s32.totalorder %s12115_s27, 1  ;;  %s12115_s27 = sphi %s12164_s27, %s18_s27  }
   0x2   : > { %p269_p1 = scmp.lt.s32.totalorder %s12115_s27, 3 }
   0x4   : > { %p270_p2 = pnand %p9374_p0, %p269_p1 }
   0x6   : > { %273 = sbr.rel (%p270_p2) target bundleno = 3477 (0xd95), region = 52 }
   0xb   : > { %v313_v0 = vld [vmem:[%s14546_s7] sm:$0xf]  ;;  %vm320_vm0 = vcmask 1043456   ;;  %p303_p3 = scmp.lt.s32.totalorder %s9370_s28, 1  ;;  %v12117_v1 = vmov 0.0   ;;  %v826_v3 = vld [vmem:[%s14545_s6 + $0x78] sm:$0xff]  ;;  %v798_v38 = vlaneseq }
   0xc   : > { %10305 = vmatprep.subr.mxu0 %v12117_v1  ;;  %v322_v2 = vsel %vm320_vm0, %v313_v0, 0  ;;  %10310 = vmatprep.subr.mxu1 %v12117_v1  ;;  %v825_v4 = vld [vmem:[%s14545_s6 + $0x70] sm:$0xff]  ;;  %vm12118_vm1 = vmmov 0   ;;  %v12191_v6 = vand.u32 4294901760, %v826_v3  ;;  %v824_v7 = vld [vmem:[%s14545_s6 + $0x68] sm:$0xff]  ;;  %vm316_vm2 = vcmask 31744  }
   0xd   : > { %v12183_v5 = vand.u32 4294901760, %v322_v2  ;;  %10307 = vmatprep.mubr.msk.f32.mxu0 %vm12118_vm1, %v12117_v1  ;;  %10312 = vmatprep.mubr.msk.f32.mxu1 %vm12118_vm1, %v12117_v1  ;;  %s15199_s28 = smov (!%p303_p3, %s9370_s28), 1  ;;  %v12201_v9 = vand.u32 4294901760, %v825_v4  ;;  %v823_v10 = vld [vmem:[%s14545_s6 + $0x60] sm:$0xff]  ;;  %v12213_v12 = vand.u32 4294901760, %v824_v7  ;;  %v822_v17 = vld [vmem:[%s14545_s6 + $0x58] sm:$0xff] }
   0xe   : > { %s9375_s15 = sshll.u32 %s15199_s28, 3  ;;  %v12211_v11 = vsub.f32 %v826_v3, %v12191_v6  ;;  %v12219_v16 = vand.u32 4294901760, %v823_v10  ;;  %v821_v23 = vld [vmem:[%s14545_s6 + $0x50] sm:$0xff]  ;;  %v12243_v26 = vand.u32 4294901760, %v822_v17  ;;  %v820_v28 = vld [vmem:[%s14545_s6 + $0x48] sm:$0xff]  ;;  %v819_v34 = vld [vmem:[%s14545_s6 + $0x40] sm:$0xff]  ;;  %s12317_s17 = scalar_lea.vmem %s14540_s1, %s15199_s28 }
   0xf   : > { %10306 = vmatpush3.msra.mxu0 %v12183_v5  ;;  %v12198_v8 = vsub.f32 %v322_v2, %v12183_v5  ;;  %s306_s20 = scalar_lea.vmem %s14539_s0, %s9375_s15  ;;  %v12229_v20 = vsub.f32 %v825_v4, %v12201_v9  ;;  %v12235_v22 = vsub.f32 %v824_v7, %v12213_v12  ;;  %v12255_v31 = vand.u32 4294901760, %v821_v23  ;;  %v818_v40 = vld [vmem:[%s14545_s6 + $0x38] sm:$0xff]  ;;  %v817_v45 = vld [vmem:[%s14545_s6 + $0x30] sm:$0xff]  ;;  %v816_v51 = vld [vmem:[%s14545_s6 + $0x28] sm:$0xff]  ;;  %s312_s10 = scalar_lea.vmem %s14547_s8, %s15199_s28 }
  0x10   : > { %10315 = vmatprep.subr.mxu0 %v12117_v1  ;;  %v315_v14 = vld [vmem:[%s306_s20] sm:$0xff]  ;;  %v12232_v21 = vand.u32 4294901760, %v12211_v11  ;;  %v12246_v27 = vsub.f32 %v823_v10, %v12219_v16  ;;  %v12271_v36 = vsub.f32 %v822_v17, %v12243_v26  ;;  %v12273_v37 = vand.u32 4294901760, %v820_v28  ;;  %v814_v4 = vld [vmem:[%s14545_s6 + $0x18] sm:$0xff]  ;;  %v813_v17 = vld [vmem:[%s14545_s6 + $0x10] sm:$0xff] }
  0x11   : > { %14854 = vst [vmem:[#allocation2_spill] sm:$0xff] %v12198_v8  ;;  %v12216_v13 = vand.u32 4294901760, %v12198_v8  ;;  %v318_v15 = vsel %vm316_vm2, %v315_v14, 0  ;;  %14856 = vst [vmem:[#allocation4_spill] sm:$0xff] %v12229_v20  ;;  %v12253_v30 = vand.u32 4294901760, %v12229_v20  ;;  %v12262_v33 = vand.u32 4294901760, %v12235_v22 }
  0x12   : > { %v12226_v19 = vand.u32 4294901760, %v318_v15  ;;  %14857 = vst [vmem:[#allocation5_spill] sm:$0xff] %v12232_v21  ;;  %14858 = vst [vmem:[#allocation6_spill] sm:$0xff] %v12235_v22  ;;  %v952_v32 = vsub.f32 %v12211_v11, %v12232_v21  ;;  %v12277_v39 = vand.u32 4294901760, %v12246_v27  ;;  %v12285_v43 = vsub.f32 %v821_v23, %v12255_v31  ;;  %v815_v60 = vld [vmem:[%s14545_s6 + $0x20] sm:$0xff] }
  0x13   : > { %14855 = vst [vmem:[#allocation3_spill] sm:$0xff] %v12216_v13  ;;  %v434_v18 = vsub.f32 %v12198_v8, %v12216_v13  ;;  %14860 = vst [vmem:[#allocation8_spill] sm:$0xff] %v12246_v27  ;;  %v959_v42 = vsub.f32 %v12229_v20, %v12253_v30  ;;  %v12287_v44 = vand.u32 4294901760, %v819_v34  ;;  %v966_v47 = vsub.f32 %v12235_v22, %v12262_v33  ;;  %v12351_v0 = vld [vmem:[%s12317_s17] ss:$0 sm:$0xff] }
  0x14   : > { %v391_v25 = vsub.f32 %v318_v15, %v12226_v19  ;;  %14861 = vst [vmem:[#allocation9_spill] sm:$0xff] %v12253_v30  ;;  %14862 = vst [vmem:[#allocation10_spill] sm:$0xff] %v12262_v33  ;;  %v12292_v46 = vand.u32 4294901760, %v952_v32  ;;  %v12298_v48 = vand.u32 4294901760, %v12271_v36  ;;  %v12301_v49 = vsub.f32 %v820_v28, %v12273_v37  ;;  %v812_v32 = vld [vmem:[%s14545_s6 + $0x8] sm:$0xff] }
  0x15   : > { %v12240_v24 = vand.u32 4294901760, %v434_v18  ;;  %14863 = vst [vmem:[#allocation11_spill] sm:$0xff] %v12271_v36  ;;  %14864 = vst [vmem:[#allocation12_spill] sm:$0xff] %v12277_v39  ;;  %v12303_v50 = vand.u32 4294901760, %v818_v40  ;;  %v799_v52 = vshrl.u32 %v798_v38, 7  ;;  %v12311_v53 = vand.u32 4294901760, %v817_v45 }
  0x16   : > { %v392_v29 = vand.u32 4294901760, %v391_v25  ;;  %14865 = vst [vmem:[#allocation13_spill] sm:$0xff] %v12285_v43  ;;  %14866 = vst [vmem:[#allocation14_spill] sm:$0xff] %v12292_v46  ;;  %v12322_v54 = vand.u32 4294901760, %v959_v42  ;;  %v973_v55 = vsub.f32 %v12246_v27, %v12277_v39  ;;  %v12327_v56 = vand.u32 4294901760, %v12285_v43  ;;  %v811_v42 = vld [vmem:[%s14545_s6] sm:$0xff] }
  0x17   : > { %14859 = vst [vmem:[#allocation7_spill] sm:$0xff] %v12240_v24  ;;  %10311 = vmatpush3.msra.mxu1 %v12240_v24  ;;  %14867 = vst [vmem:[#allocation15_spill] sm:$0xff] %v12298_v48  ;;  %v12330_v57 = vsub.f32 %v819_v34, %v12287_v44  ;;  %v12334_v58 = vand.u32 4294901760, %v966_v47  ;;  %v12336_v59 = vand.u32 4294901760, %v816_v51  ;;  %v980_v61 = vsub.f32 %v12271_v36, %v12298_v48 }
  0x18   : > { %10313 = vmatmul.mubr.f32.vlgmr.msra.gmra.mxu1 %v12226_v19  ;;  %10320 = vmatprep.subr.mxu1 %v12117_v1  ;;  %v393_v35 = vsub.f32 %v391_v25, %v392_v29  ;;  %14868 = vst [vmem:[#allocation16_spill] sm:$0xff] %v12301_v49  ;;  %14869 = vst [vmem:[#allocation17_spill] sm:$0xff] %v12322_v54  ;;  %v12345_v62 = vand.u32 4294901760, %v12301_v49  ;;  %v12348_v63 = vsub.f32 %v818_v40, %v12303_v50 }
  0x19   : > { %10321 = vmatpush3.msra.mxu1 %v12183_v5  ;;  %10322 = vmatprep.mubr.msk.f32.mxu1 %vm12118_vm1, %v12117_v1  ;;  %14870 = vst [vmem:[#allocation18_spill] sm:$0xff] %v12327_v56  ;;  %14871 = vst [vmem:[#allocation19_spill] sm:$0xff] %v12330_v57  ;;  %v12353_v2 = vsub.s32 0, %v799_v52  ;;  %v12359_v3 = vsub.f32 %v817_v45, %v12311_v53  ;;  %v12366_v7 = vand.u32 4294901760, %v973_v55  ;;  %v12371_v14 = vand.u32 4294901760, %v12330_v57 }
  0x1a   : > { %10330 = vmatprep.subr.mxu1 %v12117_v1  ;;  %v394_v41 = vand.u32 4294901760, %v393_v35  ;;  %14872 = vst [vmem:[#allocation20_spill] sm:$0xff] %v12334_v58  ;;  %14873 = vst [vmem:[#allocation21_spill] sm:$0xff] %v12345_v62  ;;  %v987_v10 = vsub.f32 %v12285_v43, %v12327_v56  ;;  %v12377_v15 = vsub.f32 %v816_v51, %v12336_v59  ;;  %v12384_v18 = vand.u32 4294901760, %v980_v61  ;;  %v804_v61 = vld [vmem:[%s14544_s5 + $0x8] sm:$0xff] }
  0x1b   : > { %14874 = vst [vmem:[#allocation22_spill] sm:$0xff] %v12348_v63  ;;  %14875 = vst [vmem:[#allocation23_spill] sm:$0xff] %v12353_v2  ;;  %v994_v23 = vsub.f32 %v12301_v49, %v12345_v62  ;;  %v12391_v28 = vand.u32 4294901760, %v814_v4  ;;  %v1001_v35 = vsub.f32 %v12330_v57, %v12371_v14  ;;  %v12413_v40 = vand.u32 4294901760, %v813_v17 }
  0x1c   : > { %10323 = vmatmul.mubr.f32.vlgmr.msra.gmra.mxu1 %v392_v29  ;;  %10308 = vmatmul.mubr.f32.vlgmr.msra.gmra.mxu0 %v394_v41  ;;  %14876 = vst [vmem:[#allocation24_spill] sm:$0xff] %v12359_v3  ;;  %14877 = vst [vmem:[#allocation25_spill] sm:$0xff] %v12366_v7  ;;  %v803_v29 = vld [vmem:[%s14544_s5] sm:$0xff]  ;;  %v12406_v34 = vand.u32 4294901760, %v987_v10  ;;  %v12418_v41 = vand.u32 4294901760, %v12377_v15  ;;  %v12433_v55 = vand.u32 4294901760, %v812_v32 }
  0x1d   : > { %10331 = vmatpush3.msra.mxu1 %v12183_v5  ;;  %10316 = vmatpush3.msra.mxu0 %v12198_v8  ;;  %14878 = vst [vmem:[#allocation26_spill] sm:$0xff] %v12371_v14  ;;  %14879 = vst [vmem:[#allocation27_spill] sm:$0xff] %v12377_v15  ;;  %v807_v45 = vmul.f32 %v12351_v0, %v803_v29  ;;  %v12426_v47 = vand.u32 4294901760, %v994_v23  ;;  %v12431_v52 = vsub.f32 %v814_v4, %v12391_v28 }
  0x1e   : > { %10317 = vmatprep.mubr.msk.f32.mxu0 %vm12118_vm1, %v12117_v1  ;;  %10325 = vmatprep.subr.mxu0 %v12117_v1  ;;  %14880 = vst [vmem:[#allocation28_spill] sm:$0xff] %v12384_v18  ;;  %14883 = vst [vmem:[#allocation31_spill] sm:$0xff] %v12406_v34  ;;  %v12444_v10 = vand.u32 4294901760, %v1001_v35  ;;  %v12450_v23 = vsub.f32 %v813_v17, %v12413_v40  ;;  %v12452_v29 = vand.u32 4294901760, %v811_v42 }
  0x1f   : > { %10332 = vmatprep.mubr.msk.f32.mxu1 %vm12118_vm1, %v12117_v1  ;;  %10373 = vmatprep.subr.mxu1 %v12292_v46  ;;  %14885 = vst [vmem:[#allocation33_spill] sm:$0xff] %v12418_v41  ;;  %14886 = vst [vmem:[#allocation34_spill] sm:$0xff] %v12426_v47  ;;  %v1022_v2 = vsub.f32 %v12377_v15, %v12418_v41  ;;  %v12465_v17 = vand.u32 4294901760, %v12431_v52 }
  0x20   : > { %10333 = vmatmul.mubr.f32.vlgmr.msra.gmra.mxu1 %v12226_v19  ;;  %10318 = vmatmul.mubr.f32.vlgmr.msra.gmra.mxu0 %v391_v25  ;;  %v12389_v25 = vand.u32 4294901760, %v12348_v63  ;;  %14887 = vst [vmem:[#allocation35_spill] sm:$0xff] %v12431_v52  ;;  %14888 = vst [vmem:[#allocation36_spill] sm:$0xff] %v12444_v10 }
  0x21   : > { %10374 = vmatpush3.msra.mxu1 %v12292_v46  ;;  %10326 = vmatpush3.msra.mxu0 %v12216_v13  ;;  %14890 = vst [vmem:[#allocation38_spill] sm:$0xff] %v12450_v23  ;;  %14892 = vst [vmem:[#allocation40_spill] sm:$0xff] %v12465_v17 }
  0x22   : > { %10327 = vmatprep.mubr.msk.f32.mxu0 %vm12118_vm1, %v12117_v1  ;;  %10335 = vmatprep.subr.mxu0 %v12191_v6  ;;  %v12373_v1 = vand.u32 4294901760, %v815_v60  ;;  %14881 = vst [vmem:[#allocation29_spill] sm:$0xff] %v12389_v25  ;;  %v1008_v51 = vsub.f32 %v12348_v63, %v12389_v25 }
  0x23   : > { %10375 = vmatprep.subr.mxu1 %v12322_v54 }
  0x24   : > { %10376 = vmatpush3.msra.mxu1 %v12322_v54  ;;  %10328 = vmatmul.mubr.f32.vlgmr.msra.gmra.mxu0 %v12226_v19  ;;  %v12399_v19 = vand.u32 4294901760, %v12359_v3  ;;  %v12411_v38 = vsub.f32 %v815_v60, %v12373_v1  ;;  %v12462_v35 = vand.u32 4294901760, %v1008_v51  ;;  %v12480_v54 = vand.u32 4294901760, %v12450_v23 }
  0x25   : > { %10377 = vmatprep.subr.mxu1 %v12334_v58  ;;  %10336 = vmatpush3.msra.mxu0 %v12191_v6 }
  0x26   : > { %10378 = vmatpush3.msra.mxu1 %v12334_v58  ;;  %14882 = vst [vmem:[#allocation30_spill] sm:$0xff] %v12399_v19  ;;  %10337 = vmatprep.subr.mxu0 %v12201_v9  ;;  %14884 = vst [vmem:[#allocation32_spill] sm:$0xff] %v12411_v38  ;;  %v1015_v60 = vsub.f32 %v12359_v3, %v12399_v19  ;;  %v12447_v4 = vand.u32 4294901760, %v12411_v38  ;;  %v808_v58 = vmul.f32 %v12351_v0, %v804_v61 }
  0x27   : > { %10379 = vmatprep.subr.mxu1 %v12366_v7  ;;  %10338 = vmatpush3.msra.mxu0 %v12201_v9  ;;  %14891 = vst [vmem:[#allocation39_spill] sm:$0xff] %v12462_v35  ;;  %14895 = vst [vmem:[#allocation43_spill] sm:$0xff] %v12480_v54 }
  0x28   : > { %10380 = vmatpush3.msra.mxu1 %v12366_v7  ;;  %10339 = vmatprep.subr.mxu0 %v12213_v12  ;;  %14889 = vst [vmem:[#allocation37_spill] sm:$0xff] %v12447_v4  ;;  %v12468_v7 = vsub.f32 %v812_v32, %v12433_v55  ;;  %v1029_v51 = vsub.f32 %v12411_v38, %v12447_v4 }
  0x29   : > { %10381 = vmatprep.subr.mxu1 %v12384_v18  ;;  %10340 = vmatpush3.msra.mxu0 %v12213_v12  ;;  %v12483_v32 = vsub.f32 %v811_v42, %v12452_v29  ;;  %v12499_v42 = vand.u32 4294901760, %v808_v58 }
  0x2a   : > { %10382 = vmatpush3.msra.mxu1 %v12384_v18  ;;  %10341 = vmatprep.subr.mxu0 %v12219_v16  ;;  %v12458_v18 = vand.u32 4294901760, %v807_v45  ;;  %14893 = vst [vmem:[#allocation41_spill] sm:$0xff] %v12468_v7  ;;  %v12497_v46 = vand.u32 4294901760, %v12468_v7 }
  0x2b   : > { %10383 = vmatprep.subr.mxu1 %v12406_v34  ;;  %10342 = vmatpush3.msra.mxu0 %v12219_v16  ;;  %14896 = vst [vmem:[#allocation44_spill] sm:$0xff] %v12483_v32  ;;  %v12522_v8 = vsub.f32 %v808_v58, %v12499_v42 }
  0x2c   : > { %10384 = vmatpush3.msra.mxu1 %v12406_v34  ;;  %10343 = vmatprep.subr.mxu0 %v12243_v26  ;;  %v12475_v34 = vand.u32 4294901760, %v1015_v60  ;;  %v12488_v61 = vsub.f32 %v807_v45, %v12458_v18  ;;  %v12492_v60 = vand.u32 4294901760, %v1022_v2  ;;  %14898 = vst [vmem:[#allocation46_spill] sm:$0xff] %v12497_v46  ;;  %v12505_v45 = vand.u32 4294901760, %v1029_v51 }
  0x2d   : > { %10385 = vmatprep.subr.mxu1 %v12426_v47  ;;  %10344 = vmatpush3.msra.mxu0 %v12243_v26  ;;  %v1043_v2 = vsub.f32 %v12450_v23, %v12480_v54  ;;  %v1050_v51 = vsub.f32 %v12468_v7, %v12497_v46 }
  0x2e   : > { %10386 = vmatpush3.msra.mxu1 %v12426_v47  ;;  %10345 = vmatprep.subr.mxu0 %v12255_v31  ;;  %14894 = vst [vmem:[#allocation42_spill] sm:$0xff] %v12475_v34  ;;  %14897 = vst [vmem:[#allocation45_spill] sm:$0xff] %v12492_v60  ;;  %v1036_v47 = vsub.f32 %v12431_v52, %v12465_v17  ;;  %v14903_v58 = vand.u32 4294901760, %v12488_v61 }
  0x2f   : > { %10387 = vmatprep.subr.mxu1 %v12444_v10  ;;  %10346 = vmatpush3.msra.mxu0 %v12255_v31  ;;  %14899 = vst [vmem:[#allocation47_spill] sm:$0xff] %v12505_v45  ;;  %v12528_v13 = vand.u32 4294901760, %v1043_v2  ;;  %v14577_v2 = vand.u32 4294901760, %v12522_v8 }
  0x30   : > { %10388 = vmatpush3.msra.mxu1 %v12444_v10  ;;  %10347 = vmatprep.subr.mxu0 %v12273_v37  ;;  %v12510_v10 = vand.u32 4294901760, %v12483_v32 }
  0x31   : > { %10389 = vmatprep.subr.mxu1 %v12462_v35  ;;  %10348 = vmatpush3.msra.mxu0 %v12273_v37  ;;  %14902 = vst [vmem:[#allocation50_spill] sm:$0xff] %v12528_v13 }
  0x32   : > { %10390 = vmatpush3.msra.mxu1 %v12462_v35  ;;  %10349 = vmatprep.subr.mxu0 %v12287_v44  ;;  %14900 = vst [vmem:[#allocation48_spill] sm:$0xff] %v12510_v10  ;;  %v12517_v35 = vand.u32 4294901760, %v1036_v47  ;;  %v1057_v47 = vsub.f32 %v12483_v32, %v12510_v10 }
  0x33   : > { %10391 = vmatprep.subr.mxu1 %v12475_v34  ;;  %10350 = vmatpush3.msra.mxu0 %v12287_v44 }
  0x34   : > { %10392 = vmatpush3.msra.mxu1 %v12475_v34  ;;  %10351 = vmatprep.subr.mxu0 %v12303_v50  ;;  %14901 = vst [vmem:[#allocation49_spill] sm:$0xff] %v12517_v35  ;;  %v911_v34 = vsub.f32 %v12488_v61, %v14903_v58 }
  0x35   : > { %10393 = vmatprep.subr.mxu1 %v12492_v60  ;;  %10352 = vmatpush3.msra.mxu0 %v12303_v50 }
  0x36   : > { %10394 = vmatpush3.msra.mxu1 %v12492_v60  ;;  %10353 = vmatprep.subr.mxu0 %v12311_v53  ;;  %v12539_v60 = vand.u32 4294901760, %v1050_v51  ;;  %v912_v58 = vand.u32 4294901760, %v911_v34  ;;  %v921_v51 = vsub.f32 %v12522_v8, %v14577_v2 }
  0x37   : > { %10395 = vmatprep.subr.mxu1 %v12505_v45  ;;  %10354 = vmatpush3.msra.mxu0 %v12311_v53 }
  0x38   : > { %10396 = vmatpush3.msra.mxu1 %v12505_v45  ;;  %10355 = vmatprep.subr.mxu0 %v12336_v59  ;;  %14904 = vst [vmem:[#allocation51_spill] sm:$0xff] %v12539_v60  ;;  %v12546_v45 = vand.u32 4294901760, %v1057_v47  ;;  %v922_v34 = vand.u32 4294901760, %v921_v51  ;;  %v12571_v47 = vld [vmem:[%s14544_s5 + $0x10] sm:$0xff] }
  0x39   : > { %10397 = vmatprep.subr.mxu1 %v12517_v35  ;;  %10356 = vmatpush3.msra.mxu0 %v12336_v59  ;;  %v809_v51 = vmul.f32 %v12351_v0, %v12571_v47 }
  0x3a   : > { %10398 = vmatpush3.msra.mxu1 %v12517_v35  ;;  %10357 = vmatprep.subr.mxu0 %v12373_v1  ;;  %14905 = vst [vmem:[#allocation52_spill] sm:$0xff] %v12546_v45 }
  0x3b   : > { %10399 = vmatprep.subr.mxu1 %v12528_v13  ;;  %10358 = vmatpush3.msra.mxu0 %v12373_v1  ;;  %v12595_v2 = vand.u32 4294901760, %v809_v51 }
  0x3c   : > { %10400 = vmatpush3.msra.mxu1 %v12528_v13  ;;  %10359 = vmatprep.subr.mxu0 %v12391_v28 }
  0x3d   : > { %10401 = vmatprep.subr.mxu1 %v12539_v60  ;;  %10360 = vmatpush3.msra.mxu0 %v12391_v28 }
  0x3e   : > { %10402 = vmatpush3.msra.mxu1 %v12539_v60  ;;  %10361 = vmatprep.subr.mxu0 %v12413_v40 }
  0x3f   : > { %10403 = vmatprep.subr.mxu1 %v12546_v45  ;;  %10362 = vmatpush3.msra.mxu0 %v12413_v40 }
  0x40   : > { %10367 = vmatprep.mubr.f32.mxu0 %v912_v58  ;;  %10363 = vmatprep.subr.mxu0 %v12433_v55  ;;  %v12579_v58 = vld [vmem:[%s14544_s5 + $0x18] sm:$0xff] }
  0x41   : > { %10404 = vmatpush3.msra.mxu1 %v12546_v45  ;;  %10364 = vmatpush3.msra.mxu0 %v12433_v55 }
  0x42   : > { %10405 = vmatprep.mubr.f32.mxu1 %v12458_v18  ;;  %10365 = vmatprep.subr.mxu0 %v12452_v29 }
  0x43   : > { %10406 = vmatmul.mubr.f32.vlgmr.msra.gmra.mxu1 %v12499_v42  ;;  %10366 = vmatpush3.msra.mxu0 %v12452_v29 }
  0x44   : > { %10449 = vmatprep.subr.mxu1 %v12191_v6  ;;  %10368 = vmatmul.mubr.f32.vlgmr.msra.gmra.mxu0 %v922_v34  ;;  %v810_v34 = vmul.f32 %v12351_v0, %v12579_v58  ;;  %v12608_v0 = vsub.f32 %v809_v51, %v12595_v2 }
  0x45   : > { %10411 = vmatprep.subr.mxu0 %v12211_v11  ;;  %10450 = vmatpush3.msra.mxu1 %v12191_v6 }
  0x46   : > { %10412 = vmatpush3.msra.mxu0 %v12211_v11  ;;  %10451 = vmatprep.subr.mxu1 %v12201_v9  ;;  %v930_v51 = vand.u32 4294901760, %v12608_v0 }
  0x47   : > { %10413 = vmatprep.subr.mxu0 %v12229_v20  ;;  %10452 = vmatpush3.msra.mxu1 %v12201_v9 }
  0x48   : > { %10414 = vmatpush3.msra.mxu0 %v12229_v20  ;;  %10453 = vmatprep.subr.mxu1 %v12213_v12  ;;  %v12601_v20 = vand.u32 4294901760, %v810_v34 }
  0x49   : > { %10415 = vmatprep.subr.mxu0 %v12235_v22  ;;  %10454 = vmatpush3.msra.mxu1 %v12213_v12 }
  0x4a   : > { %10416 = vmatpush3.msra.mxu0 %v12235_v22  ;;  %10455 = vmatprep.subr.mxu1 %v12219_v16 }
  0x4b   : > { %10417 = vmatprep.subr.mxu0 %v12246_v27  ;;  %10456 = vmatpush3.msra.mxu1 %v12219_v16 }
  0x4c   : > { %10418 = vmatpush3.msra.mxu0 %v12246_v27  ;;  %10457 = vmatprep.subr.mxu1 %v12243_v26  ;;  %v12615_v27 = vsub.f32 %v810_v34, %v12601_v20 }
  0x4d   : > { %10419 = vmatprep.subr.mxu0 %v12271_v36  ;;  %10458 = vmatpush3.msra.mxu1 %v12243_v26 }
  0x4e   : > { %10420 = vmatpush3.msra.mxu0 %v12271_v36  ;;  %10459 = vmatprep.subr.mxu1 %v12255_v31  ;;  %v940_v34 = vand.u32 4294901760, %v12615_v27 }
  0x4f   : > { %10421 = vmatprep.subr.mxu0 %v12285_v43  ;;  %10460 = vmatpush3.msra.mxu1 %v12255_v31 }
  0x50   : > { %10422 = vmatpush3.msra.mxu0 %v12285_v43  ;;  %10461 = vmatprep.subr.mxu1 %v12273_v37 }
  0x51   : > { %10423 = vmatprep.subr.mxu0 %v12301_v49  ;;  %10462 = vmatpush3.msra.mxu1 %v12273_v37 }
  0x52   : > { %10424 = vmatpush3.msra.mxu0 %v12301_v49  ;;  %10463 = vmatprep.subr.mxu1 %v12287_v44  ;;  %v931_v49 = vsub.f32 %v12608_v0, %v930_v51 }
  0x53   : > { %10425 = vmatprep.subr.mxu0 %v12330_v57  ;;  %10464 = vmatpush3.msra.mxu1 %v12287_v44 }
  0x54   : > { %10426 = vmatpush3.msra.mxu0 %v12330_v57  ;;  %10465 = vmatprep.subr.mxu1 %v12303_v50  ;;  %v941_v57 = vsub.f32 %v12615_v27, %v940_v34 }
  0x55   : > { %10427 = vmatprep.subr.mxu0 %v12348_v63  ;;  %10466 = vmatpush3.msra.mxu1 %v12303_v50 }
  0x56   : > { %10428 = vmatpush3.msra.mxu0 %v12348_v63  ;;  %10467 = vmatprep.subr.mxu1 %v12311_v53  ;;  %v932_v63 = vand.u32 4294901760, %v931_v49  ;;  %v14906_v49 = vand.u32 4294901760, %v12488_v61 }
  0x57   : > { %10429 = vmatprep.subr.mxu0 %v12359_v3  ;;  %10468 = vmatpush3.msra.mxu1 %v12311_v53 }
  0x58   : > { %10430 = vmatpush3.msra.mxu0 %v12359_v3  ;;  %10469 = vmatprep.subr.mxu1 %v12336_v59  ;;  %v942_v3 = vand.u32 4294901760, %v941_v57  ;;  %v14907_v57 = vand.u32 4294901760, %v12522_v8 }
  0x59   : > { %10431 = vmatprep.subr.mxu0 %v12377_v15  ;;  %10470 = vmatpush3.msra.mxu1 %v12336_v59 }
  0x5a   : > { %10432 = vmatpush3.msra.mxu0 %v12377_v15  ;;  %10471 = vmatprep.subr.mxu1 %v12373_v1 }
  0x5b   : > { %10433 = vmatprep.subr.mxu0 %v12411_v38  ;;  %10472 = vmatpush3.msra.mxu1 %v12373_v1 }
  0x5c   : > { %10434 = vmatpush3.msra.mxu0 %v12411_v38  ;;  %10473 = vmatprep.subr.mxu1 %v12391_v28 }
  0x5d   : > { %10435 = vmatprep.subr.mxu0 %v12431_v52  ;;  %10474 = vmatpush3.msra.mxu1 %v12391_v28 }
  0x5e   : > { %10436 = vmatpush3.msra.mxu0 %v12431_v52  ;;  %10370 = vmatprep.mubr.f32.mxu0 %v932_v63 }
  0x5f   : > { %10408 = vmatprep.mubr.f32.mxu1 %v12595_v2  ;;  %10437 = vmatprep.subr.mxu0 %v12450_v23 }
  0x60   : > { %10475 = vmatprep.subr.mxu1 %v12413_v40  ;;  %10371 = vmatmul.mubr.f32.gmra.mxu0 %v942_v3 }
  0x61   : > { %10409 = vmatmul.mubr.f32.gmra.mxu1 %v12601_v20  ;;  %10438 = vmatpush3.msra.mxu0 %v12450_v23 }
  0x62   : > { %10476 = vmatpush3.msra.mxu1 %v12413_v40  ;;  %10439 = vmatprep.subr.mxu0 %v12468_v7 }
  0x63   : > { %10477 = vmatprep.subr.mxu1 %v12433_v55  ;;  %10440 = vmatpush3.msra.mxu0 %v12468_v7 }
  0x64   : > { %10478 = vmatpush3.msra.mxu1 %v12433_v55  ;;  %10441 = vmatprep.subr.mxu0 %v12483_v32 }
  0x65   : > { %10479 = vmatprep.subr.mxu1 %v12452_v29  ;;  %10442 = vmatpush3.msra.mxu0 %v12483_v32 }
  0x66   : > { %10443 = vmatprep.mubr.f32.mxu0 %v12488_v61  ;;  %10480 = vmatpush3.msra.mxu1 %v12452_v29 }
  0x67   : > { %10444 = vmatmul.mubr.f32.vlgmr.msra.gmra.mxu0 %v12522_v8  ;;  %10481 = vmatprep.mubr.f32.mxu1 %v14906_v49  ;;  %v14908_v8 = vld [vmem:[#allocation2_spill] sm:$0xff] }
  0x68   : > { %10487 = vmatprep.subr.mxu0 %v12232_v21  ;;  %10525 = vmatprep.subr.mxu1 %v12191_v6 }
  0x69   : > { %10482 = vmatmul.mubr.f32.vlgmr.msra.gmra.mxu1 %v14907_v57  ;;  %10488 = vmatpush3.msra.mxu0 %v12232_v21 }
  0x6a   : > { %10526 = vmatpush3.msra.mxu1 %v12191_v6  ;;  %10489 = vmatprep.subr.mxu0 %v12253_v30 }
  0x6b   : > { %10527 = vmatprep.subr.mxu1 %v12201_v9  ;;  %10446 = vmatprep.mubr.f32.mxu0 %v12608_v0 }
  0x6c   : > { %10490 = vmatpush3.msra.mxu0 %v12253_v30  ;;  %10528 = vmatpush3.msra.mxu1 %v12201_v9 }
  0x6d   : > { %10447 = vmatmul.mubr.f32.gmra.mxu0 %v12615_v27  ;;  %10491 = vmatprep.subr.mxu0 %v12262_v33 }
  0x6e   : > { %10529 = vmatprep.subr.mxu1 %v12213_v12  ;;  %10484 = vmatprep.mubr.f32.mxu1 %v930_v51 }
  0x6f   : > { %10492 = vmatpush3.msra.mxu0 %v12262_v33  ;;  %10530 = vmatpush3.msra.mxu1 %v12213_v12 }
  0x70   : > { %10493 = vmatprep.subr.mxu0 %v12277_v39  ;;  %10485 = vmatmul.mubr.f32.gmra.mxu1 %v940_v34 }
  0x71   : > { %10531 = vmatprep.subr.mxu1 %v12219_v16  ;;  %10494 = vmatpush3.msra.mxu0 %v12277_v39 }
  0x72   : > { %10532 = vmatpush3.msra.mxu1 %v12219_v16  ;;  %10495 = vmatprep.subr.mxu0 %v12298_v48 }
  0x73   : > { %10533 = vmatprep.subr.mxu1 %v12243_v26  ;;  %10496 = vmatpush3.msra.mxu0 %v12298_v48 }
  0x74   : > { %10534 = vmatpush3.msra.mxu1 %v12243_v26  ;;  %10497 = vmatprep.subr.mxu0 %v12327_v56 }
  0x75   : > { %10535 = vmatprep.subr.mxu1 %v12255_v31  ;;  %10498 = vmatpush3.msra.mxu0 %v12327_v56 }
  0x76   : > { %10536 = vmatpush3.msra.mxu1 %v12255_v31  ;;  %10499 = vmatprep.subr.mxu0 %v12345_v62 }
  0x77   : > { %10537 = vmatprep.subr.mxu1 %v12273_v37  ;;  %10500 = vmatpush3.msra.mxu0 %v12345_v62 }
  0x78   : > { %10538 = vmatpush3.msra.mxu1 %v12273_v37  ;;  %10501 = vmatprep.subr.mxu0 %v12371_v14 }
  0x79   : > { %10539 = vmatprep.subr.mxu1 %v12287_v44  ;;  %10502 = vmatpush3.msra.mxu0 %v12371_v14 }
  0x7a   : > { %10540 = vmatpush3.msra.mxu1 %v12287_v44  ;;  %10503 = vmatprep.subr.mxu0 %v12389_v25 }
  0x7b   : > { %10541 = vmatprep.subr.mxu1 %v12303_v50  ;;  %10504 = vmatpush3.msra.mxu0 %v12389_v25 }
  0x7c   : > { %10542 = vmatpush3.msra.mxu1 %v12303_v50  ;;  %10505 = vmatprep.subr.mxu0 %v12399_v19 }
  0x7d   : > { %10543 = vmatprep.subr.mxu1 %v12311_v53  ;;  %10506 = vmatpush3.msra.mxu0 %v12399_v19 }
  0x7e   : > { %10544 = vmatpush3.msra.mxu1 %v12311_v53  ;;  %10507 = vmatprep.subr.mxu0 %v12418_v41 }
  0x7f   : > { %10545 = vmatprep.subr.mxu1 %v12336_v59  ;;  %10508 = vmatpush3.msra.mxu0 %v12418_v41 }
  0x80   : > { %10546 = vmatpush3.msra.mxu1 %v12336_v59  ;;  %10509 = vmatprep.subr.mxu0 %v12447_v4 }
  0x81   : > { %10547 = vmatprep.subr.mxu1 %v12373_v1  ;;  %10510 = vmatpush3.msra.mxu0 %v12447_v4 }
  0x82   : > { %10548 = vmatpush3.msra.mxu1 %v12373_v1  ;;  %10511 = vmatprep.subr.mxu0 %v12465_v17 }
  0x83   : > { %10549 = vmatprep.subr.mxu1 %v12391_v28  ;;  %10512 = vmatpush3.msra.mxu0 %v12465_v17 }
  0x84   : > { %10550 = vmatpush3.msra.mxu1 %v12391_v28  ;;  %10513 = vmatprep.subr.mxu0 %v12480_v54 }
  0x85   : > { %10551 = vmatprep.subr.mxu1 %v12413_v40  ;;  %10514 = vmatpush3.msra.mxu0 %v12480_v54 }
  0x86   : > { %10552 = vmatpush3.msra.mxu1 %v12413_v40  ;;  %10515 = vmatprep.subr.mxu0 %v12497_v46 }
  0x87   : > { %10553 = vmatprep.subr.mxu1 %v12433_v55  ;;  %10516 = vmatpush3.msra.mxu0 %v12497_v46 }
  0x88   : > { %10554 = vmatpush3.msra.mxu1 %v12433_v55  ;;  %10517 = vmatprep.subr.mxu0 %v12510_v10 }
  0x89   : > { %10555 = vmatprep.subr.mxu1 %v12452_v29  ;;  %10518 = vmatpush3.msra.mxu0 %v12510_v10 }
  0x8a   : > { %10519 = vmatprep.mubr.f32.mxu0 %v12458_v18  ;;  %10556 = vmatpush3.msra.mxu1 %v12452_v29 }
  0x8b   : > { %10557 = vmatprep.mubr.f32.mxu1 %v12458_v18  ;;  %10520 = vmatmul.mubr.f32.vlgmr.msra.gmra.mxu0 %v12499_v42 }
  0x8c   : > { %10558 = vmatmul.mubr.f32.vlgmr.msra.gmra.mxu1 %v12499_v42  ;;  %10522 = vmatprep.mubr.f32.mxu0 %v12595_v2 }
  0x8d   : > { %10560 = vmatprep.mubr.f32.mxu1 %v12595_v2  ;;  %10571 = vmatprep.subr.mxu1 %v12240_v24 }
  0x8e   : > { %10563 = vmatprep.subr.mxu0 %v12183_v5  ;;  %10572 = vmatpush3.msra.mxu1 %v12240_v24 }
  0x8f   : > { %10564 = vmatpush3.msra.mxu0 %v12183_v5  ;;  %10587 = vmatprep.subr.mxu1 %v12183_v5 }
  0x90   : > { %10523 = vmatmul.mubr.f32.gmra.mxu0 %v12601_v20  ;;  %10561 = vmatmul.mubr.f32.gmra.mxu1 %v12601_v20 }
  0x91   : > { %10579 = vmatprep.subr.mxu0 %v14908_v8 }
  0xd8   : > { %v472_v27 = vpop.f32.mrf.mxu1 }
  0xda   : > { %v10314_v63 = vpop.f32.mrf.mxu1 }
  0xdc   : > { %v620_v3 = vpop.f32.mrf.mxu1  ;;  %v396_v18 = vpop.f32.mrf.mxu0 }
  0xdd   : > { %v473_v61 = vadd.f32 %v472_v27, %v396_v18 }
  0xde   : > { %v10324_v42 = vpop.f32.mrf.mxu1  ;;  %v10309_v2 = vpop.f32.mrf.mxu0 }
  0xe0   : > { %v766_v0 = vpop.f32.mrf.mxu1  ;;  %v546_v51 = vpop.f32.mrf.mxu0 }
  0xe1   : > { %v547_v34 = vadd.f32 %v546_v51, %v473_v61 }
  0xe2   : > { %v10334_v49 = vpop.f32.mrf.mxu1  ;;  %v10319_v57 = vpop.f32.mrf.mxu0 }
  0xe3   : > { %v621_v10 = vadd.f32 %v620_v3, %v547_v34 }
  0xe4   : > { %v694_v46 = vpop.f32.mrf.mxu0 }
  0xe5   : > { %v695_v24 = vadd.f32 %v694_v46, %v621_v10 }
  0xe6   : > { %v10329_v20 = vpop.f32.mrf.mxu0 }
  0xe7   : > { %v12747_v54 = vadd.f32 %v766_v0, %v695_v24 }
 0x103   : > { %v10407_v4 = vpop.f32.mrf.mxu1 }
 0x104   : > { %v10369_v17 = vpop.f32.mrf.mxu0 }
 0x105   : > { %v1095_v63 = vpop.f32.mrf.mxu1  ;;  %v1102_v51 = vadd.f32 %v10407_v4, %v10369_v17 }
 0x106   : > { %v914_v41 = vpop.f32.mrf.mxu0 }
 0x107   : > { %v1096_v34 = vadd.f32 %v1095_v63, %v914_v41 }
 0x120   : > { %v10372_v19 = vpop.f32.mrf.mxu0 }
 0x121   : > { %v10410_v25 = vpop.f32.mrf.mxu1 }
 0x122   : > { %v934_v27 = vpop.f32.mrf.mxu0  ;;  %v1114_v10 = vadd.f32 %v10410_v25, %v10372_v19 }
 0x123   : > { %v1107_v18 = vpop.f32.mrf.mxu1 }
 0x124   : > { %v1108_v20 = vadd.f32 %v1107_v18, %v934_v27 }
 0x127   : > { %v10445_v42 = vpop.f32.mrf.mxu0 }
 0x128   : > { %v1225_v46 = vadd.f32 %v10445_v42, %v1102_v51 }
 0x129   : > { %v10483_v2 = vpop.f32.mrf.mxu1  ;;  %v1217_v14 = vpop.f32.mrf.mxu0 }
 0x12a   : > { %v1218_v24 = vadd.f32 %v1217_v14, %v1096_v34  ;;  %v1336_v62 = vadd.f32 %v10483_v2, %v1225_v46 }
 0x12b   : > { %v1327_v61 = vpop.f32.mrf.mxu1 }
 0x12c   : > { %v1328_v33 = vadd.f32 %v1327_v61, %v1218_v24 }
 0x12d   : > { %v10448_v49 = vpop.f32.mrf.mxu0 }
 0x12e   : > { %v1239_v56 = vadd.f32 %v10448_v49, %v1114_v10 }
 0x12f   : > { %v1231_v0 = vpop.f32.mrf.mxu0 }
 0x130   : > { %v10486_v3 = vpop.f32.mrf.mxu1  ;;  %v1232_v30 = vadd.f32 %v1231_v0, %v1108_v20 }
 0x131   : > { %v1352_v23 = vadd.f32 %v10486_v3, %v1239_v56 }
 0x132   : > { %v1343_v57 = vpop.f32.mrf.mxu1 }
 0x133   : > { %v1344_v63 = vadd.f32 %v1343_v57, %v1232_v30 }
 0x14b   : > { %v10521_v48 = vpop.f32.mrf.mxu0 }
 0x14c   : > { %v10559_v39 = vpop.f32.mrf.mxu1  ;;  %v1477_v21 = vadd.f32 %v10521_v48, %v1336_v62 }
 0x14d   : > { %v1470_v32 = vpop.f32.mrf.mxu0 }
 0x14e   : > { %v1575_v7 = vpop.f32.mrf.mxu1  ;;  %v1582_v4 = vadd.f32 %v10559_v39, %v1477_v21  ;;  %v1471_v17 = vadd.f32 %v1470_v32, %v1328_v33 }
 0x150   : > { %v10524_v52 = vpop.f32.mrf.mxu0  ;;  %v10562_v41 = vpop.f32.mrf.mxu1  ;;  %v1601_v14 = vsel %vm316_vm2, %v1582_v4, 0  ;;  %v1576_v25 = vadd.f32 %v1575_v7, %v1471_v17 }
 0x151   : > { %v1489_v19 = vadd.f32 %v10524_v52, %v1352_v23  ;;  %v1685_v27 = vand.u32 4294901760, %v1601_v14 }
 0x152   : > { %v1482_v18 = vpop.f32.mrf.mxu0  ;;  %v1598_v42 = vsel %vm316_vm2, %v1576_v25, 0  ;;  %v1587_v62 = vpop.f32.mrf.mxu1  ;;  %v14912_v25 = vld [vmem:[#allocation20_spill] sm:$0xff] }
 0x153   : > { %v1594_v2 = vadd.f32 %v10562_v41, %v1489_v19  ;;  %v1483_v61 = vadd.f32 %v1482_v18, %v1344_v63  ;;  %v1686_v51 = vsub.f32 %v1601_v14, %v1685_v27  ;;  %v1675_v48 = vand.u32 4294901760, %v1598_v42  ;;  %v14909_v41 = vld [vmem:[#allocation3_spill] sm:$0xff]  ;;  %v14910_v63 = vld [vmem:[#allocation14_spill] sm:$0xff]  ;;  %v14911_v14 = vld [vmem:[#allocation17_spill] sm:$0xff] }
 0x154   : > { %v14913_v19 = vld [vmem:[#allocation25_spill] sm:$0xff]  ;;  %v14914_v18 = vld [vmem:[#allocation28_spill] sm:$0xff] }
 0x155   : > { %v1607_v56 = vsel %vm316_vm2, %v1594_v2, 0  ;;  %v1588_v21 = vadd.f32 %v1587_v62, %v1483_v61  ;;  %v1687_v33 = vand.u32 4294901760, %v1686_v51  ;;  %v1676_v39 = vsub.f32 %v1598_v42, %v1675_v48  ;;  %10573 = vmatprep.mubr.f32.mxu1 %v1675_v48  ;;  %v14915_v42 = vld [vmem:[#allocation31_spill] sm:$0xff]  ;;  %v14917_v2 = vld [vmem:[#allocation36_spill] sm:$0xff] }
 0x156   : > { %v1705_v32 = vand.u32 4294901760, %v1607_v56  ;;  %10574 = vmatmul.mubr.f32.vlgmr.msra.gmra.mxu1 %v1685_v27  ;;  %v14918_v61 = vld [vmem:[#allocation39_spill] sm:$0xff] }
 0x157   : > { %v1604_v30 = vsel %vm316_vm2, %v1588_v21, 0  ;;  %v1677_v23 = vand.u32 4294901760, %v1676_v39  ;;  %10588 = vmatpush3.msra.mxu1 %v12183_v5  ;;  %v1688_v49 = vsub.f32 %v1686_v51, %v1687_v33  ;;  %v14921_v62 = vld [vmem:[#allocation47_spill] sm:$0xff] }
 0x158   : > { %v1706_v7 = vsub.f32 %v1607_v56, %v1705_v32  ;;  %v1695_v52 = vand.u32 4294901760, %v1604_v30  ;;  %10603 = vmatprep.subr.mxu1 %v12183_v5 }
 0x159   : > { %v1678_v34 = vsub.f32 %v1676_v39, %v1677_v23  ;;  %v1689_v0 = vand.u32 4294901760, %v1688_v49 }
 0x15a   : > { %v1696_v3 = vsub.f32 %v1604_v30, %v1695_v52  ;;  %10576 = vmatprep.mubr.f32.mxu1 %v1695_v52  ;;  %v1707_v46 = vand.u32 4294901760, %v1706_v7 }
 0x15b   : > { %10577 = vmatmul.mubr.f32.gmra.mxu1 %v1705_v32  ;;  %v1679_v10 = vand.u32 4294901760, %v1678_v34 }
 0x15c   : > { %10589 = vmatprep.mubr.f32.mxu1 %v1677_v23  ;;  %v1697_v24 = vand.u32 4294901760, %v1696_v3  ;;  %v1708_v57 = vsub.f32 %v1706_v7, %v1707_v46 }
 0x15d   : > { %10565 = vmatprep.mubr.f32.mxu0 %v1679_v10 }
 0x15e   : > { %v1698_v20 = vsub.f32 %v1696_v3, %v1697_v24  ;;  %10566 = vmatmul.mubr.f32.vlgmr.msra.gmra.mxu0 %v1689_v0  ;;  %v1709_v17 = vand.u32 4294901760, %v1708_v57  ;;  %v9376_v0 = vld [vmem:[%s14541_s2 + $0x8] sm:$0xff] }
 0x15f   : > { %10590 = vmatmul.mubr.f32.vlgmr.msra.gmra.mxu1 %v1687_v33  ;;  %10580 = vmatpush3.msra.mxu0 %v14908_v8 }
 0x160   : > { %10592 = vmatprep.mubr.f32.mxu1 %v1697_v24  ;;  %v1699_v4 = vand.u32 4294901760, %v1698_v20  ;;  %10595 = vmatprep.subr.mxu0 %v14909_v41 }
 0x161   : > { %10604 = vmatpush3.msra.mxu1 %v12183_v5 }
 0x162   : > { %10568 = vmatprep.mubr.f32.mxu0 %v1699_v4  ;;  %10649 = vmatprep.subr.mxu1 %v14910_v63 }
 0x163   : > { %10569 = vmatmul.mubr.f32.gmra.mxu0 %v1709_v17  ;;  %10593 = vmatmul.mubr.f32.gmra.mxu1 %v1707_v46 }
 0x164   : > { %10581 = vmatprep.mubr.f32.mxu0 %v1676_v39  ;;  %10605 = vmatprep.mubr.f32.mxu1 %v1675_v48 }
 0x167   : > { %10582 = vmatmul.mubr.f32.vlgmr.msra.gmra.mxu0 %v1686_v51  ;;  %10606 = vmatmul.mubr.f32.vlgmr.msra.gmra.mxu1 %v1685_v27  ;;  %v14919_v51 = vld [vmem:[#allocation42_spill] sm:$0xff] }
 0x168   : > { %10596 = vmatpush3.msra.mxu0 %v14909_v41  ;;  %10584 = vmatprep.mubr.f32.mxu0 %v1696_v3  ;;  %v770_v3 = vld [vmem:[%s14541_s2] sm:$0xff] }
 0x169   : > { %10608 = vmatprep.mubr.f32.mxu1 %v1695_v52  ;;  %10650 = vmatpush3.msra.mxu1 %v14910_v63  ;;  %v771_v46 = vsub.f32 %v12747_v54, %v770_v3 }
 0x16a   : > { %10651 = vmatprep.subr.mxu1 %v14911_v14  ;;  %10611 = vmatprep.subr.mxu0 %v12191_v6 }
 0x16b   : > { %10585 = vmatmul.mubr.f32.gmra.mxu0 %v1706_v7  ;;  %10609 = vmatmul.mubr.f32.gmra.mxu1 %v1705_v32 }
 0x16c   : > { %10597 = vmatprep.mubr.f32.mxu0 %v1675_v48  ;;  %10652 = vmatpush3.msra.mxu1 %v14911_v14  ;;  %v14920_v48 = vld [vmem:[#allocation45_spill] sm:$0xff] }
 0x16d   : > { %10653 = vmatprep.subr.mxu1 %v14912_v25 }
 0x16e   : > { %10654 = vmatpush3.msra.mxu1 %v14912_v25 }
 0x16f   : > { %10598 = vmatmul.mubr.f32.vlgmr.msra.gmra.mxu0 %v1685_v27  ;;  %10655 = vmatprep.subr.mxu1 %v14913_v19  ;;  %v14916_v27 = vld [vmem:[#allocation34_spill] sm:$0xff] }
 0x170   : > { %10600 = vmatprep.mubr.f32.mxu0 %v1695_v52  ;;  %10656 = vmatpush3.msra.mxu1 %v14913_v19 }
 0x171   : > { %10657 = vmatprep.subr.mxu1 %v14914_v18  ;;  %10612 = vmatpush3.msra.mxu0 %v12191_v6 }
 0x172   : > { %10658 = vmatpush3.msra.mxu1 %v14914_v18  ;;  %10613 = vmatprep.subr.mxu0 %v12201_v9 }
 0x173   : > { %10601 = vmatmul.mubr.f32.gmra.mxu0 %v1705_v32  ;;  %10659 = vmatprep.subr.mxu1 %v14915_v42 }
 0x174   : > { %10614 = vmatpush3.msra.mxu0 %v12201_v9  ;;  %10660 = vmatpush3.msra.mxu1 %v14915_v42 }
 0x175   : > { %10615 = vmatprep.subr.mxu0 %v12213_v12  ;;  %10661 = vmatprep.subr.mxu1 %v14916_v27 }
 0x176   : > { %10616 = vmatpush3.msra.mxu0 %v12213_v12  ;;  %10662 = vmatpush3.msra.mxu1 %v14916_v27 }
 0x177   : > { %10617 = vmatprep.subr.mxu0 %v12219_v16  ;;  %10663 = vmatprep.subr.mxu1 %v14917_v2 }
 0x178   : > { %10618 = vmatpush3.msra.mxu0 %v12219_v16  ;;  %10664 = vmatpush3.msra.mxu1 %v14917_v2 }
 0x179   : > { %10619 = vmatprep.subr.mxu0 %v12243_v26  ;;  %10665 = vmatprep.subr.mxu1 %v14918_v61 }
 0x17a   : > { %10620 = vmatpush3.msra.mxu0 %v12243_v26  ;;  %10666 = vmatpush3.msra.mxu1 %v14918_v61 }
 0x17b   : > { %10621 = vmatprep.subr.mxu0 %v12255_v31  ;;  %10667 = vmatprep.subr.mxu1 %v14919_v51 }
 0x17c   : > { %10622 = vmatpush3.msra.mxu0 %v12255_v31  ;;  %10668 = vmatpush3.msra.mxu1 %v14919_v51 }
 0x17d   : > { %10623 = vmatprep.subr.mxu0 %v12273_v37  ;;  %10669 = vmatprep.subr.mxu1 %v14920_v48 }
 0x17e   : > { %10624 = vmatpush3.msra.mxu0 %v12273_v37  ;;  %10670 = vmatpush3.msra.mxu1 %v14920_v48 }
 0x17f   : > { %10625 = vmatprep.subr.mxu0 %v12287_v44  ;;  %10671 = vmatprep.subr.mxu1 %v14921_v62 }
 0x180   : > { %10626 = vmatpush3.msra.mxu0 %v12287_v44  ;;  %10672 = vmatpush3.msra.mxu1 %v14921_v62 }
 0x181   : > { %10627 = vmatprep.subr.mxu0 %v12303_v50  ;;  %10673 = vmatprep.subr.mxu1 %v12517_v35 }
 0x182   : > { %10628 = vmatpush3.msra.mxu0 %v12303_v50  ;;  %10674 = vmatpush3.msra.mxu1 %v12517_v35 }
 0x183   : > { %10629 = vmatprep.subr.mxu0 %v12311_v53  ;;  %10675 = vmatprep.subr.mxu1 %v12528_v13 }
 0x184   : > { %10630 = vmatpush3.msra.mxu0 %v12311_v53  ;;  %10676 = vmatpush3.msra.mxu1 %v12528_v13 }
 0x185   : > { %10631 = vmatprep.subr.mxu0 %v12336_v59  ;;  %10677 = vmatprep.subr.mxu1 %v12539_v60 }
 0x186   : > { %10632 = vmatpush3.msra.mxu0 %v12336_v59  ;;  %10678 = vmatpush3.msra.mxu1 %v12539_v60 }
 0x187   : > { %10633 = vmatprep.subr.mxu0 %v12373_v1  ;;  %10679 = vmatprep.subr.mxu1 %v12546_v45 }
 0x188   : > { %10634 = vmatpush3.msra.mxu0 %v12373_v1  ;;  %10680 = vmatpush3.msra.mxu1 %v12546_v45  ;;  %v774_v45 = vmul.f32 %v9376_v0, %v771_v46  ;;  %v12875_v0 = vld [vmem:[%s14542_s3 + $0x30] sm:$0xff] }
 0x189   : > { %10635 = vmatprep.subr.mxu0 %v12391_v28  ;;  %10725 = vmatprep.subr.mxu1 %v12191_v6  ;;  %14924 = vst [vmem:[#allocation14_spill] sm:$0xff] %v12875_v0 }
 0x18a   : > { %10636 = vmatpush3.msra.mxu0 %v12391_v28  ;;  %12001 = vtanh.f32 %v774_v45 }
 0x18b   : > { %10637 = vmatprep.subr.mxu0 %v12413_v40 }
 0x18c   : > { %10638 = vmatpush3.msra.mxu0 %v12413_v40 }
 0x18d   : > { %10639 = vmatprep.subr.mxu0 %v12433_v55 }
 0x18e   : > { %10640 = vmatpush3.msra.mxu0 %v12433_v55 }
 0x18f   : > { %10641 = vmatprep.subr.mxu0 %v12452_v29 }
 0x190   : > { %10642 = vmatpush3.msra.mxu0 %v12452_v29 }
 0x191   : > { %10687 = vmatprep.subr.mxu0 %v12211_v11 }
 0x216   : > { %v10575_v56 = vpop.f32.mrf.mxu1 }
 0x218   : > { %v1787_v21 = vpop.f32.mrf.mxu1 }
 0x21b   : > { %v10578_v33 = vpop.f32.mrf.mxu1 }
 0x21d   : > { %v1799_v39 = vpop.f32.mrf.mxu1 }
 0x21e   : > { %v10567_v32 = vpop.f32.mrf.mxu0 }
 0x21f   : > { %v10591_v30 = vpop.f32.mrf.mxu1  ;;  %v1794_v57 = vadd.f32 %v10575_v56, %v10567_v32  ;;  %v12835_v56 = vld [vmem:[%s14542_s3 + $0x8] sm:$0xff] }
 0x220   : > { %v1681_v7 = vpop.f32.mrf.mxu0 }
 0x221   : > { %v1974_v52 = vpop.f32.mrf.mxu1  ;;  %v1788_v4 = vadd.f32 %v1787_v21, %v1681_v7 }
 0x223   : > { %v10570_v23 = vpop.f32.mrf.mxu0  ;;  %v10594_v49 = vpop.f32.mrf.mxu1 }
 0x224   : > { %v1806_v35 = vadd.f32 %v10578_v33, %v10570_v23 }
 0x225   : > { %v1701_v34 = vpop.f32.mrf.mxu0  ;;  %v1990_v10 = vpop.f32.mrf.mxu1 }
 0x226   : > { %v1800_v51 = vadd.f32 %v1799_v39, %v1701_v34  ;;  %v12868_v34 = vld [vmem:[%s14542_s3 + $0x10] sm:$0xff] }
 0x227   : > { %v10583_v24 = vpop.f32.mrf.mxu0  ;;  %v10607_v60 = vpop.f32.mrf.mxu1  ;;  %14923 = vst [vmem:[#allocation3_spill] sm:$0xff] %v12868_v34 }
 0x228   : > { %v1887_v17 = vadd.f32 %v10583_v24, %v1794_v57 }
 0x229   : > { %v1879_v20 = vpop.f32.mrf.mxu0  ;;  %v2162_v54 = vpop.f32.mrf.mxu1 }
 0x22a   : > { %v1880_v62 = vadd.f32 %v1879_v20, %v1788_v4  ;;  %v1983_v2 = vadd.f32 %v10591_v30, %v1887_v17  ;;  %v12002_v4 = vpop.eup %12001  ;;  %v9378_v17 = vld [vmem:[%s14541_s2 + $0x18] sm:$0xff] }
 0x22b   : > { %v10586_v13 = vpop.f32.mrf.mxu0  ;;  %v10610_v23 = vpop.f32.mrf.mxu1 }
 0x22c   : > { %v1901_v61 = vadd.f32 %v10586_v13, %v1806_v35  ;;  %v1975_v18 = vadd.f32 %v1974_v52, %v1880_v62  ;;  %v12840_v13 = vld [vmem:[%s14542_s3 + $0x28] sm:$0xff]  ;;  %v12845_v35 = vld [vmem:[%s14542_s3] sm:$0xff] }
 0x22d   : > { %v1893_v48 = vpop.f32.mrf.mxu0 }
 0x22e   : > { %v1894_v27 = vadd.f32 %v1893_v48, %v1800_v51  ;;  %v1999_v33 = vadd.f32 %v10594_v49, %v1901_v61  ;;  %v2174_v49 = vpop.f32.mrf.mxu1 }
 0x22f   : > { %v10599_v3 = vpop.f32.mrf.mxu0 }
 0x230   : > { %v2079_v42 = vadd.f32 %v10599_v3, %v1983_v2  ;;  %v1991_v62 = vadd.f32 %v1990_v10, %v1894_v27  ;;  %v12863_v27 = vld [vmem:[%s14542_s3 + $0x38] sm:$0xff]  ;;  %v788_v3 = vmul.f32 %v12002_v4, %v9378_v17 }
 0x231   : > { %v2072_v21 = vpop.f32.mrf.mxu0  ;;  %14922 = vst [vmem:[#allocation2_spill] sm:$0xff] %v12863_v27 }
 0x232   : > { %v2169_v32 = vadd.f32 %v10607_v60, %v2079_v42  ;;  %v2073_v7 = vadd.f32 %v2072_v21, %v1975_v18  ;;  %v12851_v60 = vld [vmem:[%s14542_s3 + $0x20] sm:$0xff]  ;;  %v12856_v18 = vld [vmem:[%s14542_s3 + $0x18] sm:$0xff]  ;;  %v789_v21 = vrot.slane %v788_v3, 4 }
 0x233   : > { %v10602_v45 = vpop.f32.mrf.mxu0 }
 0x234   : > { %v2189_v2 = vsub.f32 %v2169_v32, %v12835_v56  ;;  %v2163_v51 = vadd.f32 %v2162_v54, %v2073_v7  ;;  %v2091_v48 = vadd.f32 %v10602_v45, %v1999_v33  ;;  %v9377_v32 = vld [vmem:[%s14541_s2 + $0x10] sm:$0xff]  ;;  %v12889_v7 = vld [vmem:[%s14542_s3 + $0x40] sm:$0xff] }
 0x235   : > { %v2084_v42 = vpop.f32.mrf.mxu0  ;;  %14925 = vst [vmem:[#allocation17_spill] sm:$0xff] %v12889_v7  ;;  %v12894_v33 = vld [vmem:[%s14542_s3 + $0x60] sm:$0xff] }
 0x236   : > { %v2198_v61 = vmul.f32 %v12840_v13, %v2189_v2  ;;  %v2188_v39 = vsub.f32 %v2163_v51, %v12845_v35  ;;  %v2181_v30 = vadd.f32 %v10610_v23, %v2091_v48  ;;  %v2085_v52 = vadd.f32 %v2084_v42, %v1991_v62  ;;  %14926 = vst [vmem:[#allocation20_spill] sm:$0xff] %v12894_v33  ;;  %v12899_v48 = vld [vmem:[%s14542_s3 + $0x48] sm:$0xff] }
 0x237   : > { %v778_v2 = vmul.f32 %v12002_v4, %v9377_v32  ;;  %v790_v51 = vadd.f32 %v789_v21, %v788_v3  ;;  %14927 = vst [vmem:[#allocation25_spill] sm:$0xff] %v12899_v48  ;;  %v12904_v62 = vld [vmem:[%s14542_s3 + $0x68] sm:$0xff]  ;;  %v12930_v21 = vld [vmem:[%s14542_s3 + $0x58] sm:$0xff] }
 0x238   : > { %v2197_v46 = vmul.f32 %v12851_v60, %v2188_v39  ;;  %v2191_v10 = vsub.f32 %v2181_v30, %v12856_v18  ;;  %v2175_v24 = vadd.f32 %v2174_v49, %v2085_v52  ;;  %12003 = vtanh.f32 %v2198_v61  ;;  %14928 = vst [vmem:[#allocation53_spill] sm:$0xff] %v12904_v62  ;;  %v12911_v39 = vld [vmem:[%s14542_s3 + $0x50] sm:$0xff]  ;;  %14931 = vst [vmem:[#allocation56_spill] sm:$0xff] %v12930_v21 }
 0x239   : > { %14929 = vst [vmem:[#allocation54_spill] sm:$0xff] %v12911_v39  ;;  %v12916_v30 = vld [vmem:[%s14542_s3 + $0x70] sm:$0xff] }
 0x23a   : > { %12005 = vtanh.f32 %v2197_v46  ;;  %v2200_v57 = vmul.f32 %v12863_v27, %v2191_v10  ;;  %v2190_v20 = vsub.f32 %v2175_v24, %v12868_v34  ;;  %14930 = vst [vmem:[#allocation55_spill] sm:$0xff] %v12916_v30  ;;  %v779_v24 = vrot.slane %v778_v2, 4 }
 0x23c   : > { %v2199_v54 = vmul.f32 %v12875_v0, %v2190_v20  ;;  %12007 = vtanh.f32 %v2200_v57  ;;  %v791_v57 = vrot.slane %v790_v51, 2  ;;  %v12923_v20 = vld [vmem:[%s14542_s3 + $0x78] sm:$0xff] }
 0x23e   : > { %12009 = vtanh.f32 %v2199_v54 }
 0x245   : > { %v12004_v23 = vpop.eup %12003 }
 0x246   : > { %v2211_v49 = vmul.f32 %v12004_v23, %v12899_v48  ;;  %v2229_v46 = vmul.f32 %v12004_v23, %v12904_v62  ;;  %v780_v62 = vadd.f32 %v779_v24, %v778_v2  ;;  %v792_v48 = vadd.f32 %v791_v57, %v790_v51 }
 0x247   : > { %v12006_v45 = vpop.eup %12005 }
 0x248   : > { %v2210_v42 = vmul.f32 %v12006_v45, %v12889_v7  ;;  %v2228_v61 = vmul.f32 %v12006_v45, %v12894_v33 }
 0x249   : > { %v12008_v52 = vpop.eup %12007 }
 0x24a   : > { %v2214_v4 = vadd.f32 %v2211_v49, %v2210_v42  ;;  %v2232_v17 = vadd.f32 %v2229_v46, %v2228_v61  ;;  %v2231_v32 = vmul.f32 %v12008_v52, %v12923_v20  ;;  %v2213_v33 = vmul.f32 %v12008_v52, %v12930_v21 }
 0x24b   : > { %v12010_v10 = vpop.eup %12009  ;;  %v781_v49 = vrot.slane %v780_v62, 2  ;;  %v793_v46 = vrot.slane %v792_v48, 1 }
 0x24c   : > { %v2212_v54 = vmul.f32 %v12010_v10, %v12911_v39  ;;  %v2230_v3 = vmul.f32 %v12010_v10, %v12916_v30 }
 0x24d   : > { %v782_v0 = vadd.f32 %v781_v49, %v780_v62  ;;  %v794_v34 = vadd.f32 %v793_v46, %v792_v48  ;;  %v12956_v49 = vld [vmem:[%s14544_s5] sm:$0xff] }
 0x24e   : > { %v2215_v23 = vadd.f32 %v2214_v4, %v2212_v54  ;;  %v2233_v45 = vadd.f32 %v2232_v17, %v2230_v3  ;;  %v12937_v4 = vld [vmem:[%s14543_s4] sm:$0x7]  ;;  %14937 = vst [vmem:[#allocation61_spill] sm:$0xff] %v12956_v49 }
 0x24f   : > { %14932 = vst [vmem:[#allocation57_spill] sm:$0xff] %v12937_v4  ;;  %v783_v52 = vrot.slane %v782_v0, 1  ;;  %v12063_v54 = vld [vmem:[%s12317_s17] sm:$0x1] }
 0x250   : > { %v2234_v7 = vadd.f32 %v2233_v45, %v2231_v32  ;;  %v2216_v42 = vadd.f32 %v2215_v23, %v2213_v33  ;;  %v12940_v33 = vadd.f32 %v794_v34, %v12937_v4  ;;  %v2241_v3 = vmul.f32 %v12063_v54, %v12937_v4 }
 0x251   : > { %v784_v17 = vadd.f32 %v783_v52, %v782_v0 }
 0x252   : > { %v2235_v61 = vrot.slane %v2234_v7, 4  ;;  %v2217_v10 = vrot.slane %v2216_v42, 4  ;;  %14933 = vst [vmem:[#allocation58_spill] sm:$0xff] %v12940_v33 }
 0x254   : > { %v2236_v39 = vadd.f32 %v2235_v61, %v2234_v7  ;;  %v2218_v51 = vadd.f32 %v2217_v10, %v2216_v42  ;;  %v14936_v61 = vld [vmem:[#allocation23_spill] sm:$0xff] }
 0x255   : > { %v12962_v10 = vld [vmem:[%s14544_s5 + $0x8] sm:$0xff] }
 0x256   : > { %v2237_v30 = vrot.slane %v2236_v39, 2  ;;  %v2219_v57 = vrot.slane %v2218_v51, 2  ;;  %14938 = vst [vmem:[#allocation62_spill] sm:$0xff] %v12962_v10 }
 0x258   : > { %v2238_v27 = vadd.f32 %v2237_v30, %v2236_v39  ;;  %v2220_v48 = vadd.f32 %v2219_v57, %v2218_v51  ;;  %v785_v39 = vadd.f32 %v784_v17, %v12937_v4 }
 0x25a   : > { %v2239_v2 = vrot.slane %v2238_v27, 1  ;;  %v2221_v30 = vrot.slane %v2220_v48, 1  ;;  %v12946_v32 = vrot.slane %v785_v39, 1 }
 0x25c   : > { %v2240_v24 = vadd.f32 %v2239_v2, %v2238_v27  ;;  %14934 = vst [vmem:[#allocation59_spill] sm:$0xff] %v12946_v32  ;;  %v2222_v23 = vadd.f32 %v2221_v30, %v2220_v48  ;;  %v2245_v34 = vadd.f32 %v12946_v32, %v2241_v3 }
 0x25e   : > { %v2247_v7 = vadd.f32 %v2240_v24, %v12940_v33  ;;  %v2246_v45 = vadd.f32 %v2245_v34, %v2222_v23 }
 0x260   : > { %v2249_v62 = vrot.slane %v2247_v7, 2 }
 0x262   : > { %12011 = vrcp.f32 %v2249_v62 }
 0x26f   : > { %v12012_v27 = vpop.eup %12011 }
 0x270   : > { %v12949_v42 = vmul.f32 %v12012_v27, %v2246_v45 }
 0x272   : > { %14935 = vst [vmem:[#allocation60_spill] sm:$0xff] %v12949_v42  ;;  %v2256_v0 = vrot.slane %v12949_v42, %v14936_v61 }
 0x274   : > { %v2257_v46 = vmul.f32 %v12956_v49, %v2256_v0  ;;  %v2258_v2 = vmul.f32 %v12962_v10, %v2256_v0  ;;  %v2259_v51 = vmul.f32 %v2256_v0, %v12571_v47  ;;  %v2260_v52 = vmul.f32 %v2256_v0, %v12579_v58 }
 0x276   : > { %v12967_v24 = vand.u32 4294901760, %v2257_v46  ;;  %v12969_v7 = vand.u32 4294901760, %v2258_v2  ;;  %v12971_v57 = vand.u32 4294901760, %v2259_v51  ;;  %v12973_v17 = vand.u32 4294901760, %v2260_v52 }
 0x278   : > { %10681 = vmatprep.mubr.f32.mxu1 %v12967_v24  ;;  %v12977_v62 = vsub.f32 %v2258_v2, %v12969_v7  ;;  %v2343_v48 = vsub.f32 %v2257_v46, %v12967_v24  ;;  %v12981_v39 = vsub.f32 %v2259_v51, %v12971_v57  ;;  %v12984_v47 = vsub.f32 %v2260_v52, %v12973_v17  ;;  %v14939_v51 = vld [vmem:[#allocation4_spill] sm:$0xff] }
 0x279   : > { %10682 = vmatmul.mubr.f32.vlgmr.msra.gmra.mxu1 %v12969_v7 }
 0x27a   : > { %10726 = vmatpush3.msra.mxu1 %v12191_v6  ;;  %10684 = vmatprep.mubr.f32.mxu1 %v12971_v57  ;;  %v2344_v58 = vand.u32 4294901760, %v2343_v48  ;;  %v2354_v30 = vand.u32 4294901760, %v12977_v62  ;;  %v2364_v54 = vand.u32 4294901760, %v12981_v39  ;;  %v2374_v34 = vand.u32 4294901760, %v12984_v47 }
 0x27b   : > { %10727 = vmatprep.subr.mxu1 %v12201_v9 }
 0x27c   : > { %10728 = vmatpush3.msra.mxu1 %v12201_v9  ;;  %v2345_v3 = vsub.f32 %v2343_v48, %v2344_v58  ;;  %v2355_v23 = vsub.f32 %v12977_v62, %v2354_v30  ;;  %v2365_v45 = vsub.f32 %v12981_v39, %v2364_v54  ;;  %v2375_v46 = vsub.f32 %v12984_v47, %v2374_v34 }
 0x27d   : > { %10729 = vmatprep.subr.mxu1 %v12213_v12  ;;  %10685 = vmatmul.mubr.f32.gmra.mxu1 %v12973_v17 }
 0x27e   : > { %10730 = vmatpush3.msra.mxu1 %v12213_v12  ;;  %10757 = vmatprep.mubr.f32.mxu1 %v2344_v58  ;;  %v2346_v27 = vand.u32 4294901760, %v2345_v3  ;;  %v2356_v0 = vand.u32 4294901760, %v2355_v23  ;;  %v2366_v2 = vand.u32 4294901760, %v2365_v45  ;;  %v2376_v52 = vand.u32 4294901760, %v2375_v46  ;;  %v14940_v58 = vld [vmem:[#allocation8_spill] sm:$0xff]  ;;  %v14942_v3 = vld [vmem:[#allocation19_spill] sm:$0xff] }
 0x27f   : > { %10731 = vmatprep.subr.mxu1 %v12219_v16  ;;  %v14943_v23 = vld [vmem:[#allocation22_spill] sm:$0xff]  ;;  %v14944_v45 = vld [vmem:[#allocation24_spill] sm:$0xff]  ;;  %v14947_v46 = vld [vmem:[#allocation41_spill] sm:$0xff] }
 0x280   : > { %10732 = vmatpush3.msra.mxu1 %v12219_v16  ;;  %10643 = vmatprep.mubr.f32.mxu0 %v2346_v27  ;;  %v14945_v27 = vld [vmem:[#allocation35_spill] sm:$0xff] }
 0x281   : > { %10733 = vmatprep.subr.mxu1 %v12243_v26  ;;  %10644 = vmatmul.mubr.f32.vlgmr.msra.gmra.mxu0 %v2356_v0  ;;  %v14946_v0 = vld [vmem:[#allocation38_spill] sm:$0xff] }
 0x282   : > { %10688 = vmatpush3.msra.mxu0 %v12211_v11  ;;  %10734 = vmatpush3.msra.mxu1 %v12243_v26 }
 0x283   : > { %10646 = vmatprep.mubr.f32.mxu0 %v2366_v2  ;;  %10689 = vmatprep.subr.mxu0 %v14939_v51  ;;  %v14953_v2 = vld [vmem:[#allocation15_spill] sm:$0xff] }
 0x284   : > { %10735 = vmatprep.subr.mxu1 %v12255_v31  ;;  %10690 = vmatpush3.msra.mxu0 %v14939_v51 }
 0x285   : > { %10736 = vmatpush3.msra.mxu1 %v12255_v31  ;;  %10691 = vmatprep.subr.mxu0 %v12235_v22 }
 0x286   : > { %10737 = vmatprep.subr.mxu1 %v12273_v37  ;;  %10647 = vmatmul.mubr.f32.gmra.mxu0 %v2376_v52  ;;  %v14956_v52 = vld [vmem:[#allocation26_spill] sm:$0xff] }
 0x287   : > { %10692 = vmatpush3.msra.mxu0 %v12235_v22  ;;  %10738 = vmatpush3.msra.mxu1 %v12273_v37 }
 0x288   : > { %10693 = vmatprep.subr.mxu0 %v14940_v58  ;;  %10719 = vmatprep.mubr.f32.mxu0 %v2343_v48  ;;  %v14941_v48 = vld [vmem:[#allocation16_spill] sm:$0xff] }
 0x289   : > { %10739 = vmatprep.subr.mxu1 %v12287_v44  ;;  %10694 = vmatpush3.msra.mxu0 %v14940_v58 }
 0x28a   : > { %10740 = vmatpush3.msra.mxu1 %v12287_v44  ;;  %10695 = vmatprep.subr.mxu0 %v12271_v36 }
 0x28b   : > { %10741 = vmatprep.subr.mxu1 %v12303_v50  ;;  %10696 = vmatpush3.msra.mxu0 %v12271_v36 }
 0x28c   : > { %10742 = vmatpush3.msra.mxu1 %v12303_v50  ;;  %10697 = vmatprep.subr.mxu0 %v12285_v43 }
 0x28d   : > { %10743 = vmatprep.subr.mxu1 %v12311_v53  ;;  %10698 = vmatpush3.msra.mxu0 %v12285_v43 }
 0x28e   : > { %10744 = vmatpush3.msra.mxu1 %v12311_v53  ;;  %10699 = vmatprep.subr.mxu0 %v14941_v48 }
 0x28f   : > { %10745 = vmatprep.subr.mxu1 %v12336_v59  ;;  %10700 = vmatpush3.msra.mxu0 %v14941_v48 }
 0x290   : > { %10746 = vmatpush3.msra.mxu1 %v12336_v59  ;;  %10701 = vmatprep.subr.mxu0 %v14942_v3 }
 0x291   : > { %10747 = vmatprep.subr.mxu1 %v12373_v1  ;;  %10702 = vmatpush3.msra.mxu0 %v14942_v3 }
 0x292   : > { %10748 = vmatpush3.msra.mxu1 %v12373_v1  ;;  %10703 = vmatprep.subr.mxu0 %v14943_v23 }
 0x293   : > { %10749 = vmatprep.subr.mxu1 %v12391_v28  ;;  %10704 = vmatpush3.msra.mxu0 %v14943_v23 }
 0x294   : > { %10750 = vmatpush3.msra.mxu1 %v12391_v28  ;;  %10705 = vmatprep.subr.mxu0 %v14944_v45 }
 0x295   : > { %10751 = vmatprep.subr.mxu1 %v12413_v40  ;;  %10706 = vmatpush3.msra.mxu0 %v14944_v45 }
 0x296   : > { %10752 = vmatpush3.msra.mxu1 %v12413_v40  ;;  %10707 = vmatprep.subr.mxu0 %v12377_v15 }
 0x297   : > { %10753 = vmatprep.subr.mxu1 %v12433_v55  ;;  %10708 = vmatpush3.msra.mxu0 %v12377_v15 }
 0x298   : > { %10754 = vmatpush3.msra.mxu1 %v12433_v55  ;;  %10709 = vmatprep.subr.mxu0 %v12411_v38 }
 0x299   : > { %10755 = vmatprep.subr.mxu1 %v12452_v29  ;;  %10710 = vmatpush3.msra.mxu0 %v12411_v38 }
 0x29a   : > { %10756 = vmatpush3.msra.mxu1 %v12452_v29  ;;  %10711 = vmatprep.subr.mxu0 %v14945_v27 }
 0x29b   : > { %10758 = vmatmul.mubr.f32.vlgmr.msra.gmra.mxu1 %v2354_v30  ;;  %10801 = vmatprep.subr.mxu1 %v12191_v6  ;;  %v14948_v30 = vld [vmem:[#allocation44_spill] sm:$0xff] }
 0x29c   : > { %10712 = vmatpush3.msra.mxu0 %v14945_v27  ;;  %10760 = vmatprep.mubr.f32.mxu1 %v2364_v54  ;;  %v14949_v54 = vld [vmem:[#allocation5_spill] sm:$0xff] }
 0x29d   : > { %10802 = vmatpush3.msra.mxu1 %v12191_v6  ;;  %10713 = vmatprep.subr.mxu0 %v14946_v0 }
 0x29e   : > { %10803 = vmatprep.subr.mxu1 %v12201_v9  ;;  %10714 = vmatpush3.msra.mxu0 %v14946_v0 }
 0x29f   : > { %10804 = vmatpush3.msra.mxu1 %v12201_v9  ;;  %10715 = vmatprep.subr.mxu0 %v14947_v46 }
 0x2a0   : > { %10761 = vmatmul.mubr.f32.gmra.mxu1 %v2374_v34  ;;  %10805 = vmatprep.subr.mxu1 %v12213_v12  ;;  %v14950_v34 = vld [vmem:[#allocation9_spill] sm:$0xff] }
 0x2a1   : > { %10716 = vmatpush3.msra.mxu0 %v14947_v46  ;;  %10806 = vmatpush3.msra.mxu1 %v12213_v12 }
 0x2a2   : > { %10833 = vmatprep.mubr.f32.mxu1 %v12967_v24  ;;  %10717 = vmatprep.subr.mxu0 %v14948_v30 }
 0x2a3   : > { %10807 = vmatprep.subr.mxu1 %v12219_v16  ;;  %10718 = vmatpush3.msra.mxu0 %v14948_v30 }
 0x2a4   : > { %10808 = vmatpush3.msra.mxu1 %v12219_v16  ;;  %10720 = vmatmul.mubr.f32.vlgmr.msra.gmra.mxu0 %v12977_v62  ;;  %v14951_v62 = vld [vmem:[#allocation10_spill] sm:$0xff] }
 0x2a5   : > { %10763 = vmatprep.subr.mxu0 %v14949_v54  ;;  %10809 = vmatprep.subr.mxu1 %v12243_v26 }
 0x2a6   : > { %10722 = vmatprep.mubr.f32.mxu0 %v12981_v39  ;;  %10764 = vmatpush3.msra.mxu0 %v14949_v54  ;;  %v14952_v39 = vld [vmem:[#allocation12_spill] sm:$0xff] }
 0x2a7   : > { %10810 = vmatpush3.msra.mxu1 %v12243_v26  ;;  %10765 = vmatprep.subr.mxu0 %v14950_v34 }
 0x2a8   : > { %10811 = vmatprep.subr.mxu1 %v12255_v31  ;;  %10766 = vmatpush3.msra.mxu0 %v14950_v34 }
 0x2a9   : > { %10812 = vmatpush3.msra.mxu1 %v12255_v31  ;;  %10723 = vmatmul.mubr.f32.gmra.mxu0 %v12984_v47  ;;  %v14954_v47 = vld [vmem:[#allocation18_spill] sm:$0xff] }
 0x2aa   : > { %10767 = vmatprep.subr.mxu0 %v14951_v62  ;;  %10813 = vmatprep.subr.mxu1 %v12273_v37 }
 0x2ab   : > { %10768 = vmatpush3.msra.mxu0 %v14951_v62  ;;  %10795 = vmatprep.mubr.f32.mxu0 %v12967_v24  ;;  %v14955_v24 = vld [vmem:[#allocation21_spill] sm:$0xff] }
 0x2ac   : > { %10814 = vmatpush3.msra.mxu1 %v12273_v37  ;;  %10769 = vmatprep.subr.mxu0 %v14952_v39 }
 0x2ad   : > { %10815 = vmatprep.subr.mxu1 %v12287_v44  ;;  %10770 = vmatpush3.msra.mxu0 %v14952_v39  ;;  %v14964_v39 = vld [vmem:[#allocation46_spill] sm:$0xff] }
 0x2ae   : > { %10816 = vmatpush3.msra.mxu1 %v12287_v44  ;;  %10771 = vmatprep.subr.mxu0 %v14953_v2 }
 0x2af   : > { %10817 = vmatprep.subr.mxu1 %v12303_v50  ;;  %10772 = vmatpush3.msra.mxu0 %v14953_v2  ;;  %v14957_v2 = vld [vmem:[#allocation29_spill] sm:$0xff] }
 0x2b0   : > { %10818 = vmatpush3.msra.mxu1 %v12303_v50  ;;  %10773 = vmatprep.subr.mxu0 %v14954_v47 }
 0x2b1   : > { %10819 = vmatprep.subr.mxu1 %v12311_v53  ;;  %10774 = vmatpush3.msra.mxu0 %v14954_v47  ;;  %v14958_v47 = vld [vmem:[#allocation30_spill] sm:$0xff] }
 0x2b2   : > { %10820 = vmatpush3.msra.mxu1 %v12311_v53  ;;  %10775 = vmatprep.subr.mxu0 %v14955_v24 }
 0x2b3   : > { %10821 = vmatprep.subr.mxu1 %v12336_v59  ;;  %10776 = vmatpush3.msra.mxu0 %v14955_v24  ;;  %v14959_v24 = vld [vmem:[#allocation33_spill] sm:$0xff] }
 0x2b4   : > { %10822 = vmatpush3.msra.mxu1 %v12336_v59  ;;  %10777 = vmatprep.subr.mxu0 %v14956_v52 }
 0x2b5   : > { %10823 = vmatprep.subr.mxu1 %v12373_v1  ;;  %10778 = vmatpush3.msra.mxu0 %v14956_v52  ;;  %v14960_v52 = vld [vmem:[#allocation37_spill] sm:$0xff] }
 0x2b6   : > { %10824 = vmatpush3.msra.mxu1 %v12373_v1  ;;  %10779 = vmatprep.subr.mxu0 %v14957_v2 }
 0x2b7   : > { %10825 = vmatprep.subr.mxu1 %v12391_v28  ;;  %10780 = vmatpush3.msra.mxu0 %v14957_v2  ;;  %v14961_v2 = vld [vmem:[#allocation40_spill] sm:$0xff] }
 0x2b8   : > { %10826 = vmatpush3.msra.mxu1 %v12391_v28  ;;  %10781 = vmatprep.subr.mxu0 %v14958_v47 }
 0x2b9   : > { %10827 = vmatprep.subr.mxu1 %v12413_v40  ;;  %10782 = vmatpush3.msra.mxu0 %v14958_v47  ;;  %v14962_v47 = vld [vmem:[#allocation43_spill] sm:$0xff] }
 0x2ba   : > { %10828 = vmatpush3.msra.mxu1 %v12413_v40  ;;  %10783 = vmatprep.subr.mxu0 %v14959_v24 }
 0x2bb   : > { %10829 = vmatprep.subr.mxu1 %v12433_v55  ;;  %10784 = vmatpush3.msra.mxu0 %v14959_v24  ;;  %v14963_v24 = vld [vmem:[#allocation7_spill] sm:$0xff] }
 0x2bc   : > { %10830 = vmatpush3.msra.mxu1 %v12433_v55  ;;  %10785 = vmatprep.subr.mxu0 %v14960_v52 }
 0x2bd   : > { %10831 = vmatprep.subr.mxu1 %v12452_v29  ;;  %10786 = vmatpush3.msra.mxu0 %v14960_v52  ;;  %v14965_v52 = vld [vmem:[#allocation48_spill] sm:$0xff] }
 0x2be   : > { %10832 = vmatpush3.msra.mxu1 %v12452_v29  ;;  %10787 = vmatprep.subr.mxu0 %v14961_v2 }
 0x2bf   : > { %10834 = vmatmul.mubr.f32.vlgmr.msra.gmra.mxu1 %v12969_v7  ;;  %10788 = vmatpush3.msra.mxu0 %v14961_v2 }
 0x2c0   : > { %10836 = vmatprep.mubr.f32.mxu1 %v12971_v57  ;;  %10789 = vmatprep.subr.mxu0 %v14962_v47 }
 0x2c1   : > { %10790 = vmatpush3.msra.mxu0 %v14962_v47  ;;  %10847 = vmatprep.subr.mxu1 %v14963_v24 }
 0x2c2   : > { %10791 = vmatprep.subr.mxu0 %v14964_v39  ;;  %10848 = vmatpush3.msra.mxu1 %v14963_v24 }
 0x2c3   : > { %10837 = vmatmul.mubr.f32.gmra.mxu1 %v12973_v17  ;;  %10792 = vmatpush3.msra.mxu0 %v14964_v39 }
 0x2c4   : > { %10793 = vmatprep.subr.mxu0 %v14965_v52  ;;  %10863 = vmatprep.subr.mxu1 %v12183_v5 }
 0x2c5   : > { %10794 = vmatpush3.msra.mxu0 %v14965_v52 }
 0x2c6   : > { %10796 = vmatmul.mubr.f32.vlgmr.msra.gmra.mxu0 %v12969_v7  ;;  %10839 = vmatprep.subr.mxu0 %v12183_v5 }
 0x2c7   : > { %10798 = vmatprep.mubr.f32.mxu0 %v12971_v57  ;;  %10840 = vmatpush3.msra.mxu0 %v12183_v5 }
 0x2c8   : > { %10855 = vmatprep.subr.mxu0 %v14908_v8 }
 0x2ca   : > { %10799 = vmatmul.mubr.f32.gmra.mxu0 %v12973_v17 }
 0x339   : > { %v10683_v24 = vpop.f32.mrf.mxu1 }
 0x33b   : > { %v2529_v39 = vpop.f32.mrf.mxu1 }
 0x33d   : > { %v10686_v2 = vpop.f32.mrf.mxu1 }
 0x33f   : > { %v2541_v34 = vpop.f32.mrf.mxu1 }
 0x341   : > { %v10645_v47 = vpop.f32.mrf.mxu0 }
 0x342   : > { %v2536_v57 = vadd.f32 %v10683_v24, %v10645_v47 }
 0x343   : > { %v2348_v62 = vpop.f32.mrf.mxu0 }
 0x344   : > { %v2530_v45 = vadd.f32 %v2529_v39, %v2348_v62 }
 0x346   : > { %v10648_v54 = vpop.f32.mrf.mxu0 }
 0x347   : > { %v2548_v17 = vadd.f32 %v10686_v2, %v10648_v54 }
 0x348   : > { %v2368_v30 = vpop.f32.mrf.mxu0 }
 0x349   : > { %v2542_v36 = vadd.f32 %v2541_v34, %v2368_v30 }
 0x35b   : > { %v10759_v52 = vpop.f32.mrf.mxu1 }
 0x35d   : > { %v2761_v7 = vpop.f32.mrf.mxu1 }
 0x360   : > { %v10762_v0 = vpop.f32.mrf.mxu1 }
 0x362   : > { %v2777_v38 = vpop.f32.mrf.mxu1 }
 0x364   : > { %v10721_v46 = vpop.f32.mrf.mxu0 }
 0x365   : > { %v2659_v23 = vadd.f32 %v10721_v46, %v2536_v57 }
 0x366   : > { %v2651_v27 = vpop.f32.mrf.mxu0 }
 0x367   : > { %v2652_v48 = vadd.f32 %v2651_v27, %v2530_v45  ;;  %v2770_v22 = vadd.f32 %v10759_v52, %v2659_v23 }
 0x369   : > { %v10724_v15 = vpop.f32.mrf.mxu0  ;;  %v2762_v32 = vadd.f32 %v2761_v7, %v2652_v48 }
 0x36a   : > { %v2673_v58 = vadd.f32 %v10724_v15, %v2548_v17 }
 0x36b   : > { %v2665_v43 = vpop.f32.mrf.mxu0 }
 0x36c   : > { %v2666_v49 = vadd.f32 %v2665_v43, %v2542_v36  ;;  %v2786_v47 = vadd.f32 %v10762_v0, %v2673_v58 }
 0x36e   : > { %v2778_v45 = vadd.f32 %v2777_v38, %v2666_v49 }
 0x37f   : > { %v10835_v3 = vpop.f32.mrf.mxu1 }
 0x381   : > { %v3009_v51 = vpop.f32.mrf.mxu1 }
 0x383   : > { %v10838_v24 = vpop.f32.mrf.mxu1 }
 0x385   : > { %v3021_v36 = vpop.f32.mrf.mxu1 }
 0x386   : > { %v10797_v10 = vpop.f32.mrf.mxu0 }
 0x387   : > { %v2911_v61 = vadd.f32 %v10797_v10, %v2770_v22 }
 0x388   : > { %v2904_v42 = vpop.f32.mrf.mxu0 }
 0x389   : > { %v3016_v4 = vadd.f32 %v10835_v3, %v2911_v61  ;;  %v2905_v33 = vadd.f32 %v2904_v42, %v2762_v32 }
 0x38a   : > { %v10800_v21 = vpop.f32.mrf.mxu0 }
 0x38b   : > { %v3035_v46 = vsel %vm316_vm2, %v3016_v4, 0  ;;  %v3010_v62 = vadd.f32 %v3009_v51, %v2905_v33  ;;  %v2923_v54 = vadd.f32 %v10800_v21, %v2786_v47  ;;  %v14966_v47 = vld [vmem:[#allocation28_spill] sm:$0xff] }
 0x38c   : > { %v3119_v27 = vand.u32 4294901760, %v3035_v46  ;;  %v2916_v30 = vpop.f32.mrf.mxu0 }
 0x38d   : > { %v3032_v15 = vsel %vm316_vm2, %v3010_v62, 0  ;;  %v3028_v23 = vadd.f32 %v10838_v24, %v2923_v54  ;;  %v2917_v34 = vadd.f32 %v2916_v30, %v2778_v45  ;;  %v14967_v24 = vld [vmem:[#allocation31_spill] sm:$0xff]  ;;  %v14969_v62 = vld [vmem:[#allocation36_spill] sm:$0xff]  ;;  %v14971_v45 = vld [vmem:[#allocation42_spill] sm:$0xff] }
 0x38e   : > { %v3120_v22 = vsub.f32 %v3035_v46, %v3119_v27  ;;  %v3109_v43 = vand.u32 4294901760, %v3032_v15  ;;  %v14968_v46 = vld [vmem:[#allocation34_spill] sm:$0xff]  ;;  %v14970_v54 = vld [vmem:[#allocation39_spill] sm:$0xff] }
 0x38f   : > { %v3041_v61 = vsel %vm316_vm2, %v3028_v23, 0  ;;  %v3022_v32 = vadd.f32 %v3021_v36, %v2917_v34  ;;  %v14973_v30 = vld [vmem:[#allocation47_spill] sm:$0xff]  ;;  %v14975_v23 = vld [vmem:[#allocation50_spill] sm:$0xff]  ;;  %v14977_v36 = vld [vmem:[#allocation52_spill] sm:$0xff] }
 0x390   : > { %v3121_v42 = vand.u32 4294901760, %v3120_v22  ;;  %v3110_v10 = vsub.f32 %v3032_v15, %v3109_v43  ;;  %v3139_v58 = vand.u32 4294901760, %v3041_v61  ;;  %10849 = vmatprep.mubr.f32.mxu1 %v3109_v43  ;;  %v14974_v15 = vld [vmem:[#allocation49_spill] sm:$0xff]  ;;  %v14976_v34 = vld [vmem:[#allocation51_spill] sm:$0xff] }
 0x391   : > { %v3038_v4 = vsel %vm316_vm2, %v3022_v32, 0  ;;  %10850 = vmatmul.mubr.f32.vlgmr.msra.gmra.mxu1 %v3119_v27 }
 0x392   : > { %v3140_v38 = vsub.f32 %v3041_v61, %v3139_v58  ;;  %v3129_v21 = vand.u32 4294901760, %v3038_v4  ;;  %v3111_v33 = vand.u32 4294901760, %v3110_v10  ;;  %10864 = vmatpush3.msra.mxu1 %v12183_v5  ;;  %v3122_v49 = vsub.f32 %v3120_v22, %v3121_v42 }
 0x393   : > { %10879 = vmatprep.subr.mxu1 %v12183_v5 }
 0x394   : > { %v3130_v51 = vsub.f32 %v3038_v4, %v3129_v21  ;;  %10852 = vmatprep.mubr.f32.mxu1 %v3129_v21  ;;  %v3112_v48 = vsub.f32 %v3110_v10, %v3111_v33  ;;  %v3141_v3 = vand.u32 4294901760, %v3140_v38  ;;  %v3123_v2 = vand.u32 4294901760, %v3122_v49 }
 0x395   : > { %10853 = vmatmul.mubr.f32.gmra.mxu1 %v3139_v58 }
 0x396   : > { %10865 = vmatprep.mubr.f32.mxu1 %v3111_v33  ;;  %v3113_v0 = vand.u32 4294901760, %v3112_v48  ;;  %v3131_v39 = vand.u32 4294901760, %v3130_v51  ;;  %v3142_v52 = vsub.f32 %v3140_v38, %v3141_v3 }
 0x398   : > { %10841 = vmatprep.mubr.f32.mxu0 %v3113_v0  ;;  %v3132_v7 = vsub.f32 %v3130_v51, %v3131_v39  ;;  %v3143_v17 = vand.u32 4294901760, %v3142_v52 }
 0x399   : > { %10842 = vmatmul.mubr.f32.vlgmr.msra.gmra.mxu0 %v3123_v2  ;;  %10866 = vmatmul.mubr.f32.vlgmr.msra.gmra.mxu1 %v3121_v42 }
 0x39a   : > { %10856 = vmatpush3.msra.mxu0 %v14908_v8  ;;  %10868 = vmatprep.mubr.f32.mxu1 %v3131_v39  ;;  %v3133_v57 = vand.u32 4294901760, %v3132_v7 }
 0x39b   : > { %10871 = vmatprep.subr.mxu0 %v14909_v41  ;;  %10880 = vmatpush3.msra.mxu1 %v12183_v5 }
 0x39c   : > { %10844 = vmatprep.mubr.f32.mxu0 %v3133_v57  ;;  %10925 = vmatprep.subr.mxu1 %v14910_v63 }
 0x39d   : > { %10845 = vmatmul.mubr.f32.gmra.mxu0 %v3143_v17  ;;  %10869 = vmatmul.mubr.f32.gmra.mxu1 %v3141_v3 }
 0x39e   : > { %10857 = vmatprep.mubr.f32.mxu0 %v3110_v10  ;;  %10881 = vmatprep.mubr.f32.mxu1 %v3109_v43 }
 0x3a1   : > { %10858 = vmatmul.mubr.f32.vlgmr.msra.gmra.mxu0 %v3120_v22  ;;  %10882 = vmatmul.mubr.f32.vlgmr.msra.gmra.mxu1 %v3119_v27 }
 0x3a2   : > { %10872 = vmatpush3.msra.mxu0 %v14909_v41  ;;  %10860 = vmatprep.mubr.f32.mxu0 %v3130_v51 }
 0x3a3   : > { %10884 = vmatprep.mubr.f32.mxu1 %v3129_v21  ;;  %10926 = vmatpush3.msra.mxu1 %v14910_v63 }
 0x3a4   : > { %10927 = vmatprep.subr.mxu1 %v14911_v14  ;;  %10887 = vmatprep.subr.mxu0 %v12191_v6 }
 0x3a5   : > { %10861 = vmatmul.mubr.f32.gmra.mxu0 %v3140_v38  ;;  %10885 = vmatmul.mubr.f32.gmra.mxu1 %v3139_v58 }
 0x3a6   : > { %10873 = vmatprep.mubr.f32.mxu0 %v3109_v43  ;;  %10928 = vmatpush3.msra.mxu1 %v14911_v14 }
 0x3a7   : > { %10929 = vmatprep.subr.mxu1 %v14912_v25 }
 0x3a8   : > { %10930 = vmatpush3.msra.mxu1 %v14912_v25 }
 0x3a9   : > { %10874 = vmatmul.mubr.f32.vlgmr.msra.gmra.mxu0 %v3119_v27  ;;  %10931 = vmatprep.subr.mxu1 %v14913_v19  ;;  %v14972_v27 = vld [vmem:[#allocation45_spill] sm:$0xff] }
 0x3aa   : > { %10876 = vmatprep.mubr.f32.mxu0 %v3129_v21  ;;  %10932 = vmatpush3.msra.mxu1 %v14913_v19 }
 0x3ab   : > { %10933 = vmatprep.subr.mxu1 %v14966_v47  ;;  %10888 = vmatpush3.msra.mxu0 %v12191_v6 }
 0x3ac   : > { %10934 = vmatpush3.msra.mxu1 %v14966_v47  ;;  %10889 = vmatprep.subr.mxu0 %v12201_v9 }
 0x3ad   : > { %10877 = vmatmul.mubr.f32.gmra.mxu0 %v3139_v58  ;;  %10935 = vmatprep.subr.mxu1 %v14967_v24 }
 0x3ae   : > { %10890 = vmatpush3.msra.mxu0 %v12201_v9  ;;  %10936 = vmatpush3.msra.mxu1 %v14967_v24 }
 0x3af   : > { %10891 = vmatprep.subr.mxu0 %v12213_v12  ;;  %10937 = vmatprep.subr.mxu1 %v14968_v46 }
 0x3b0   : > { %10892 = vmatpush3.msra.mxu0 %v12213_v12  ;;  %10938 = vmatpush3.msra.mxu1 %v14968_v46 }
 0x3b1   : > { %10893 = vmatprep.subr.mxu0 %v12219_v16  ;;  %10939 = vmatprep.subr.mxu1 %v14969_v62 }
 0x3b2   : > { %10894 = vmatpush3.msra.mxu0 %v12219_v16  ;;  %10940 = vmatpush3.msra.mxu1 %v14969_v62 }
 0x3b3   : > { %10895 = vmatprep.subr.mxu0 %v12243_v26  ;;  %10941 = vmatprep.subr.mxu1 %v14970_v54 }
 0x3b4   : > { %10896 = vmatpush3.msra.mxu0 %v12243_v26  ;;  %10942 = vmatpush3.msra.mxu1 %v14970_v54 }
 0x3b5   : > { %10897 = vmatprep.subr.mxu0 %v12255_v31  ;;  %10943 = vmatprep.subr.mxu1 %v14971_v45 }
 0x3b6   : > { %10898 = vmatpush3.msra.mxu0 %v12255_v31  ;;  %10944 = vmatpush3.msra.mxu1 %v14971_v45 }
 0x3b7   : > { %10899 = vmatprep.subr.mxu0 %v12273_v37  ;;  %10945 = vmatprep.subr.mxu1 %v14972_v27 }
 0x3b8   : > { %10900 = vmatpush3.msra.mxu0 %v12273_v37  ;;  %10946 = vmatpush3.msra.mxu1 %v14972_v27 }
 0x3b9   : > { %10901 = vmatprep.subr.mxu0 %v12287_v44  ;;  %10947 = vmatprep.subr.mxu1 %v14973_v30 }
 0x3ba   : > { %10902 = vmatpush3.msra.mxu0 %v12287_v44  ;;  %10948 = vmatpush3.msra.mxu1 %v14973_v30 }
 0x3bb   : > { %10903 = vmatprep.subr.mxu0 %v12303_v50  ;;  %10949 = vmatprep.subr.mxu1 %v14974_v15 }
 0x3bc   : > { %10904 = vmatpush3.msra.mxu0 %v12303_v50  ;;  %10950 = vmatpush3.msra.mxu1 %v14974_v15 }
 0x3bd   : > { %10905 = vmatprep.subr.mxu0 %v12311_v53  ;;  %10951 = vmatprep.subr.mxu1 %v14975_v23 }
 0x3be   : > { %10906 = vmatpush3.msra.mxu0 %v12311_v53  ;;  %10952 = vmatpush3.msra.mxu1 %v14975_v23 }
 0x3bf   : > { %10907 = vmatprep.subr.mxu0 %v12336_v59  ;;  %10953 = vmatprep.subr.mxu1 %v14976_v34 }
 0x3c0   : > { %10908 = vmatpush3.msra.mxu0 %v12336_v59  ;;  %10954 = vmatpush3.msra.mxu1 %v14976_v34 }
 0x3c1   : > { %10909 = vmatprep.subr.mxu0 %v12373_v1  ;;  %10955 = vmatprep.subr.mxu1 %v14977_v36 }
 0x3c2   : > { %10910 = vmatpush3.msra.mxu0 %v12373_v1  ;;  %10956 = vmatpush3.msra.mxu1 %v14977_v36 }
 0x3c3   : > { %10911 = vmatprep.subr.mxu0 %v12391_v28  ;;  %11001 = vmatprep.subr.mxu1 %v12191_v6 }
 0x3c4   : > { %10912 = vmatpush3.msra.mxu0 %v12391_v28 }
 0x3c5   : > { %10913 = vmatprep.subr.mxu0 %v12413_v40 }
 0x3c6   : > { %10914 = vmatpush3.msra.mxu0 %v12413_v40 }
 0x3c7   : > { %10915 = vmatprep.subr.mxu0 %v12433_v55 }
 0x3c8   : > { %10916 = vmatpush3.msra.mxu0 %v12433_v55 }
 0x3c9   : > { %10917 = vmatprep.subr.mxu0 %v12452_v29 }
 0x3ca   : > { %10918 = vmatpush3.msra.mxu0 %v12452_v29 }
 0x3cb   : > { %10963 = vmatprep.subr.mxu0 %v12211_v11 }
 0x451   : > { %v10851_v22 = vpop.f32.mrf.mxu1 }
 0x453   : > { %v3221_v43 = vpop.f32.mrf.mxu1 }
 0x455   : > { %v10854_v61 = vpop.f32.mrf.mxu1 }
 0x457   : > { %v3233_v32 = vpop.f32.mrf.mxu1 }
 0x459   : > { %v10843_v42 = vpop.f32.mrf.mxu0  ;;  %v10867_v10 = vpop.f32.mrf.mxu1 }
 0x45a   : > { %v3228_v48 = vadd.f32 %v10851_v22, %v10843_v42 }
 0x45b   : > { %v3115_v58 = vpop.f32.mrf.mxu0  ;;  %v3408_v4 = vpop.f32.mrf.mxu1 }
 0x45c   : > { %v3222_v0 = vadd.f32 %v3221_v43, %v3115_v58 }
 0x45d   : > { %v10846_v38 = vpop.f32.mrf.mxu0  ;;  %v10870_v21 = vpop.f32.mrf.mxu1 }
 0x45e   : > { %v3240_v7 = vadd.f32 %v10854_v61, %v10846_v38 }
 0x45f   : > { %v3135_v33 = vpop.f32.mrf.mxu0  ;;  %v3424_v49 = vpop.f32.mrf.mxu1 }
 0x460   : > { %v3234_v36 = vadd.f32 %v3233_v32, %v3135_v33 }
 0x461   : > { %v10859_v51 = vpop.f32.mrf.mxu0  ;;  %v10883_v2 = vpop.f32.mrf.mxu1 }
 0x462   : > { %v3321_v39 = vadd.f32 %v10859_v51, %v3228_v48 }
 0x463   : > { %v3313_v3 = vpop.f32.mrf.mxu0  ;;  %v3596_v15 = vpop.f32.mrf.mxu1 }
 0x464   : > { %v3314_v57 = vadd.f32 %v3313_v3, %v3222_v0  ;;  %v3417_v23 = vadd.f32 %v10867_v10, %v3321_v39  ;;  %v14983_v3 = vld [vmem:[#allocation25_spill] sm:$0xff] }
 0x465   : > { %v10862_v52 = vpop.f32.mrf.mxu0  ;;  %v10886_v42 = vpop.f32.mrf.mxu1  ;;  %v14984_v0 = vld [vmem:[#allocation53_spill] sm:$0xff] }
 0x466   : > { %v3335_v34 = vadd.f32 %v10862_v52, %v3240_v7  ;;  %v3409_v54 = vadd.f32 %v3408_v4, %v3314_v57  ;;  %v14985_v57 = vld [vmem:[#allocation54_spill] sm:$0xff] }
 0x467   : > { %v3327_v17 = vpop.f32.mrf.mxu0 }
 0x468   : > { %v3328_v27 = vadd.f32 %v3327_v17, %v3234_v36  ;;  %v3433_v22 = vadd.f32 %v10870_v21, %v3335_v34  ;;  %v14981_v34 = vld [vmem:[#allocation17_spill] sm:$0xff]  ;;  %v14982_v21 = vld [vmem:[#allocation20_spill] sm:$0xff] }
 0x469   : > { %v10875_v30 = vpop.f32.mrf.mxu0 }
 0x46a   : > { %v3513_v45 = vadd.f32 %v10875_v30, %v3417_v23  ;;  %v3425_v38 = vadd.f32 %v3424_v49, %v3328_v27  ;;  %v3608_v30 = vpop.f32.mrf.mxu1  ;;  %v14980_v27 = vld [vmem:[#allocation14_spill] sm:$0xff] }
 0x46b   : > { %v3506_v62 = vpop.f32.mrf.mxu0 }
 0x46c   : > { %v3603_v46 = vadd.f32 %v10883_v2, %v3513_v45  ;;  %v3507_v24 = vadd.f32 %v3506_v62, %v3409_v54  ;;  %v14978_v45 = vld [vmem:[#allocation2_spill] sm:$0xff] }
 0x46d   : > { %v10878_v43 = vpop.f32.mrf.mxu0 }
 0x46e   : > { %v3619_v58 = vsub.f32 %v3603_v46, %v12835_v56  ;;  %v3597_v51 = vadd.f32 %v3596_v15, %v3507_v24  ;;  %v3525_v61 = vadd.f32 %v10878_v43, %v3433_v22  ;;  %v14979_v24 = vld [vmem:[#allocation3_spill] sm:$0xff] }
 0x46f   : > { %v3518_v48 = vpop.f32.mrf.mxu0  ;;  %v14986_v22 = vld [vmem:[#allocation55_spill] sm:$0xff] }
 0x470   : > { %v3623_v32 = vmul.f32 %v12840_v13, %v3619_v58  ;;  %v3618_v10 = vsub.f32 %v3597_v51, %v12845_v35  ;;  %v3615_v33 = vadd.f32 %v10886_v42, %v3525_v61  ;;  %v3519_v36 = vadd.f32 %v3518_v48, %v3425_v38  ;;  %v14987_v61 = vld [vmem:[#allocation56_spill] sm:$0xff] }
 0x472   : > { %v3622_v23 = vmul.f32 %v12851_v60, %v3618_v10  ;;  %v3621_v62 = vsub.f32 %v3615_v33, %v12856_v18  ;;  %v3609_v54 = vadd.f32 %v3608_v30, %v3519_v36  ;;  %12013 = vtanh.f32 %v3623_v32 }
 0x474   : > { %12015 = vtanh.f32 %v3622_v23  ;;  %v3625_v56 = vmul.f32 %v14978_v45, %v3621_v62  ;;  %v3620_v46 = vsub.f32 %v3609_v54, %v14979_v24 }
 0x476   : > { %v3624_v15 = vmul.f32 %v14980_v27, %v3620_v46  ;;  %12017 = vtanh.f32 %v3625_v56  ;;  %v14988_v56 = vld [vmem:[#allocation58_spill] sm:$0xff] }
 0x478   : > { %12019 = vtanh.f32 %v3624_v15 }
 0x47f   : > { %v12014_v13 = vpop.eup %12013 }
 0x480   : > { %v3631_v18 = vmul.f32 %v12014_v13, %v14983_v3  ;;  %v3644_v39 = vmul.f32 %v12014_v13, %v14984_v0  ;;  %v14989_v13 = vld [vmem:[#allocation57_spill] sm:$0xff]  ;;  %v14992_v0 = vld [vmem:[#allocation23_spill] sm:$0xff] }
 0x481   : > { %v12016_v35 = vpop.eup %12015 }
 0x482   : > { %v3630_v4 = vmul.f32 %v12016_v35, %v14981_v34  ;;  %v3643_v49 = vmul.f32 %v12016_v35, %v14982_v21  ;;  %v14990_v35 = vld [vmem:[#allocation60_spill] sm:$0xff]  ;;  %v14991_v21 = vld [vmem:[#allocation59_spill] sm:$0xff] }
 0x483   : > { %v12018_v60 = vpop.eup %12017  ;;  %v3656_v34 = vmul.f32 %v14990_v35, %v14989_v13  ;;  %v14996_v13 = vld [vmem:[#allocation4_spill] sm:$0xff] }
 0x484   : > { %v3634_v52 = vadd.f32 %v3631_v18, %v3630_v4  ;;  %v3647_v7 = vadd.f32 %v3644_v39, %v3643_v49  ;;  %v3646_v43 = vmul.f32 %v12018_v60, %v12923_v20  ;;  %v3633_v38 = vmul.f32 %v12018_v60, %v14987_v61 }
 0x485   : > { %v12020_v2 = vpop.eup %12019  ;;  %v3657_v49 = vadd.f32 %v3656_v34, %v14991_v21  ;;  %v14997_v34 = vld [vmem:[#allocation6_spill] sm:$0xff] }
 0x486   : > { %v3632_v17 = vmul.f32 %v12020_v2, %v14985_v57  ;;  %v3645_v42 = vmul.f32 %v12020_v2, %v14986_v22  ;;  %v14993_v2 = vld [vmem:[#allocation61_spill] sm:$0xff] }
 0x488   : > { %v3635_v58 = vadd.f32 %v3634_v52, %v3632_v17  ;;  %v3648_v51 = vadd.f32 %v3647_v7, %v3645_v42  ;;  %v14994_v7 = vld [vmem:[#allocation62_spill] sm:$0xff]  ;;  %v13255_v17 = vld [vmem:[%s14544_s5 + $0x10] sm:$0xff]  ;;  %v13261_v42 = vld [vmem:[%s14544_s5 + $0x18] sm:$0xff] }
 0x489   : > { %14995 = vst [vmem:[#allocation28_spill] sm:$0xff] %v13261_v42 }
 0x48a   : > { %v3649_v48 = vadd.f32 %v3648_v51, %v3646_v43  ;;  %v3636_v32 = vadd.f32 %v3635_v58, %v3633_v38 }
 0x48c   : > { %v3650_v10 = vrot.slane %v3649_v48, 4  ;;  %v3637_v36 = vrot.slane %v3636_v32, 4 }
 0x48e   : > { %v3651_v33 = vadd.f32 %v3650_v10, %v3649_v48  ;;  %v3638_v62 = vadd.f32 %v3637_v36, %v3636_v32 }
 0x490   : > { %v3652_v30 = vrot.slane %v3651_v33, 2  ;;  %v3639_v46 = vrot.slane %v3638_v62, 2 }
 0x492   : > { %v3653_v23 = vadd.f32 %v3652_v30, %v3651_v33  ;;  %v3640_v15 = vadd.f32 %v3639_v46, %v3638_v62 }
 0x494   : > { %v3654_v54 = vrot.slane %v3653_v23, 1  ;;  %v3641_v20 = vrot.slane %v3640_v15, 1 }
 0x496   : > { %v3655_v45 = vadd.f32 %v3654_v54, %v3653_v23  ;;  %v3642_v4 = vadd.f32 %v3641_v20, %v3640_v15 }
 0x498   : > { %v3659_v24 = vadd.f32 %v3655_v45, %v14988_v56  ;;  %v3658_v60 = vadd.f32 %v3657_v49, %v3642_v4  ;;  %v14998_v4 = vld [vmem:[#allocation8_spill] sm:$0xff]  ;;  %v14999_v49 = vld [vmem:[#allocation11_spill] sm:$0xff] }
 0x49a   : > { %v3661_v27 = vrot.slane %v3659_v24, 2 }
 0x49c   : > { %12021 = vrcp.f32 %v3661_v27 }
 0x4a9   : > { %v12022_v3 = vpop.eup %12021 }
 0x4aa   : > { %v13246_v18 = vmul.f32 %v12022_v3, %v3658_v60  ;;  %v15000_v60 = vld [vmem:[#allocation13_spill] sm:$0xff]  ;;  %v15001_v3 = vld [vmem:[#allocation16_spill] sm:$0xff] }
 0x4ac   : > { %v3668_v39 = vrot.slane %v13246_v18, %v14992_v0 }
 0x4ae   : > { %v3669_v52 = vmul.f32 %v14993_v2, %v3668_v39  ;;  %v3670_v57 = vmul.f32 %v14994_v7, %v3668_v39  ;;  %v3671_v22 = vmul.f32 %v13255_v17, %v3668_v39  ;;  %v3672_v43 = vmul.f32 %v13261_v42, %v3668_v39  ;;  %v15002_v39 = vld [vmem:[#allocation19_spill] sm:$0xff]  ;;  %v15003_v2 = vld [vmem:[#allocation22_spill] sm:$0xff] }
 0x4af   : > { %v15005_v7 = vld [vmem:[#allocation27_spill] sm:$0xff] }
 0x4b0   : > { %v13264_v58 = vand.u32 4294901760, %v3669_v52  ;;  %v13266_v51 = vand.u32 4294901760, %v3670_v57  ;;  %v13268_v61 = vand.u32 4294901760, %v3671_v22  ;;  %v13270_v38 = vand.u32 4294901760, %v3672_v43 }
 0x4b2   : > { %10957 = vmatprep.mubr.f32.mxu1 %v13264_v58  ;;  %v13274_v48 = vsub.f32 %v3670_v57, %v13266_v51  ;;  %v3755_v32 = vsub.f32 %v3669_v52, %v13264_v58  ;;  %v13278_v10 = vsub.f32 %v3671_v22, %v13268_v61  ;;  %v13281_v33 = vsub.f32 %v3672_v43, %v13270_v38  ;;  %v15004_v52 = vld [vmem:[#allocation24_spill] sm:$0xff]  ;;  %v15007_v22 = vld [vmem:[#allocation35_spill] sm:$0xff]  ;;  %v15008_v43 = vld [vmem:[#allocation38_spill] sm:$0xff] }
 0x4b3   : > { %10958 = vmatmul.mubr.f32.vlgmr.msra.gmra.mxu1 %v13266_v51  ;;  %v15006_v57 = vld [vmem:[#allocation32_spill] sm:$0xff] }
 0x4b4   : > { %11002 = vmatpush3.msra.mxu1 %v12191_v6  ;;  %10960 = vmatprep.mubr.f32.mxu1 %v13268_v61  ;;  %v3756_v36 = vand.u32 4294901760, %v3755_v32  ;;  %v3766_v30 = vand.u32 4294901760, %v13274_v48  ;;  %v3776_v23 = vand.u32 4294901760, %v13278_v10  ;;  %v3786_v45 = vand.u32 4294901760, %v13281_v33 }
 0x4b5   : > { %11003 = vmatprep.subr.mxu1 %v12201_v9 }
 0x4b6   : > { %11004 = vmatpush3.msra.mxu1 %v12201_v9  ;;  %v3757_v62 = vsub.f32 %v3755_v32, %v3756_v36  ;;  %v3767_v54 = vsub.f32 %v13274_v48, %v3766_v30  ;;  %v3777_v24 = vsub.f32 %v13278_v10, %v3776_v23  ;;  %v3787_v15 = vsub.f32 %v13281_v33, %v3786_v45 }
 0x4b7   : > { %11005 = vmatprep.subr.mxu1 %v12213_v12  ;;  %10961 = vmatmul.mubr.f32.gmra.mxu1 %v13270_v38 }
 0x4b8   : > { %11006 = vmatpush3.msra.mxu1 %v12213_v12  ;;  %11033 = vmatprep.mubr.f32.mxu1 %v3756_v36  ;;  %v3758_v46 = vand.u32 4294901760, %v3757_v62  ;;  %v3768_v27 = vand.u32 4294901760, %v3767_v54  ;;  %v3778_v20 = vand.u32 4294901760, %v3777_v24  ;;  %v3788_v35 = vand.u32 4294901760, %v3787_v15  ;;  %v15010_v36 = vld [vmem:[#allocation44_spill] sm:$0xff]  ;;  %v15015_v62 = vld [vmem:[#allocation15_spill] sm:$0xff] }
 0x4b9   : > { %11007 = vmatprep.subr.mxu1 %v12219_v16  ;;  %v15018_v54 = vld [vmem:[#allocation26_spill] sm:$0xff]  ;;  %v15023_v15 = vld [vmem:[#allocation40_spill] sm:$0xff] }
 0x4ba   : > { %11008 = vmatpush3.msra.mxu1 %v12219_v16  ;;  %10919 = vmatprep.mubr.f32.mxu0 %v3758_v46  ;;  %v15020_v24 = vld [vmem:[#allocation30_spill] sm:$0xff]  ;;  %v15021_v46 = vld [vmem:[#allocation33_spill] sm:$0xff] }
 0x4bb   : > { %11009 = vmatprep.subr.mxu1 %v12243_v26  ;;  %10920 = vmatmul.mubr.f32.vlgmr.msra.gmra.mxu0 %v3768_v27  ;;  %v15022_v27 = vld [vmem:[#allocation37_spill] sm:$0xff] }
 0x4bc   : > { %10964 = vmatpush3.msra.mxu0 %v12211_v11  ;;  %11010 = vmatpush3.msra.mxu1 %v12243_v26 }
 0x4bd   : > { %10922 = vmatprep.mubr.f32.mxu0 %v3778_v20  ;;  %10965 = vmatprep.subr.mxu0 %v14996_v13  ;;  %v15024_v20 = vld [vmem:[#allocation43_spill] sm:$0xff] }
 0x4be   : > { %11011 = vmatprep.subr.mxu1 %v12255_v31  ;;  %10966 = vmatpush3.msra.mxu0 %v14996_v13 }
 0x4bf   : > { %11012 = vmatpush3.msra.mxu1 %v12255_v31  ;;  %10967 = vmatprep.subr.mxu0 %v14997_v34 }
 0x4c0   : > { %11013 = vmatprep.subr.mxu1 %v12273_v37  ;;  %10923 = vmatmul.mubr.f32.gmra.mxu0 %v3788_v35  ;;  %v15025_v35 = vld [vmem:[#allocation7_spill] sm:$0xff] }
 0x4c1   : > { %10968 = vmatpush3.msra.mxu0 %v14997_v34  ;;  %11014 = vmatpush3.msra.mxu1 %v12273_v37 }
 0x4c2   : > { %10969 = vmatprep.subr.mxu0 %v14998_v4  ;;  %10995 = vmatprep.mubr.f32.mxu0 %v3755_v32  ;;  %v15009_v32 = vld [vmem:[#allocation41_spill] sm:$0xff] }
 0x4c3   : > { %11015 = vmatprep.subr.mxu1 %v12287_v44  ;;  %10970 = vmatpush3.msra.mxu0 %v14998_v4 }
 0x4c4   : > { %11016 = vmatpush3.msra.mxu1 %v12287_v44  ;;  %10971 = vmatprep.subr.mxu0 %v14999_v49 }
 0x4c5   : > { %11017 = vmatprep.subr.mxu1 %v12303_v50  ;;  %10972 = vmatpush3.msra.mxu0 %v14999_v49 }
 0x4c6   : > { %11018 = vmatpush3.msra.mxu1 %v12303_v50  ;;  %10973 = vmatprep.subr.mxu0 %v15000_v60 }
 0x4c7   : > { %11019 = vmatprep.subr.mxu1 %v12311_v53  ;;  %10974 = vmatpush3.msra.mxu0 %v15000_v60 }
 0x4c8   : > { %11020 = vmatpush3.msra.mxu1 %v12311_v53  ;;  %10975 = vmatprep.subr.mxu0 %v15001_v3 }
 0x4c9   : > { %11021 = vmatprep.subr.mxu1 %v12336_v59  ;;  %10976 = vmatpush3.msra.mxu0 %v15001_v3 }
 0x4ca   : > { %11022 = vmatpush3.msra.mxu1 %v12336_v59  ;;  %10977 = vmatprep.subr.mxu0 %v15002_v39 }
 0x4cb   : > { %11023 = vmatprep.subr.mxu1 %v12373_v1  ;;  %10978 = vmatpush3.msra.mxu0 %v15002_v39 }
 0x4cc   : > { %11024 = vmatpush3.msra.mxu1 %v12373_v1  ;;  %10979 = vmatprep.subr.mxu0 %v15003_v2 }
 0x4cd   : > { %11025 = vmatprep.subr.mxu1 %v12391_v28  ;;  %10980 = vmatpush3.msra.mxu0 %v15003_v2 }
 0x4ce   : > { %11026 = vmatpush3.msra.mxu1 %v12391_v28  ;;  %10981 = vmatprep.subr.mxu0 %v15004_v52 }
 0x4cf   : > { %11027 = vmatprep.subr.mxu1 %v12413_v40  ;;  %10982 = vmatpush3.msra.mxu0 %v15004_v52 }
 0x4d0   : > { %11028 = vmatpush3.msra.mxu1 %v12413_v40  ;;  %10983 = vmatprep.subr.mxu0 %v15005_v7 }
 0x4d1   : > { %11029 = vmatprep.subr.mxu1 %v12433_v55  ;;  %10984 = vmatpush3.msra.mxu0 %v15005_v7 }
 0x4d2   : > { %11030 = vmatpush3.msra.mxu1 %v12433_v55  ;;  %10985 = vmatprep.subr.mxu0 %v15006_v57 }
 0x4d3   : > { %11031 = vmatprep.subr.mxu1 %v12452_v29  ;;  %10986 = vmatpush3.msra.mxu0 %v15006_v57 }
 0x4d4   : > { %11032 = vmatpush3.msra.mxu1 %v12452_v29  ;;  %10987 = vmatprep.subr.mxu0 %v15007_v22 }
 0x4d5   : > { %11034 = vmatmul.mubr.f32.vlgmr.msra.gmra.mxu1 %v3766_v30  ;;  %11077 = vmatprep.subr.mxu1 %v12191_v6  ;;  %v15011_v30 = vld [vmem:[#allocation5_spill] sm:$0xff] }
 0x4d6   : > { %10988 = vmatpush3.msra.mxu0 %v15007_v22  ;;  %11036 = vmatprep.mubr.f32.mxu1 %v3776_v23  ;;  %v15012_v23 = vld [vmem:[#allocation9_spill] sm:$0xff] }
 0x4d7   : > { %11078 = vmatpush3.msra.mxu1 %v12191_v6  ;;  %10989 = vmatprep.subr.mxu0 %v15008_v43 }
 0x4d8   : > { %11079 = vmatprep.subr.mxu1 %v12201_v9  ;;  %10990 = vmatpush3.msra.mxu0 %v15008_v43 }
 0x4d9   : > { %11080 = vmatpush3.msra.mxu1 %v12201_v9  ;;  %10991 = vmatprep.subr.mxu0 %v15009_v32 }
 0x4da   : > { %11037 = vmatmul.mubr.f32.gmra.mxu1 %v3786_v45  ;;  %11081 = vmatprep.subr.mxu1 %v12213_v12  ;;  %v15019_v45 = vld [vmem:[#allocation29_spill] sm:$0xff] }
 0x4db   : > { %10992 = vmatpush3.msra.mxu0 %v15009_v32  ;;  %11082 = vmatpush3.msra.mxu1 %v12213_v12 }
 0x4dc   : > { %11109 = vmatprep.mubr.f32.mxu1 %v13264_v58  ;;  %10993 = vmatprep.subr.mxu0 %v15010_v36 }
 0x4dd   : > { %11083 = vmatprep.subr.mxu1 %v12219_v16  ;;  %10994 = vmatpush3.msra.mxu0 %v15010_v36 }
 0x4de   : > { %11084 = vmatpush3.msra.mxu1 %v12219_v16  ;;  %10996 = vmatmul.mubr.f32.vlgmr.msra.gmra.mxu0 %v13274_v48  ;;  %v15013_v48 = vld [vmem:[#allocation10_spill] sm:$0xff] }
 0x4df   : > { %11039 = vmatprep.subr.mxu0 %v15011_v30  ;;  %11085 = vmatprep.subr.mxu1 %v12243_v26 }
 0x4e0   : > { %10998 = vmatprep.mubr.f32.mxu0 %v13278_v10  ;;  %11040 = vmatpush3.msra.mxu0 %v15011_v30  ;;  %v15014_v10 = vld [vmem:[#allocation12_spill] sm:$0xff] }
 0x4e1   : > { %11086 = vmatpush3.msra.mxu1 %v12243_v26  ;;  %11041 = vmatprep.subr.mxu0 %v15012_v23 }
 0x4e2   : > { %11087 = vmatprep.subr.mxu1 %v12255_v31  ;;  %11042 = vmatpush3.msra.mxu0 %v15012_v23 }
 0x4e3   : > { %11088 = vmatpush3.msra.mxu1 %v12255_v31  ;;  %10999 = vmatmul.mubr.f32.gmra.mxu0 %v13281_v33  ;;  %v15016_v33 = vld [vmem:[#allocation18_spill] sm:$0xff] }
 0x4e4   : > { %11043 = vmatprep.subr.mxu0 %v15013_v48  ;;  %11089 = vmatprep.subr.mxu1 %v12273_v37 }
 0x4e5   : > { %11044 = vmatpush3.msra.mxu0 %v15013_v48  ;;  %11071 = vmatprep.mubr.f32.mxu0 %v13264_v58  ;;  %v15017_v58 = vld [vmem:[#allocation21_spill] sm:$0xff] }
 0x4e6   : > { %11090 = vmatpush3.msra.mxu1 %v12273_v37  ;;  %11045 = vmatprep.subr.mxu0 %v15014_v10 }
 0x4e7   : > { %11091 = vmatprep.subr.mxu1 %v12287_v44  ;;  %11046 = vmatpush3.msra.mxu0 %v15014_v10 }
 0x4e8   : > { %11092 = vmatpush3.msra.mxu1 %v12287_v44  ;;  %11047 = vmatprep.subr.mxu0 %v15015_v62 }
 0x4e9   : > { %11093 = vmatprep.subr.mxu1 %v12303_v50  ;;  %11048 = vmatpush3.msra.mxu0 %v15015_v62 }
 0x4ea   : > { %11094 = vmatpush3.msra.mxu1 %v12303_v50  ;;  %11049 = vmatprep.subr.mxu0 %v15016_v33 }
 0x4eb   : > { %11095 = vmatprep.subr.mxu1 %v12311_v53  ;;  %11050 = vmatpush3.msra.mxu0 %v15016_v33 }
 0x4ec   : > { %11096 = vmatpush3.msra.mxu1 %v12311_v53  ;;  %11051 = vmatprep.subr.mxu0 %v15017_v58 }
 0x4ed   : > { %11097 = vmatprep.subr.mxu1 %v12336_v59  ;;  %11052 = vmatpush3.msra.mxu0 %v15017_v58 }
 0x4ee   : > { %11098 = vmatpush3.msra.mxu1 %v12336_v59  ;;  %11053 = vmatprep.subr.mxu0 %v15018_v54 }
 0x4ef   : > { %11099 = vmatprep.subr.mxu1 %v12373_v1  ;;  %11054 = vmatpush3.msra.mxu0 %v15018_v54 }
 0x4f0   : > { %11100 = vmatpush3.msra.mxu1 %v12373_v1  ;;  %11055 = vmatprep.subr.mxu0 %v15019_v45 }
 0x4f1   : > { %11101 = vmatprep.subr.mxu1 %v12391_v28  ;;  %11056 = vmatpush3.msra.mxu0 %v15019_v45 }
 0x4f2   : > { %11102 = vmatpush3.msra.mxu1 %v12391_v28  ;;  %11057 = vmatprep.subr.mxu0 %v15020_v24 }
 0x4f3   : > { %11103 = vmatprep.subr.mxu1 %v12413_v40  ;;  %11058 = vmatpush3.msra.mxu0 %v15020_v24 }
 0x4f4   : > { %11104 = vmatpush3.msra.mxu1 %v12413_v40  ;;  %11059 = vmatprep.subr.mxu0 %v15021_v46 }
 0x4f5   : > { %11105 = vmatprep.subr.mxu1 %v12433_v55  ;;  %11060 = vmatpush3.msra.mxu0 %v15021_v46  ;;  %v15026_v46 = vld [vmem:[#allocation46_spill] sm:$0xff] }
 0x4f6   : > { %11106 = vmatpush3.msra.mxu1 %v12433_v55  ;;  %11061 = vmatprep.subr.mxu0 %v15022_v27 }
 0x4f7   : > { %11107 = vmatprep.subr.mxu1 %v12452_v29  ;;  %11062 = vmatpush3.msra.mxu0 %v15022_v27  ;;  %v15027_v27 = vld [vmem:[#allocation48_spill] sm:$0xff] }
 0x4f8   : > { %11108 = vmatpush3.msra.mxu1 %v12452_v29  ;;  %11063 = vmatprep.subr.mxu0 %v15023_v15 }
 0x4f9   : > { %11110 = vmatmul.mubr.f32.vlgmr.msra.gmra.mxu1 %v13266_v51  ;;  %11064 = vmatpush3.msra.mxu0 %v15023_v15 }
 0x4fa   : > { %11112 = vmatprep.mubr.f32.mxu1 %v13268_v61  ;;  %11065 = vmatprep.subr.mxu0 %v15024_v20 }
 0x4fb   : > { %11066 = vmatpush3.msra.mxu0 %v15024_v20  ;;  %11123 = vmatprep.subr.mxu1 %v15025_v35 }
 0x4fc   : > { %11067 = vmatprep.subr.mxu0 %v15026_v46  ;;  %11124 = vmatpush3.msra.mxu1 %v15025_v35 }
 0x4fd   : > { %11113 = vmatmul.mubr.f32.gmra.mxu1 %v13270_v38  ;;  %11068 = vmatpush3.msra.mxu0 %v15026_v46 }
 0x4fe   : > { %11069 = vmatprep.subr.mxu0 %v15027_v27  ;;  %11139 = vmatprep.subr.mxu1 %v12183_v5 }
 0x4ff   : > { %11070 = vmatpush3.msra.mxu0 %v15027_v27 }
 0x500   : > { %11072 = vmatmul.mubr.f32.vlgmr.msra.gmra.mxu0 %v13266_v51  ;;  %11115 = vmatprep.subr.mxu0 %v12183_v5 }
 0x501   : > { %11074 = vmatprep.mubr.f32.mxu0 %v13268_v61  ;;  %11116 = vmatpush3.msra.mxu0 %v12183_v5 }
 0x502   : > { %11131 = vmatprep.subr.mxu0 %v14908_v8 }
 0x504   : > { %11075 = vmatmul.mubr.f32.gmra.mxu0 %v13270_v38 }
 0x573   : > { %v10959_v35 = vpop.f32.mrf.mxu1 }
 0x575   : > { %v3941_v46 = vpop.f32.mrf.mxu1 }
 0x577   : > { %v10962_v15 = vpop.f32.mrf.mxu1 }
 0x579   : > { %v3953_v45 = vpop.f32.mrf.mxu1 }
 0x57b   : > { %v10921_v20 = vpop.f32.mrf.mxu0 }
 0x57c   : > { %v3948_v61 = vadd.f32 %v10959_v35, %v10921_v20 }
 0x57d   : > { %v3760_v24 = vpop.f32.mrf.mxu0 }
 0x57e   : > { %v3942_v30 = vadd.f32 %v3941_v46, %v3760_v24 }
 0x580   : > { %v10924_v54 = vpop.f32.mrf.mxu0 }
 0x581   : > { %v3960_v38 = vadd.f32 %v10962_v15, %v10924_v54 }
 0x582   : > { %v3780_v58 = vpop.f32.mrf.mxu0 }
 0x583   : > { %v3954_v57 = vadd.f32 %v3953_v45, %v3780_v58 }
 0x595   : > { %v11035_v27 = vpop.f32.mrf.mxu1 }
 0x597   : > { %v4173_v51 = vpop.f32.mrf.mxu1 }
 0x59a   : > { %v11038_v62 = vpop.f32.mrf.mxu1 }
 0x59c   : > { %v4189_v48 = vpop.f32.mrf.mxu1 }
 0x59e   : > { %v10997_v33 = vpop.f32.mrf.mxu0 }
 0x59f   : > { %v4071_v36 = vadd.f32 %v10997_v33, %v3948_v61 }
 0x5a0   : > { %v4063_v10 = vpop.f32.mrf.mxu0 }
 0x5a1   : > { %v4064_v43 = vadd.f32 %v4063_v10, %v3942_v30  ;;  %v4182_v52 = vadd.f32 %v11035_v27, %v4071_v36 }
 0x5a3   : > { %v11000_v23 = vpop.f32.mrf.mxu0  ;;  %v4174_v49 = vadd.f32 %v4173_v51, %v4064_v43 }
 0x5a4   : > { %v4085_v7 = vadd.f32 %v11000_v23, %v3960_v38 }
 0x5a5   : > { %v4077_v22 = vpop.f32.mrf.mxu0 }
 0x5a6   : > { %v4078_v3 = vadd.f32 %v4077_v22, %v3954_v57  ;;  %v4198_v20 = vadd.f32 %v11038_v62, %v4085_v7 }
 0x5a8   : > { %v4190_v30 = vadd.f32 %v4189_v48, %v4078_v3 }
 0x5b9   : > { %v11111_v32 = vpop.f32.mrf.mxu1 }
 0x5bb   : > { %v4421_v2 = vpop.f32.mrf.mxu1 }
 0x5bd   : > { %v11114_v35 = vpop.f32.mrf.mxu1 }
 0x5bf   : > { %v4433_v57 = vpop.f32.mrf.mxu1 }
 0x5c0   : > { %v11073_v39 = vpop.f32.mrf.mxu0 }
 0x5c1   : > { %v4323_v60 = vadd.f32 %v11073_v39, %v4182_v52 }
 0x5c2   : > { %v4316_v4 = vpop.f32.mrf.mxu0 }
 0x5c3   : > { %v4428_v34 = vadd.f32 %v11111_v32, %v4323_v60  ;;  %v4317_v13 = vadd.f32 %v4316_v4, %v4174_v49 }
 0x5c4   : > { %v11076_v42 = vpop.f32.mrf.mxu0 }
 0x5c5   : > { %v4447_v33 = vsel %vm316_vm2, %v4428_v34, 0  ;;  %v4422_v24 = vadd.f32 %v4421_v2, %v4317_v13  ;;  %v4335_v54 = vadd.f32 %v11076_v42, %v4198_v20  ;;  %v15028_v20 = vld [vmem:[#allocation31_spill] sm:$0xff] }
 0x5c6   : > { %v4531_v10 = vand.u32 4294901760, %v4447_v33  ;;  %v4328_v58 = vpop.f32.mrf.mxu0 }
 0x5c7   : > { %v4444_v36 = vsel %vm316_vm2, %v4422_v24, 0  ;;  %v4440_v23 = vadd.f32 %v11114_v35, %v4335_v54  ;;  %v4329_v45 = vadd.f32 %v4328_v58, %v4190_v30  ;;  %v15029_v35 = vld [vmem:[#allocation34_spill] sm:$0xff]  ;;  %v15031_v24 = vld [vmem:[#allocation39_spill] sm:$0xff]  ;;  %v15033_v30 = vld [vmem:[#allocation45_spill] sm:$0xff] }
 0x5c8   : > { %v4532_v39 = vsub.f32 %v4447_v33, %v4531_v10  ;;  %v4521_v52 = vand.u32 4294901760, %v4444_v36  ;;  %v15030_v33 = vld [vmem:[#allocation36_spill] sm:$0xff]  ;;  %v15032_v54 = vld [vmem:[#allocation42_spill] sm:$0xff]  ;;  %v15035_v58 = vld [vmem:[#allocation49_spill] sm:$0xff] }
 0x5c9   : > { %v4453_v60 = vsel %vm316_vm2, %v4440_v23, 0  ;;  %v4434_v4 = vadd.f32 %v4433_v57, %v4329_v45  ;;  %v15037_v23 = vld [vmem:[#allocation51_spill] sm:$0xff]  ;;  %v15038_v45 = vld [vmem:[#allocation52_spill] sm:$0xff] }
 0x5ca   : > { %v4533_v49 = vand.u32 4294901760, %v4532_v39  ;;  %v4522_v7 = vsub.f32 %v4444_v36, %v4521_v52  ;;  %v4551_v22 = vand.u32 4294901760, %v4453_v60  ;;  %11125 = vmatprep.mubr.f32.mxu1 %v4521_v52  ;;  %v15036_v36 = vld [vmem:[#allocation50_spill] sm:$0xff] }
 0x5cb   : > { %v4450_v13 = vsel %vm316_vm2, %v4434_v4, 0  ;;  %11126 = vmatmul.mubr.f32.vlgmr.msra.gmra.mxu1 %v4531_v10 }
 0x5cc   : > { %v4552_v42 = vsub.f32 %v4453_v60, %v4551_v22  ;;  %v4541_v34 = vand.u32 4294901760, %v4450_v13  ;;  %v4523_v3 = vand.u32 4294901760, %v4522_v7  ;;  %11140 = vmatpush3.msra.mxu1 %v12183_v5  ;;  %v4534_v2 = vsub.f32 %v4532_v39, %v4533_v49 }
 0x5cd   : > { %11155 = vmatprep.subr.mxu1 %v12183_v5 }
 0x5ce   : > { %v4542_v43 = vsub.f32 %v4450_v13, %v4541_v34  ;;  %11128 = vmatprep.mubr.f32.mxu1 %v4541_v34  ;;  %v4524_v32 = vsub.f32 %v4522_v7, %v4523_v3  ;;  %v4553_v48 = vand.u32 4294901760, %v4552_v42  ;;  %v4535_v27 = vand.u32 4294901760, %v4534_v2 }
 0x5cf   : > { %11129 = vmatmul.mubr.f32.gmra.mxu1 %v4551_v22 }
 0x5d0   : > { %11141 = vmatprep.mubr.f32.mxu1 %v4523_v3  ;;  %v4525_v62 = vand.u32 4294901760, %v4524_v32  ;;  %v4543_v46 = vand.u32 4294901760, %v4542_v43  ;;  %v4554_v15 = vsub.f32 %v4552_v42, %v4553_v48 }
 0x5d2   : > { %11117 = vmatprep.mubr.f32.mxu0 %v4525_v62  ;;  %v4544_v51 = vsub.f32 %v4542_v43, %v4543_v46  ;;  %v4555_v38 = vand.u32 4294901760, %v4554_v15 }
 0x5d3   : > { %11118 = vmatmul.mubr.f32.vlgmr.msra.gmra.mxu0 %v4535_v27  ;;  %11142 = vmatmul.mubr.f32.vlgmr.msra.gmra.mxu1 %v4533_v49 }
 0x5d4   : > { %11132 = vmatpush3.msra.mxu0 %v14908_v8  ;;  %11144 = vmatprep.mubr.f32.mxu1 %v4543_v46  ;;  %v4545_v61 = vand.u32 4294901760, %v4544_v51 }
 0x5d5   : > { %11147 = vmatprep.subr.mxu0 %v14909_v41  ;;  %11156 = vmatpush3.msra.mxu1 %v12183_v5 }
 0x5d6   : > { %11120 = vmatprep.mubr.f32.mxu0 %v4545_v61  ;;  %11201 = vmatprep.subr.mxu1 %v14910_v63 }
 0x5d7   : > { %11121 = vmatmul.mubr.f32.gmra.mxu0 %v4555_v38  ;;  %11145 = vmatmul.mubr.f32.gmra.mxu1 %v4553_v48 }
 0x5d8   : > { %11133 = vmatprep.mubr.f32.mxu0 %v4522_v7  ;;  %11157 = vmatprep.mubr.f32.mxu1 %v4521_v52 }
 0x5db   : > { %11134 = vmatmul.mubr.f32.vlgmr.msra.gmra.mxu0 %v4532_v39  ;;  %11158 = vmatmul.mubr.f32.vlgmr.msra.gmra.mxu1 %v4531_v10 }
 0x5dc   : > { %11148 = vmatpush3.msra.mxu0 %v14909_v41  ;;  %11136 = vmatprep.mubr.f32.mxu0 %v4542_v43 }
 0x5dd   : > { %11160 = vmatprep.mubr.f32.mxu1 %v4541_v34  ;;  %11202 = vmatpush3.msra.mxu1 %v14910_v63 }
 0x5de   : > { %11203 = vmatprep.subr.mxu1 %v14911_v14  ;;  %11163 = vmatprep.subr.mxu0 %v12191_v6 }
 0x5df   : > { %11137 = vmatmul.mubr.f32.gmra.mxu0 %v4552_v42  ;;  %11161 = vmatmul.mubr.f32.gmra.mxu1 %v4551_v22 }
 0x5e0   : > { %11149 = vmatprep.mubr.f32.mxu0 %v4521_v52  ;;  %11204 = vmatpush3.msra.mxu1 %v14911_v14 }
 0x5e1   : > { %11205 = vmatprep.subr.mxu1 %v14912_v25 }
 0x5e2   : > { %11206 = vmatpush3.msra.mxu1 %v14912_v25 }
 0x5e3   : > { %11150 = vmatmul.mubr.f32.vlgmr.msra.gmra.mxu0 %v4531_v10  ;;  %11207 = vmatprep.subr.mxu1 %v14913_v19  ;;  %v15034_v10 = vld [vmem:[#allocation47_spill] sm:$0xff] }
 0x5e4   : > { %11152 = vmatprep.mubr.f32.mxu0 %v4541_v34  ;;  %11208 = vmatpush3.msra.mxu1 %v14913_v19 }
 0x5e5   : > { %11209 = vmatprep.subr.mxu1 %v14966_v47  ;;  %11164 = vmatpush3.msra.mxu0 %v12191_v6 }
 0x5e6   : > { %11210 = vmatpush3.msra.mxu1 %v14966_v47  ;;  %11165 = vmatprep.subr.mxu0 %v12201_v9 }
 0x5e7   : > { %11153 = vmatmul.mubr.f32.gmra.mxu0 %v4551_v22  ;;  %11211 = vmatprep.subr.mxu1 %v15028_v20 }
 0x5e8   : > { %11166 = vmatpush3.msra.mxu0 %v12201_v9  ;;  %11212 = vmatpush3.msra.mxu1 %v15028_v20 }
 0x5e9   : > { %11167 = vmatprep.subr.mxu0 %v12213_v12  ;;  %11213 = vmatprep.subr.mxu1 %v15029_v35 }
 0x5ea   : > { %11168 = vmatpush3.msra.mxu0 %v12213_v12  ;;  %11214 = vmatpush3.msra.mxu1 %v15029_v35 }
 0x5eb   : > { %11169 = vmatprep.subr.mxu0 %v12219_v16  ;;  %11215 = vmatprep.subr.mxu1 %v15030_v33 }
 0x5ec   : > { %11170 = vmatpush3.msra.mxu0 %v12219_v16  ;;  %11216 = vmatpush3.msra.mxu1 %v15030_v33 }
 0x5ed   : > { %11171 = vmatprep.subr.mxu0 %v12243_v26  ;;  %11217 = vmatprep.subr.mxu1 %v15031_v24 }
 0x5ee   : > { %11172 = vmatpush3.msra.mxu0 %v12243_v26  ;;  %11218 = vmatpush3.msra.mxu1 %v15031_v24 }
 0x5ef   : > { %11173 = vmatprep.subr.mxu0 %v12255_v31  ;;  %11219 = vmatprep.subr.mxu1 %v15032_v54 }
 0x5f0   : > { %11174 = vmatpush3.msra.mxu0 %v12255_v31  ;;  %11220 = vmatpush3.msra.mxu1 %v15032_v54 }
 0x5f1   : > { %11175 = vmatprep.subr.mxu0 %v12273_v37  ;;  %11221 = vmatprep.subr.mxu1 %v15033_v30 }
 0x5f2   : > { %11176 = vmatpush3.msra.mxu0 %v12273_v37  ;;  %11222 = vmatpush3.msra.mxu1 %v15033_v30 }
 0x5f3   : > { %11177 = vmatprep.subr.mxu0 %v12287_v44  ;;  %11223 = vmatprep.subr.mxu1 %v15034_v10 }
 0x5f4   : > { %11178 = vmatpush3.msra.mxu0 %v12287_v44  ;;  %11224 = vmatpush3.msra.mxu1 %v15034_v10 }
 0x5f5   : > { %11179 = vmatprep.subr.mxu0 %v12303_v50  ;;  %11225 = vmatprep.subr.mxu1 %v15035_v58 }
 0x5f6   : > { %11180 = vmatpush3.msra.mxu0 %v12303_v50  ;;  %11226 = vmatpush3.msra.mxu1 %v15035_v58 }
 0x5f7   : > { %11181 = vmatprep.subr.mxu0 %v12311_v53  ;;  %11227 = vmatprep.subr.mxu1 %v15036_v36 }
 0x5f8   : > { %11182 = vmatpush3.msra.mxu0 %v12311_v53  ;;  %11228 = vmatpush3.msra.mxu1 %v15036_v36 }
 0x5f9   : > { %11183 = vmatprep.subr.mxu0 %v12336_v59  ;;  %11229 = vmatprep.subr.mxu1 %v15037_v23 }
 0x5fa   : > { %11184 = vmatpush3.msra.mxu0 %v12336_v59  ;;  %11230 = vmatpush3.msra.mxu1 %v15037_v23 }
 0x5fb   : > { %11185 = vmatprep.subr.mxu0 %v12373_v1  ;;  %11231 = vmatprep.subr.mxu1 %v15038_v45 }
 0x5fc   : > { %11186 = vmatpush3.msra.mxu0 %v12373_v1  ;;  %11232 = vmatpush3.msra.mxu1 %v15038_v45 }
 0x5fd   : > { %11187 = vmatprep.subr.mxu0 %v12391_v28  ;;  %11277 = vmatprep.subr.mxu1 %v12191_v6 }
 0x5fe   : > { %11188 = vmatpush3.msra.mxu0 %v12391_v28 }
 0x5ff   : > { %11189 = vmatprep.subr.mxu0 %v12413_v40 }
 0x600   : > { %11190 = vmatpush3.msra.mxu0 %v12413_v40 }
 0x601   : > { %11191 = vmatprep.subr.mxu0 %v12433_v55 }
 0x602   : > { %11192 = vmatpush3.msra.mxu0 %v12433_v55 }
 0x603   : > { %11193 = vmatprep.subr.mxu0 %v12452_v29 }
 0x604   : > { %11194 = vmatpush3.msra.mxu0 %v12452_v29 }
 0x605   : > { %11239 = vmatprep.subr.mxu0 %v12211_v11 }
 0x68b   : > { %v11127_v57 = vpop.f32.mrf.mxu1 }
 0x68d   : > { %v4633_v39 = vpop.f32.mrf.mxu1 }
 0x68f   : > { %v11130_v52 = vpop.f32.mrf.mxu1 }
 0x691   : > { %v4645_v60 = vpop.f32.mrf.mxu1 }
 0x693   : > { %v11119_v4 = vpop.f32.mrf.mxu0  ;;  %v11143_v49 = vpop.f32.mrf.mxu1 }
 0x694   : > { %v4640_v43 = vadd.f32 %v11127_v57, %v11119_v4 }
 0x695   : > { %v4527_v7 = vpop.f32.mrf.mxu0  ;;  %v4820_v22 = vpop.f32.mrf.mxu1 }
 0x696   : > { %v4634_v48 = vadd.f32 %v4633_v39, %v4527_v7 }
 0x697   : > { %v11122_v13 = vpop.f32.mrf.mxu0  ;;  %v11146_v42 = vpop.f32.mrf.mxu1 }
 0x698   : > { %v4652_v15 = vadd.f32 %v11130_v52, %v11122_v13  ;;  %v13526_v52 = vld [vmem:[%s14542_s3 + $0x8] sm:$0xff] }
 0x699   : > { %v4547_v34 = vpop.f32.mrf.mxu0  ;;  %v4836_v3 = vpop.f32.mrf.mxu1 }
 0x69a   : > { %v4646_v38 = vadd.f32 %v4645_v60, %v4547_v34 }
 0x69b   : > { %v11135_v2 = vpop.f32.mrf.mxu0  ;;  %v11159_v46 = vpop.f32.mrf.mxu1 }
 0x69c   : > { %v4733_v62 = vadd.f32 %v11135_v2, %v4640_v43  ;;  %v13562_v43 = vld [vmem:[%s14542_s3 + $0x10] sm:$0xff] }
 0x69d   : > { %v4725_v32 = vpop.f32.mrf.mxu0  ;;  %v5008_v36 = vpop.f32.mrf.mxu1  ;;  %15041 = vst [vmem:[#allocation14_spill] sm:$0xff] %v13562_v43 }
 0x69e   : > { %v4726_v51 = vadd.f32 %v4725_v32, %v4634_v48  ;;  %v4829_v23 = vadd.f32 %v11143_v49, %v4733_v62  ;;  %v13568_v48 = vld [vmem:[%s14542_s3 + $0x30] sm:$0xff] }
 0x69f   : > { %v11138_v27 = vpop.f32.mrf.mxu0  ;;  %v11162_v4 = vpop.f32.mrf.mxu1  ;;  %15042 = vst [vmem:[#allocation17_spill] sm:$0xff] %v13568_v48 }
 0x6a0   : > { %v4747_v45 = vadd.f32 %v11138_v27, %v4652_v15  ;;  %v4821_v54 = vadd.f32 %v4820_v22, %v4726_v51  ;;  %v13574_v15 = vld [vmem:[%s14542_s3 + $0x40] sm:$0xff] }
 0x6a1   : > { %v4739_v61 = vpop.f32.mrf.mxu0  ;;  %15043 = vst [vmem:[#allocation20_spill] sm:$0xff] %v13574_v15 }
 0x6a2   : > { %v4740_v10 = vadd.f32 %v4739_v61, %v4646_v38  ;;  %v4845_v57 = vadd.f32 %v11146_v42, %v4747_v45  ;;  %v13550_v45 = vld [vmem:[%s14542_s3 + $0x18] sm:$0xff]  ;;  %v13580_v61 = vld [vmem:[%s14542_s3 + $0x60] sm:$0xff] }
 0x6a3   : > { %v11151_v58 = vpop.f32.mrf.mxu0  ;;  %15039 = vst [vmem:[#allocation2_spill] sm:$0xff] %v13550_v45  ;;  %15044 = vst [vmem:[#allocation25_spill] sm:$0xff] %v13580_v61 }
 0x6a4   : > { %v4925_v30 = vadd.f32 %v11151_v58, %v4829_v23  ;;  %v4837_v13 = vadd.f32 %v4836_v3, %v4740_v10  ;;  %v13532_v58 = vld [vmem:[%s14542_s3 + $0x28] sm:$0xff]  ;;  %v13544_v10 = vld [vmem:[%s14542_s3 + $0x20] sm:$0xff]  ;;  %v13556_v3 = vld [vmem:[%s14542_s3 + $0x38] sm:$0xff] }
 0x6a5   : > { %v4918_v24 = vpop.f32.mrf.mxu0  ;;  %15040 = vst [vmem:[#allocation3_spill] sm:$0xff] %v13556_v3 }
 0x6a6   : > { %v5015_v33 = vadd.f32 %v11159_v46, %v4925_v30  ;;  %v4919_v35 = vadd.f32 %v4918_v24, %v4821_v54  ;;  %v13538_v54 = vld [vmem:[%s14542_s3] sm:$0xff] }
 0x6a7   : > { %v11154_v39 = vpop.f32.mrf.mxu0 }
 0x6a8   : > { %v5031_v60 = vsub.f32 %v5015_v33, %v13526_v52  ;;  %v5009_v7 = vadd.f32 %v5008_v36, %v4919_v35  ;;  %v4937_v49 = vadd.f32 %v11154_v39, %v4845_v57  ;;  %v5020_v35 = vpop.f32.mrf.mxu1 }
 0x6a9   : > { %v4930_v34 = vpop.f32.mrf.mxu0 }
 0x6aa   : > { %v5035_v24 = vmul.f32 %v13532_v58, %v5031_v60  ;;  %v5030_v30 = vsub.f32 %v5009_v7, %v13538_v54  ;;  %v5027_v23 = vadd.f32 %v11162_v4, %v4937_v49  ;;  %v4931_v33 = vadd.f32 %v4930_v34, %v4837_v13  ;;  %v13586_v4 = vld [vmem:[%s14542_s3 + $0x48] sm:$0xff] }
 0x6ab   : > { %15045 = vst [vmem:[#allocation53_spill] sm:$0xff] %v13586_v4  ;;  %v13592_v60 = vld [vmem:[%s14542_s3 + $0x68] sm:$0xff] }
 0x6ac   : > { %v5034_v36 = vmul.f32 %v13544_v10, %v5030_v30  ;;  %v5033_v22 = vsub.f32 %v5027_v23, %v13550_v45  ;;  %v5021_v42 = vadd.f32 %v5020_v35, %v4931_v33  ;;  %12023 = vtanh.f32 %v5035_v24  ;;  %15046 = vst [vmem:[#allocation54_spill] sm:$0xff] %v13592_v60  ;;  %v13598_v24 = vld [vmem:[%s14542_s3 + $0x50] sm:$0xff]  ;;  %v13610_v35 = vld [vmem:[%s14542_s3 + $0x78] sm:$0xff] }
 0x6ad   : > { %15047 = vst [vmem:[#allocation55_spill] sm:$0xff] %v13598_v24  ;;  %v13604_v23 = vld [vmem:[%s14542_s3 + $0x70] sm:$0xff]  ;;  %15049 = vst [vmem:[#allocation57_spill] sm:$0xff] %v13610_v35 }
 0x6ae   : > { %12025 = vtanh.f32 %v5034_v36  ;;  %v5037_v2 = vmul.f32 %v13556_v3, %v5033_v22  ;;  %v5032_v32 = vsub.f32 %v5021_v42, %v13562_v43  ;;  %15048 = vst [vmem:[#allocation56_spill] sm:$0xff] %v13604_v23 }
 0x6b0   : > { %v5036_v62 = vmul.f32 %v13568_v48, %v5032_v32  ;;  %12027 = vtanh.f32 %v5037_v2  ;;  %v13616_v2 = vld [vmem:[%s14542_s3 + $0x58] sm:$0xff] }
 0x6b1   : > { %15050 = vst [vmem:[#allocation60_spill] sm:$0xff] %v13616_v2 }
 0x6b2   : > { %12029 = vtanh.f32 %v5036_v62 }
 0x6b9   : > { %v12024_v46 = vpop.eup %12023 }
 0x6ba   : > { %v5043_v39 = vmul.f32 %v13586_v4, %v12024_v46  ;;  %v5056_v7 = vmul.f32 %v13592_v60, %v12024_v46 }
 0x6bb   : > { %v12026_v27 = vpop.eup %12025 }
 0x6bc   : > { %v5042_v51 = vmul.f32 %v13574_v15, %v12026_v27  ;;  %v5055_v38 = vmul.f32 %v13580_v61, %v12026_v27 }
 0x6bd   : > { %v12028_v57 = vpop.eup %12027 }
 0x6be   : > { %v5046_v13 = vadd.f32 %v5043_v39, %v5042_v51  ;;  %v5059_v34 = vadd.f32 %v5056_v7, %v5055_v38  ;;  %v5058_v36 = vmul.f32 %v13610_v35, %v12028_v57  ;;  %v5045_v32 = vmul.f32 %v13616_v2, %v12028_v57  ;;  %v13623_v57 = vld [vmem:[%s14543_s4] sm:$0x7] }
 0x6bf   : > { %v12030_v49 = vpop.eup %12029  ;;  %15051 = vst [vmem:[#allocation61_spill] sm:$0xff] %v13623_v57 }
 0x6c0   : > { %v5044_v30 = vmul.f32 %v13598_v24, %v12030_v49  ;;  %v5057_v33 = vmul.f32 %v13604_v23, %v12030_v49 }
 0x6c2   : > { %v5047_v22 = vadd.f32 %v5046_v13, %v5044_v30  ;;  %v5060_v42 = vadd.f32 %v5059_v34, %v5057_v33 }
 0x6c4   : > { %v5061_v62 = vadd.f32 %v5060_v42, %v5058_v36  ;;  %v5048_v46 = vadd.f32 %v5047_v22, %v5045_v32  ;;  %v5068_v36 = vmul.f32 %v13623_v57, %v13246_v18  ;;  %v13641_v18 = vld [vmem:[%s14544_s5 + $0x8] sm:$0xff] }
 0x6c5   : > { %15054 = vst [vmem:[#allocation63_spill] sm:$0xff] %v13641_v18 }
 0x6c6   : > { %v5062_v27 = vrot.slane %v5061_v62, 4  ;;  %v5049_v38 = vrot.slane %v5048_v46, 4  ;;  %v5069_v42 = vadd.f32 %v5068_v36, %v14991_v21 }
 0x6c8   : > { %v5063_v51 = vadd.f32 %v5062_v27, %v5061_v62  ;;  %v5050_v49 = vadd.f32 %v5049_v38, %v5048_v46  ;;  %v13635_v46 = vld [vmem:[%s14544_s5] sm:$0xff]  ;;  %v15055_v38 = vld [vmem:[#allocation28_spill] sm:$0xff] }
 0x6c9   : > { %15053 = vst [vmem:[#allocation31_spill] sm:$0xff] %v13635_v46 }
 0x6ca   : > { %v5064_v39 = vrot.slane %v5063_v51, 2  ;;  %v5051_v34 = vrot.slane %v5050_v49, 2 }
 0x6cc   : > { %v5065_v7 = vadd.f32 %v5064_v39, %v5063_v51  ;;  %v5052_v33 = vadd.f32 %v5051_v34, %v5050_v49 }
 0x6ce   : > { %v5066_v23 = vrot.slane %v5065_v7, 1  ;;  %v5053_v35 = vrot.slane %v5052_v33, 1 }
 0x6d0   : > { %v5067_v24 = vadd.f32 %v5066_v23, %v5065_v7  ;;  %v5054_v22 = vadd.f32 %v5053_v35, %v5052_v33 }
 0x6d2   : > { %v5071_v13 = vadd.f32 %v5067_v24, %v14988_v56  ;;  %v5070_v32 = vadd.f32 %v5069_v42, %v5054_v22 }
 0x6d4   : > { %v5073_v30 = vrot.slane %v5071_v13, 2 }
 0x6d6   : > { %12031 = vrcp.f32 %v5073_v30 }
 0x6e3   : > { %v12032_v23 = vpop.eup %12031 }
 0x6e4   : > { %v13628_v62 = vmul.f32 %v12032_v23, %v5070_v32 }
 0x6e6   : > { %15052 = vst [vmem:[#allocation62_spill] sm:$0xff] %v13628_v62  ;;  %v5080_v24 = vrot.slane %v13628_v62, %v14992_v0 }
 0x6e8   : > { %v5081_v27 = vmul.f32 %v13635_v46, %v5080_v24  ;;  %v5082_v35 = vmul.f32 %v13641_v18, %v5080_v24  ;;  %v5083_v51 = vmul.f32 %v13255_v17, %v5080_v24  ;;  %v5084_v39 = vmul.f32 %v15055_v38, %v5080_v24 }
 0x6ea   : > { %v13646_v7 = vand.u32 4294901760, %v5081_v27  ;;  %v13648_v49 = vand.u32 4294901760, %v5082_v35  ;;  %v13650_v13 = vand.u32 4294901760, %v5083_v51  ;;  %v13652_v34 = vand.u32 4294901760, %v5084_v39 }
 0x6ec   : > { %11233 = vmatprep.mubr.f32.mxu1 %v13646_v7  ;;  %v13656_v30 = vsub.f32 %v5082_v35, %v13648_v49  ;;  %v5167_v33 = vsub.f32 %v5081_v27, %v13646_v7  ;;  %v13660_v36 = vsub.f32 %v5083_v51, %v13650_v13  ;;  %v13663_v17 = vsub.f32 %v5084_v39, %v13652_v34 }
 0x6ed   : > { %11234 = vmatmul.mubr.f32.vlgmr.msra.gmra.mxu1 %v13648_v49 }
 0x6ee   : > { %11278 = vmatpush3.msra.mxu1 %v12191_v6  ;;  %11236 = vmatprep.mubr.f32.mxu1 %v13650_v13  ;;  %v5168_v22 = vand.u32 4294901760, %v5167_v33  ;;  %v14760_v42 = vand.u32 4294901760, %v13656_v30  ;;  %v14762_v32 = vand.u32 4294901760, %v13660_v36  ;;  %v14761_v27 = vand.u32 4294901760, %v13663_v17 }
 0x6ef   : > { %11279 = vmatprep.subr.mxu1 %v12201_v9 }
 0x6f0   : > { %11280 = vmatpush3.msra.mxu1 %v12201_v9  ;;  %v5169_v23 = vsub.f32 %v5167_v33, %v5168_v22  ;;  %v5179_v24 = vsub.f32 %v13656_v30, %v14760_v42  ;;  %v5189_v35 = vsub.f32 %v13660_v36, %v14762_v32  ;;  %v5199_v39 = vsub.f32 %v13663_v17, %v14761_v27  ;;  %v15065_v27 = vld [vmem:[#allocation27_spill] sm:$0xff]  ;;  %v15066_v32 = vld [vmem:[#allocation32_spill] sm:$0xff] }
 0x6f1   : > { %11281 = vmatprep.subr.mxu1 %v12213_v12  ;;  %11237 = vmatmul.mubr.f32.gmra.mxu1 %v13652_v34 }
 0x6f2   : > { %11282 = vmatpush3.msra.mxu1 %v12213_v12  ;;  %11309 = vmatprep.mubr.f32.mxu1 %v5168_v22  ;;  %v5170_v51 = vand.u32 4294901760, %v5169_v23  ;;  %v5180_v38 = vand.u32 4294901760, %v5179_v24  ;;  %v5190_v42 = vand.u32 4294901760, %v5189_v35  ;;  %v15056_v22 = vld [vmem:[#allocation4_spill] sm:$0xff]  ;;  %v5200_v23 = vand.u32 4294901760, %v5199_v39  ;;  %v15057_v24 = vld [vmem:[#allocation6_spill] sm:$0xff] }
 0x6f3   : > { %11283 = vmatprep.subr.mxu1 %v12219_v16  ;;  %v15058_v35 = vld [vmem:[#allocation8_spill] sm:$0xff]  ;;  %v15063_v39 = vld [vmem:[#allocation22_spill] sm:$0xff] }
 0x6f4   : > { %11284 = vmatpush3.msra.mxu1 %v12219_v16  ;;  %11195 = vmatprep.mubr.f32.mxu0 %v5170_v51  ;;  %v15060_v51 = vld [vmem:[#allocation13_spill] sm:$0xff] }
 0x6f5   : > { %11285 = vmatprep.subr.mxu1 %v12243_v26  ;;  %11196 = vmatmul.mubr.f32.vlgmr.msra.gmra.mxu0 %v5180_v38  ;;  %v15062_v38 = vld [vmem:[#allocation19_spill] sm:$0xff] }
 0x6f6   : > { %11240 = vmatpush3.msra.mxu0 %v12211_v11  ;;  %11286 = vmatpush3.msra.mxu1 %v12243_v26 }
 0x6f7   : > { %11198 = vmatprep.mubr.f32.mxu0 %v5190_v42  ;;  %11241 = vmatprep.subr.mxu0 %v15056_v22  ;;  %v15059_v42 = vld [vmem:[#allocation11_spill] sm:$0xff] }
 0x6f8   : > { %11287 = vmatprep.subr.mxu1 %v12255_v31  ;;  %11242 = vmatpush3.msra.mxu0 %v15056_v22 }
 0x6f9   : > { %11288 = vmatpush3.msra.mxu1 %v12255_v31  ;;  %11243 = vmatprep.subr.mxu0 %v15057_v24 }
 0x6fa   : > { %11289 = vmatprep.subr.mxu1 %v12273_v37  ;;  %11199 = vmatmul.mubr.f32.gmra.mxu0 %v5200_v23  ;;  %v15064_v23 = vld [vmem:[#allocation24_spill] sm:$0xff] }
 0x6fb   : > { %11244 = vmatpush3.msra.mxu0 %v15057_v24  ;;  %11290 = vmatpush3.msra.mxu1 %v12273_v37 }
 0x6fc   : > { %11245 = vmatprep.subr.mxu0 %v15058_v35  ;;  %11271 = vmatprep.mubr.f32.mxu0 %v5167_v33  ;;  %v15061_v33 = vld [vmem:[#allocation16_spill] sm:$0xff] }
 0x6fd   : > { %11291 = vmatprep.subr.mxu1 %v12287_v44  ;;  %11246 = vmatpush3.msra.mxu0 %v15058_v35 }
 0x6fe   : > { %11292 = vmatpush3.msra.mxu1 %v12287_v44  ;;  %11247 = vmatprep.subr.mxu0 %v15059_v42 }
 0x6ff   : > { %11293 = vmatprep.subr.mxu1 %v12303_v50  ;;  %11248 = vmatpush3.msra.mxu0 %v15059_v42 }
 0x700   : > { %11294 = vmatpush3.msra.mxu1 %v12303_v50  ;;  %11249 = vmatprep.subr.mxu0 %v15060_v51 }
 0x701   : > { %11295 = vmatprep.subr.mxu1 %v12311_v53  ;;  %11250 = vmatpush3.msra.mxu0 %v15060_v51 }
 0x702   : > { %11296 = vmatpush3.msra.mxu1 %v12311_v53  ;;  %11251 = vmatprep.subr.mxu0 %v15061_v33 }
 0x703   : > { %11297 = vmatprep.subr.mxu1 %v12336_v59  ;;  %11252 = vmatpush3.msra.mxu0 %v15061_v33 }
 0x704   : > { %11298 = vmatpush3.msra.mxu1 %v12336_v59  ;;  %11253 = vmatprep.subr.mxu0 %v15062_v38 }
 0x705   : > { %11299 = vmatprep.subr.mxu1 %v12373_v1  ;;  %11254 = vmatpush3.msra.mxu0 %v15062_v38  ;;  %v15070_v38 = vld [vmem:[#allocation38_spill] sm:$0xff] }
 0x706   : > { %11300 = vmatpush3.msra.mxu1 %v12373_v1  ;;  %11255 = vmatprep.subr.mxu0 %v15063_v39 }
 0x707   : > { %11301 = vmatprep.subr.mxu1 %v12391_v28  ;;  %11256 = vmatpush3.msra.mxu0 %v15063_v39  ;;  %v15067_v39 = vld [vmem:[#allocation35_spill] sm:$0xff] }
 0x708   : > { %11302 = vmatpush3.msra.mxu1 %v12391_v28  ;;  %11257 = vmatprep.subr.mxu0 %v15064_v23 }
 0x709   : > { %11303 = vmatprep.subr.mxu1 %v12413_v40  ;;  %11258 = vmatpush3.msra.mxu0 %v15064_v23  ;;  %v15068_v23 = vand.u32 4294901760, %v13656_v30 }
 0x70a   : > { %11304 = vmatpush3.msra.mxu1 %v12413_v40  ;;  %11259 = vmatprep.subr.mxu0 %v15065_v27 }
 0x70b   : > { %11305 = vmatprep.subr.mxu1 %v12433_v55  ;;  %11260 = vmatpush3.msra.mxu0 %v15065_v27  ;;  %v15069_v27 = vand.u32 4294901760, %v13660_v36 }
 0x70c   : > { %11306 = vmatpush3.msra.mxu1 %v12433_v55  ;;  %11261 = vmatprep.subr.mxu0 %v15066_v32 }
 0x70d   : > { %11307 = vmatprep.subr.mxu1 %v12452_v29  ;;  %11262 = vmatpush3.msra.mxu0 %v15066_v32  ;;  %v15071_v32 = vld [vmem:[#allocation41_spill] sm:$0xff] }
 0x70e   : > { %11308 = vmatpush3.msra.mxu1 %v12452_v29  ;;  %11263 = vmatprep.subr.mxu0 %v15067_v39 }
 0x70f   : > { %11310 = vmatmul.mubr.f32.vlgmr.msra.gmra.mxu1 %v15068_v23  ;;  %11353 = vmatprep.subr.mxu1 %v12191_v6  ;;  %v15072_v23 = vand.u32 4294901760, %v13663_v17 }
 0x710   : > { %11264 = vmatpush3.msra.mxu0 %v15067_v39  ;;  %11312 = vmatprep.mubr.f32.mxu1 %v15069_v27  ;;  %v15073_v27 = vld [vmem:[#allocation44_spill] sm:$0xff] }
 0x711   : > { %11354 = vmatpush3.msra.mxu1 %v12191_v6  ;;  %11265 = vmatprep.subr.mxu0 %v15070_v38 }
 0x712   : > { %11355 = vmatprep.subr.mxu1 %v12201_v9  ;;  %11266 = vmatpush3.msra.mxu0 %v15070_v38  ;;  %v15074_v38 = vld [vmem:[#allocation5_spill] sm:$0xff] }
 0x713   : > { %11356 = vmatpush3.msra.mxu1 %v12201_v9  ;;  %11267 = vmatprep.subr.mxu0 %v15071_v32 }
 0x714   : > { %11313 = vmatmul.mubr.f32.gmra.mxu1 %v15072_v23  ;;  %11357 = vmatprep.subr.mxu1 %v12213_v12  ;;  %v15075_v23 = vld [vmem:[#allocation9_spill] sm:$0xff] }
 0x715   : > { %11268 = vmatpush3.msra.mxu0 %v15071_v32  ;;  %11358 = vmatpush3.msra.mxu1 %v12213_v12 }
 0x716   : > { %11385 = vmatprep.mubr.f32.mxu1 %v13646_v7  ;;  %11269 = vmatprep.subr.mxu0 %v15073_v27 }
 0x717   : > { %11359 = vmatprep.subr.mxu1 %v12219_v16  ;;  %11270 = vmatpush3.msra.mxu0 %v15073_v27 }
 0x718   : > { %11360 = vmatpush3.msra.mxu1 %v12219_v16  ;;  %11272 = vmatmul.mubr.f32.vlgmr.msra.gmra.mxu0 %v13656_v30  ;;  %v15076_v30 = vld [vmem:[#allocation10_spill] sm:$0xff] }
 0x719   : > { %11315 = vmatprep.subr.mxu0 %v15074_v38  ;;  %11361 = vmatprep.subr.mxu1 %v12243_v26 }
 0x71a   : > { %11274 = vmatprep.mubr.f32.mxu0 %v13660_v36  ;;  %11316 = vmatpush3.msra.mxu0 %v15074_v38  ;;  %v15077_v36 = vld [vmem:[#allocation12_spill] sm:$0xff] }
 0x71b   : > { %11362 = vmatpush3.msra.mxu1 %v12243_v26  ;;  %11317 = vmatprep.subr.mxu0 %v15075_v23 }
 0x71c   : > { %11363 = vmatprep.subr.mxu1 %v12255_v31  ;;  %11318 = vmatpush3.msra.mxu0 %v15075_v23  ;;  %v15078_v23 = vld [vmem:[#allocation15_spill] sm:$0xff] }
 0x71d   : > { %11364 = vmatpush3.msra.mxu1 %v12255_v31  ;;  %11275 = vmatmul.mubr.f32.gmra.mxu0 %v13663_v17  ;;  %v15079_v17 = vld [vmem:[#allocation18_spill] sm:$0xff] }
 0x71e   : > { %11319 = vmatprep.subr.mxu0 %v15076_v30  ;;  %11365 = vmatprep.subr.mxu1 %v12273_v37 }
 0x71f   : > { %11320 = vmatpush3.msra.mxu0 %v15076_v30  ;;  %11347 = vmatprep.mubr.f32.mxu0 %v13646_v7  ;;  %v15080_v7 = vld [vmem:[#allocation21_spill] sm:$0xff]  ;;  %v15089_v30 = vld [vmem:[#allocation46_spill] sm:$0xff] }
 0x720   : > { %11366 = vmatpush3.msra.mxu1 %v12273_v37  ;;  %11321 = vmatprep.subr.mxu0 %v15077_v36 }
 0x721   : > { %11367 = vmatprep.subr.mxu1 %v12287_v44  ;;  %11322 = vmatpush3.msra.mxu0 %v15077_v36  ;;  %v15081_v36 = vld [vmem:[#allocation26_spill] sm:$0xff] }
 0x722   : > { %11368 = vmatpush3.msra.mxu1 %v12287_v44  ;;  %11323 = vmatprep.subr.mxu0 %v15078_v23 }
 0x723   : > { %11369 = vmatprep.subr.mxu1 %v12303_v50  ;;  %11324 = vmatpush3.msra.mxu0 %v15078_v23  ;;  %v15082_v23 = vld [vmem:[#allocation29_spill] sm:$0xff] }
 0x724   : > { %11370 = vmatpush3.msra.mxu1 %v12303_v50  ;;  %11325 = vmatprep.subr.mxu0 %v15079_v17 }
 0x725   : > { %11371 = vmatprep.subr.mxu1 %v12311_v53  ;;  %11326 = vmatpush3.msra.mxu0 %v15079_v17  ;;  %v15083_v17 = vld [vmem:[#allocation30_spill] sm:$0xff] }
 0x726   : > { %11372 = vmatpush3.msra.mxu1 %v12311_v53  ;;  %11327 = vmatprep.subr.mxu0 %v15080_v7 }
 0x727   : > { %11373 = vmatprep.subr.mxu1 %v12336_v59  ;;  %11328 = vmatpush3.msra.mxu0 %v15080_v7  ;;  %v15084_v7 = vld [vmem:[#allocation33_spill] sm:$0xff] }
 0x728   : > { %11374 = vmatpush3.msra.mxu1 %v12336_v59  ;;  %11329 = vmatprep.subr.mxu0 %v15081_v36 }
 0x729   : > { %11375 = vmatprep.subr.mxu1 %v12373_v1  ;;  %11330 = vmatpush3.msra.mxu0 %v15081_v36  ;;  %v15085_v36 = vld [vmem:[#allocation37_spill] sm:$0xff] }
 0x72a   : > { %11376 = vmatpush3.msra.mxu1 %v12373_v1  ;;  %11331 = vmatprep.subr.mxu0 %v15082_v23 }
 0x72b   : > { %11377 = vmatprep.subr.mxu1 %v12391_v28  ;;  %11332 = vmatpush3.msra.mxu0 %v15082_v23  ;;  %v15086_v23 = vld [vmem:[#allocation40_spill] sm:$0xff] }
 0x72c   : > { %11378 = vmatpush3.msra.mxu1 %v12391_v28  ;;  %11333 = vmatprep.subr.mxu0 %v15083_v17 }
 0x72d   : > { %11379 = vmatprep.subr.mxu1 %v12413_v40  ;;  %11334 = vmatpush3.msra.mxu0 %v15083_v17  ;;  %v15087_v17 = vld [vmem:[#allocation43_spill] sm:$0xff] }
 0x72e   : > { %11380 = vmatpush3.msra.mxu1 %v12413_v40  ;;  %11335 = vmatprep.subr.mxu0 %v15084_v7 }
 0x72f   : > { %11381 = vmatprep.subr.mxu1 %v12433_v55  ;;  %11336 = vmatpush3.msra.mxu0 %v15084_v7  ;;  %v15088_v7 = vld [vmem:[#allocation7_spill] sm:$0xff] }
 0x730   : > { %11382 = vmatpush3.msra.mxu1 %v12433_v55  ;;  %11337 = vmatprep.subr.mxu0 %v15085_v36 }
 0x731   : > { %11383 = vmatprep.subr.mxu1 %v12452_v29  ;;  %11338 = vmatpush3.msra.mxu0 %v15085_v36  ;;  %v15090_v36 = vld [vmem:[#allocation48_spill] sm:$0xff] }
 0x732   : > { %11384 = vmatpush3.msra.mxu1 %v12452_v29  ;;  %11339 = vmatprep.subr.mxu0 %v15086_v23 }
 0x733   : > { %11386 = vmatmul.mubr.f32.vlgmr.msra.gmra.mxu1 %v13648_v49  ;;  %11340 = vmatpush3.msra.mxu0 %v15086_v23 }
 0x734   : > { %11388 = vmatprep.mubr.f32.mxu1 %v13650_v13  ;;  %11341 = vmatprep.subr.mxu0 %v15087_v17 }
 0x735   : > { %11342 = vmatpush3.msra.mxu0 %v15087_v17  ;;  %11399 = vmatprep.subr.mxu1 %v15088_v7 }
 0x736   : > { %11343 = vmatprep.subr.mxu0 %v15089_v30  ;;  %11400 = vmatpush3.msra.mxu1 %v15088_v7 }
 0x737   : > { %11389 = vmatmul.mubr.f32.gmra.mxu1 %v13652_v34  ;;  %11344 = vmatpush3.msra.mxu0 %v15089_v30 }
 0x738   : > { %11345 = vmatprep.subr.mxu0 %v15090_v36  ;;  %11415 = vmatprep.subr.mxu1 %v12183_v5 }
 0x739   : > { %11346 = vmatpush3.msra.mxu0 %v15090_v36 }
 0x73a   : > { %11348 = vmatmul.mubr.f32.vlgmr.msra.gmra.mxu0 %v13648_v49  ;;  %11391 = vmatprep.subr.mxu0 %v12183_v5 }
 0x73b   : > { %11350 = vmatprep.mubr.f32.mxu0 %v13650_v13  ;;  %11392 = vmatpush3.msra.mxu0 %v12183_v5 }
 0x73c   : > { %11407 = vmatprep.subr.mxu0 %v14908_v8 }
 0x73e   : > { %11351 = vmatmul.mubr.f32.gmra.mxu0 %v13652_v34 }
 0x7ad   : > { %v11235_v7 = vpop.f32.mrf.mxu1 }
 0x7af   : > { %v5353_v30 = vpop.f32.mrf.mxu1 }
 0x7b1   : > { %v11238_v23 = vpop.f32.mrf.mxu1 }
 0x7b3   : > { %v5365_v27 = vpop.f32.mrf.mxu1 }
 0x7b5   : > { %v11197_v17 = vpop.f32.mrf.mxu0 }
 0x7b6   : > { %v5360_v13 = vadd.f32 %v11235_v7, %v11197_v17 }
 0x7b7   : > { %v5172_v38 = vpop.f32.mrf.mxu0 }
 0x7b8   : > { %v5354_v22 = vadd.f32 %v5353_v30, %v5172_v38 }
 0x7ba   : > { %v11200_v32 = vpop.f32.mrf.mxu0 }
 0x7bb   : > { %v5372_v34 = vadd.f32 %v11238_v23, %v11200_v32 }
 0x7bc   : > { %v5192_v39 = vpop.f32.mrf.mxu0 }
 0x7bd   : > { %v5366_v57 = vadd.f32 %v5365_v27, %v5192_v39 }
 0x7cf   : > { %v11311_v36 = vpop.f32.mrf.mxu1 }
 0x7d1   : > { %v5585_v49 = vpop.f32.mrf.mxu1 }
 0x7d4   : > { %v11314_v51 = vpop.f32.mrf.mxu1 }
 0x7d6   : > { %v5601_v35 = vpop.f32.mrf.mxu1 }
 0x7d8   : > { %v11273_v33 = vpop.f32.mrf.mxu0 }
 0x7d9   : > { %v5483_v18 = vadd.f32 %v11273_v33, %v5360_v13 }
 0x7da   : > { %v5475_v42 = vpop.f32.mrf.mxu0 }
 0x7db   : > { %v5476_v0 = vadd.f32 %v5475_v42, %v5354_v22  ;;  %v5594_v56 = vadd.f32 %v11311_v36, %v5483_v18 }
 0x7dd   : > { %v11276_v24 = vpop.f32.mrf.mxu0  ;;  %v5586_v15 = vadd.f32 %v5585_v49, %v5476_v0 }
 0x7de   : > { %v5497_v62 = vadd.f32 %v11276_v24, %v5372_v34 }
 0x7df   : > { %v5489_v21 = vpop.f32.mrf.mxu0 }
 0x7e0   : > { %v5490_v4 = vadd.f32 %v5489_v21, %v5366_v57  ;;  %v5610_v17 = vadd.f32 %v11314_v51, %v5497_v62 }
 0x7e2   : > { %v5602_v22 = vadd.f32 %v5601_v35, %v5490_v4 }
 0x7f3   : > { %v11387_v46 = vpop.f32.mrf.mxu1 }
 0x7f5   : > { %v5833_v2 = vpop.f32.mrf.mxu1 }
 0x7f7   : > { %v11390_v7 = vpop.f32.mrf.mxu1 }
 0x7f9   : > { %v5845_v21 = vpop.f32.mrf.mxu1 }
 0x7fa   : > { %v11349_v60 = vpop.f32.mrf.mxu0 }
 0x7fb   : > { %v5735_v61 = vadd.f32 %v11349_v60, %v5594_v56 }
 0x7fc   : > { %v5728_v48 = vpop.f32.mrf.mxu0 }
 0x7fd   : > { %v5840_v43 = vadd.f32 %v11387_v46, %v5735_v61  ;;  %v5729_v3 = vadd.f32 %v5728_v48, %v5586_v15 }
 0x7fe   : > { %v11352_v45 = vpop.f32.mrf.mxu0 }
 0x7ff   : > { %v5859_v33 = vsel %vm316_vm2, %v5840_v43, 0  ;;  %v5834_v38 = vadd.f32 %v5833_v2, %v5729_v3  ;;  %v5747_v32 = vadd.f32 %v11352_v45, %v5610_v17  ;;  %v15091_v17 = vld [vmem:[#allocation34_spill] sm:$0xff] }
 0x800   : > { %v5943_v42 = vand.u32 4294901760, %v5859_v33  ;;  %v5740_v39 = vpop.f32.mrf.mxu0 }
 0x801   : > { %v5856_v18 = vsel %vm316_vm2, %v5834_v38, 0  ;;  %v5852_v24 = vadd.f32 %v11390_v7, %v5747_v32  ;;  %v5741_v27 = vadd.f32 %v5740_v39, %v5602_v22  ;;  %v15092_v7 = vld [vmem:[#allocation36_spill] sm:$0xff]  ;;  %v15094_v38 = vld [vmem:[#allocation42_spill] sm:$0xff]  ;;  %v15095_v32 = vld [vmem:[#allocation45_spill] sm:$0xff] }
 0x802   : > { %v5944_v56 = vsub.f32 %v5859_v33, %v5943_v42  ;;  %v5933_v0 = vand.u32 4294901760, %v5856_v18  ;;  %v15093_v33 = vld [vmem:[#allocation39_spill] sm:$0xff]  ;;  %v15098_v39 = vld [vmem:[#allocation50_spill] sm:$0xff] }
 0x803   : > { %v5865_v61 = vsel %vm316_vm2, %v5852_v24, 0  ;;  %v5846_v48 = vadd.f32 %v5845_v21, %v5741_v27  ;;  %v15096_v22 = vld [vmem:[#allocation47_spill] sm:$0xff]  ;;  %v15100_v24 = vld [vmem:[#allocation52_spill] sm:$0xff] }
 0x804   : > { %v5945_v15 = vand.u32 4294901760, %v5944_v56  ;;  %v5934_v60 = vsub.f32 %v5856_v18, %v5933_v0  ;;  %v5963_v57 = vand.u32 4294901760, %v5865_v61  ;;  %11401 = vmatprep.mubr.f32.mxu1 %v5933_v0  ;;  %v15099_v18 = vld [vmem:[#allocation51_spill] sm:$0xff] }
 0x805   : > { %v5862_v3 = vsel %vm316_vm2, %v5846_v48, 0  ;;  %11402 = vmatmul.mubr.f32.vlgmr.msra.gmra.mxu1 %v5943_v42 }
 0x806   : > { %v5964_v45 = vsub.f32 %v5865_v61, %v5963_v57  ;;  %v5953_v43 = vand.u32 4294901760, %v5862_v3  ;;  %v5935_v4 = vand.u32 4294901760, %v5934_v60  ;;  %11416 = vmatpush3.msra.mxu1 %v12183_v5  ;;  %v5946_v2 = vsub.f32 %v5944_v56, %v5945_v15 }
 0x807   : > { %11431 = vmatprep.subr.mxu1 %v12183_v5 }
 0x808   : > { %v5954_v62 = vsub.f32 %v5862_v3, %v5953_v43  ;;  %11404 = vmatprep.mubr.f32.mxu1 %v5953_v43  ;;  %v5936_v46 = vsub.f32 %v5934_v60, %v5935_v4  ;;  %v5965_v35 = vand.u32 4294901760, %v5964_v45  ;;  %v5947_v30 = vand.u32 4294901760, %v5946_v2 }
 0x809   : > { %11405 = vmatmul.mubr.f32.gmra.mxu1 %v5963_v57 }
 0x80a   : > { %11417 = vmatprep.mubr.f32.mxu1 %v5935_v4  ;;  %v5937_v51 = vand.u32 4294901760, %v5936_v46  ;;  %v5955_v23 = vand.u32 4294901760, %v5954_v62  ;;  %v5966_v36 = vsub.f32 %v5964_v45, %v5965_v35 }
 0x80c   : > { %11393 = vmatprep.mubr.f32.mxu0 %v5937_v51  ;;  %v5956_v49 = vsub.f32 %v5954_v62, %v5955_v23  ;;  %v5967_v34 = vand.u32 4294901760, %v5966_v36 }
 0x80d   : > { %11394 = vmatmul.mubr.f32.vlgmr.msra.gmra.mxu0 %v5947_v30  ;;  %11418 = vmatmul.mubr.f32.vlgmr.msra.gmra.mxu1 %v5945_v15 }
 0x80e   : > { %11408 = vmatpush3.msra.mxu0 %v14908_v8  ;;  %11420 = vmatprep.mubr.f32.mxu1 %v5955_v23  ;;  %v5957_v13 = vand.u32 4294901760, %v5956_v49 }
 0x80f   : > { %11423 = vmatprep.subr.mxu0 %v14909_v41  ;;  %11432 = vmatpush3.msra.mxu1 %v12183_v5 }
 0x810   : > { %11396 = vmatprep.mubr.f32.mxu0 %v5957_v13  ;;  %11477 = vmatprep.subr.mxu1 %v14910_v63 }
 0x811   : > { %11397 = vmatmul.mubr.f32.gmra.mxu0 %v5967_v34  ;;  %11421 = vmatmul.mubr.f32.gmra.mxu1 %v5965_v35 }
 0x812   : > { %11409 = vmatprep.mubr.f32.mxu0 %v5934_v60  ;;  %11433 = vmatprep.mubr.f32.mxu1 %v5933_v0 }
 0x815   : > { %11410 = vmatmul.mubr.f32.vlgmr.msra.gmra.mxu0 %v5944_v56  ;;  %11434 = vmatmul.mubr.f32.vlgmr.msra.gmra.mxu1 %v5943_v42 }
 0x816   : > { %11424 = vmatpush3.msra.mxu0 %v14909_v41  ;;  %11412 = vmatprep.mubr.f32.mxu0 %v5954_v62 }
 0x817   : > { %11436 = vmatprep.mubr.f32.mxu1 %v5953_v43  ;;  %11478 = vmatpush3.msra.mxu1 %v14910_v63 }
 0x818   : > { %11479 = vmatprep.subr.mxu1 %v14911_v14  ;;  %11439 = vmatprep.subr.mxu0 %v12191_v6 }
 0x819   : > { %11413 = vmatmul.mubr.f32.gmra.mxu0 %v5964_v45  ;;  %11437 = vmatmul.mubr.f32.gmra.mxu1 %v5963_v57 }
 0x81a   : > { %11425 = vmatprep.mubr.f32.mxu0 %v5933_v0  ;;  %11480 = vmatpush3.msra.mxu1 %v14911_v14 }
 0x81b   : > { %11481 = vmatprep.subr.mxu1 %v14912_v25 }
 0x81c   : > { %11482 = vmatpush3.msra.mxu1 %v14912_v25 }
 0x81d   : > { %11426 = vmatmul.mubr.f32.vlgmr.msra.gmra.mxu0 %v5943_v42  ;;  %11483 = vmatprep.subr.mxu1 %v14913_v19  ;;  %v15097_v42 = vld [vmem:[#allocation49_spill] sm:$0xff] }
 0x81e   : > { %11428 = vmatprep.mubr.f32.mxu0 %v5953_v43  ;;  %11484 = vmatpush3.msra.mxu1 %v14913_v19 }
 0x81f   : > { %11485 = vmatprep.subr.mxu1 %v14966_v47  ;;  %11440 = vmatpush3.msra.mxu0 %v12191_v6 }
 0x820   : > { %11486 = vmatpush3.msra.mxu1 %v14966_v47  ;;  %11441 = vmatprep.subr.mxu0 %v12201_v9 }
 0x821   : > { %11429 = vmatmul.mubr.f32.gmra.mxu0 %v5963_v57  ;;  %11487 = vmatprep.subr.mxu1 %v15028_v20 }
 0x822   : > { %11442 = vmatpush3.msra.mxu0 %v12201_v9  ;;  %11488 = vmatpush3.msra.mxu1 %v15028_v20 }
 0x823   : > { %11443 = vmatprep.subr.mxu0 %v12213_v12  ;;  %11489 = vmatprep.subr.mxu1 %v15091_v17 }
 0x824   : > { %11444 = vmatpush3.msra.mxu0 %v12213_v12  ;;  %11490 = vmatpush3.msra.mxu1 %v15091_v17 }
 0x825   : > { %11445 = vmatprep.subr.mxu0 %v12219_v16  ;;  %11491 = vmatprep.subr.mxu1 %v15092_v7 }
 0x826   : > { %11446 = vmatpush3.msra.mxu0 %v12219_v16  ;;  %11492 = vmatpush3.msra.mxu1 %v15092_v7 }
 0x827   : > { %11447 = vmatprep.subr.mxu0 %v12243_v26  ;;  %11493 = vmatprep.subr.mxu1 %v15093_v33 }
 0x828   : > { %11448 = vmatpush3.msra.mxu0 %v12243_v26  ;;  %11494 = vmatpush3.msra.mxu1 %v15093_v33 }
 0x829   : > { %11449 = vmatprep.subr.mxu0 %v12255_v31  ;;  %11495 = vmatprep.subr.mxu1 %v15094_v38 }
 0x82a   : > { %11450 = vmatpush3.msra.mxu0 %v12255_v31  ;;  %11496 = vmatpush3.msra.mxu1 %v15094_v38 }
 0x82b   : > { %11451 = vmatprep.subr.mxu0 %v12273_v37  ;;  %11497 = vmatprep.subr.mxu1 %v15095_v32 }
 0x82c   : > { %11452 = vmatpush3.msra.mxu0 %v12273_v37  ;;  %11498 = vmatpush3.msra.mxu1 %v15095_v32 }
 0x82d   : > { %11453 = vmatprep.subr.mxu0 %v12287_v44  ;;  %11499 = vmatprep.subr.mxu1 %v15096_v22 }
 0x82e   : > { %11454 = vmatpush3.msra.mxu0 %v12287_v44  ;;  %11500 = vmatpush3.msra.mxu1 %v15096_v22 }
 0x82f   : > { %11455 = vmatprep.subr.mxu0 %v12303_v50  ;;  %11501 = vmatprep.subr.mxu1 %v15097_v42 }
 0x830   : > { %11456 = vmatpush3.msra.mxu0 %v12303_v50  ;;  %11502 = vmatpush3.msra.mxu1 %v15097_v42 }
 0x831   : > { %11457 = vmatprep.subr.mxu0 %v12311_v53  ;;  %11503 = vmatprep.subr.mxu1 %v15098_v39 }
 0x832   : > { %11458 = vmatpush3.msra.mxu0 %v12311_v53  ;;  %11504 = vmatpush3.msra.mxu1 %v15098_v39 }
 0x833   : > { %11459 = vmatprep.subr.mxu0 %v12336_v59  ;;  %11505 = vmatprep.subr.mxu1 %v15099_v18 }
 0x834   : > { %11460 = vmatpush3.msra.mxu0 %v12336_v59  ;;  %11506 = vmatpush3.msra.mxu1 %v15099_v18 }
 0x835   : > { %11461 = vmatprep.subr.mxu0 %v12373_v1  ;;  %11507 = vmatprep.subr.mxu1 %v15100_v24 }
 0x836   : > { %11462 = vmatpush3.msra.mxu0 %v12373_v1  ;;  %11508 = vmatpush3.msra.mxu1 %v15100_v24 }
 0x837   : > { %11463 = vmatprep.subr.mxu0 %v12391_v28  ;;  %11553 = vmatprep.subr.mxu1 %v12191_v6 }
 0x838   : > { %11464 = vmatpush3.msra.mxu0 %v12391_v28 }
 0x839   : > { %11465 = vmatprep.subr.mxu0 %v12413_v40 }
 0x83a   : > { %11466 = vmatpush3.msra.mxu0 %v12413_v40 }
 0x83b   : > { %11467 = vmatprep.subr.mxu0 %v12433_v55 }
 0x83c   : > { %11468 = vmatpush3.msra.mxu0 %v12433_v55 }
 0x83d   : > { %11469 = vmatprep.subr.mxu0 %v12452_v29 }
 0x83e   : > { %11470 = vmatpush3.msra.mxu0 %v12452_v29 }
 0x83f   : > { %11515 = vmatprep.subr.mxu0 %v12211_v11 }
 0x8c5   : > { %v11403_v27 = vpop.f32.mrf.mxu1 }
 0x8c7   : > { %v6045_v21 = vpop.f32.mrf.mxu1 }
 0x8c9   : > { %v11406_v56 = vpop.f32.mrf.mxu1 }
 0x8cb   : > { %v6057_v0 = vpop.f32.mrf.mxu1 }
 0x8cd   : > { %v11395_v61 = vpop.f32.mrf.mxu0  ;;  %v11419_v48 = vpop.f32.mrf.mxu1 }
 0x8ce   : > { %v6052_v2 = vadd.f32 %v11403_v27, %v11395_v61 }
 0x8cf   : > { %v5939_v15 = vpop.f32.mrf.mxu0  ;;  %v6232_v60 = vpop.f32.mrf.mxu1 }
 0x8d0   : > { %v6046_v46 = vadd.f32 %v6045_v21, %v5939_v15 }
 0x8d1   : > { %v11398_v57 = vpop.f32.mrf.mxu0  ;;  %v11422_v3 = vpop.f32.mrf.mxu1 }
 0x8d2   : > { %v6064_v30 = vadd.f32 %v11406_v56, %v11398_v57 }
 0x8d3   : > { %v5959_v45 = vpop.f32.mrf.mxu0  ;;  %v6248_v43 = vpop.f32.mrf.mxu1 }
 0x8d4   : > { %v6058_v13 = vadd.f32 %v6057_v0, %v5959_v45 }
 0x8d5   : > { %v11411_v4 = vpop.f32.mrf.mxu0  ;;  %v11435_v51 = vpop.f32.mrf.mxu1 }
 0x8d6   : > { %v6145_v35 = vadd.f32 %v11411_v4, %v6052_v2 }
 0x8d7   : > { %v6137_v62 = vpop.f32.mrf.mxu0  ;;  %v6420_v18 = vpop.f32.mrf.mxu1 }
 0x8d8   : > { %v6138_v36 = vadd.f32 %v6137_v62, %v6046_v46  ;;  %v6241_v24 = vadd.f32 %v11419_v48, %v6145_v35  ;;  %v15106_v46 = vld [vmem:[#allocation25_spill] sm:$0xff] }
 0x8d9   : > { %v11414_v23 = vpop.f32.mrf.mxu0  ;;  %v11438_v61 = vpop.f32.mrf.mxu1 }
 0x8da   : > { %v6159_v34 = vadd.f32 %v11414_v23, %v6064_v30  ;;  %v6233_v32 = vadd.f32 %v6232_v60, %v6138_v36  ;;  %v15102_v60 = vld [vmem:[#allocation3_spill] sm:$0xff]  ;;  %v15108_v30 = vld [vmem:[#allocation54_spill] sm:$0xff] }
 0x8db   : > { %v6151_v49 = vpop.f32.mrf.mxu0 }
 0x8dc   : > { %v6152_v42 = vadd.f32 %v6151_v49, %v6058_v13  ;;  %v6257_v27 = vadd.f32 %v11422_v3, %v6159_v34  ;;  %v15105_v3 = vld [vmem:[#allocation20_spill] sm:$0xff] }
 0x8dd   : > { %v11427_v39 = vpop.f32.mrf.mxu0 }
 0x8de   : > { %v6337_v22 = vadd.f32 %v11427_v39, %v6241_v24  ;;  %v6249_v57 = vadd.f32 %v6248_v43, %v6152_v42  ;;  %v6432_v39 = vpop.f32.mrf.mxu1  ;;  %v15104_v42 = vld [vmem:[#allocation17_spill] sm:$0xff] }
 0x8df   : > { %v6330_v38 = vpop.f32.mrf.mxu0 }
 0x8e0   : > { %v6427_v33 = vadd.f32 %v11435_v51, %v6337_v22  ;;  %v6331_v7 = vadd.f32 %v6330_v38, %v6233_v32  ;;  %v15101_v22 = vld [vmem:[#allocation2_spill] sm:$0xff]  ;;  %v15107_v51 = vld [vmem:[#allocation53_spill] sm:$0xff] }
 0x8e1   : > { %v11430_v21 = vpop.f32.mrf.mxu0 }
 0x8e2   : > { %v6443_v15 = vsub.f32 %v6427_v33, %v13526_v52  ;;  %v6421_v4 = vadd.f32 %v6420_v18, %v6331_v7  ;;  %v6349_v56 = vadd.f32 %v11430_v21, %v6257_v27  ;;  %v15103_v7 = vld [vmem:[#allocation14_spill] sm:$0xff]  ;;  %v15109_v27 = vld [vmem:[#allocation55_spill] sm:$0xff]  ;;  %v15110_v21 = vld [vmem:[#allocation56_spill] sm:$0xff] }
 0x8e3   : > { %v6342_v2 = vpop.f32.mrf.mxu0 }
 0x8e4   : > { %v6447_v0 = vmul.f32 %v13532_v58, %v6443_v15  ;;  %v6442_v48 = vsub.f32 %v6421_v4, %v13538_v54  ;;  %v6439_v45 = vadd.f32 %v11438_v61, %v6349_v56  ;;  %v6343_v62 = vadd.f32 %v6342_v2, %v6249_v57  ;;  %v15111_v4 = vld [vmem:[#allocation57_spill] sm:$0xff] }
 0x8e6   : > { %v6446_v24 = vmul.f32 %v13544_v10, %v6442_v48  ;;  %v6445_v38 = vsub.f32 %v6439_v45, %v15101_v22  ;;  %v6433_v32 = vadd.f32 %v6432_v39, %v6343_v62  ;;  %12033 = vtanh.f32 %v6447_v0  ;;  %v15112_v0 = vld [vmem:[#allocation60_spill] sm:$0xff] }
 0x8e8   : > { %12035 = vtanh.f32 %v6446_v24  ;;  %v6449_v52 = vmul.f32 %v15102_v60, %v6445_v38  ;;  %v6444_v33 = vsub.f32 %v6433_v32, %v15103_v7 }
 0x8ea   : > { %v6448_v18 = vmul.f32 %v15104_v42, %v6444_v33  ;;  %12037 = vtanh.f32 %v6449_v52  ;;  %v15113_v33 = vld [vmem:[#allocation58_spill] sm:$0xff] }
 0x8ec   : > { %12039 = vtanh.f32 %v6448_v18 }
 0x8f3   : > { %v12034_v58 = vpop.eup %12033 }
 0x8f4   : > { %v6455_v23 = vmul.f32 %v15107_v51, %v12034_v58  ;;  %v6468_v36 = vmul.f32 %v15108_v30, %v12034_v58  ;;  %v15116_v51 = vld [vmem:[#allocation59_spill] sm:$0xff] }
 0x8f5   : > { %v12036_v54 = vpop.eup %12035 }
 0x8f6   : > { %v6454_v43 = vmul.f32 %v15105_v3, %v12036_v54  ;;  %v6467_v35 = vmul.f32 %v15106_v46, %v12036_v54  ;;  %v15115_v46 = vld [vmem:[#allocation61_spill] sm:$0xff] }
 0x8f7   : > { %v12038_v10 = vpop.eup %12037 }
 0x8f8   : > { %v6458_v13 = vadd.f32 %v6455_v23, %v6454_v43  ;;  %v6471_v34 = vadd.f32 %v6468_v36, %v6467_v35  ;;  %v6470_v56 = vmul.f32 %v15111_v4, %v12038_v10  ;;  %v6457_v48 = vmul.f32 %v15112_v0, %v12038_v10  ;;  %v15114_v43 = vld [vmem:[#allocation62_spill] sm:$0xff]  ;;  %v13934_v4 = vld [vmem:[%s14544_s5 + $0x10] sm:$0xff] }
 0x8f9   : > { %v12040_v49 = vpop.eup %12039  ;;  %v6480_v35 = vmul.f32 %v15115_v46, %v15114_v43  ;;  %15120 = vst [vmem:[#allocation28_spill] sm:$0xff] %v13934_v4 }
 0x8fa   : > { %v6456_v61 = vmul.f32 %v15109_v27, %v12040_v49  ;;  %v6469_v15 = vmul.f32 %v15110_v21, %v12040_v49  ;;  %v15118_v27 = vld [vmem:[#allocation31_spill] sm:$0xff] }
 0x8fb   : > { %v6481_v23 = vadd.f32 %v6480_v35, %v15116_v51  ;;  %v15119_v21 = vld [vmem:[#allocation63_spill] sm:$0xff]  ;;  %v15122_v35 = vld [vmem:[#allocation4_spill] sm:$0xff] }
 0x8fc   : > { %v6459_v57 = vadd.f32 %v6458_v13, %v6456_v61  ;;  %v6472_v2 = vadd.f32 %v6471_v34, %v6469_v15  ;;  %v15117_v13 = vld [vmem:[#allocation23_spill] sm:$0xff] }
 0x8fe   : > { %v6473_v45 = vadd.f32 %v6472_v2, %v6470_v56  ;;  %v6460_v62 = vadd.f32 %v6459_v57, %v6457_v48  ;;  %v13940_v57 = vld [vmem:[%s14544_s5 + $0x18] sm:$0xff] }
 0x8ff   : > { %15121 = vst [vmem:[#allocation34_spill] sm:$0xff] %v13940_v57 }
 0x900   : > { %v6474_v39 = vrot.slane %v6473_v45, 4  ;;  %v6461_v22 = vrot.slane %v6460_v62, 4 }
 0x902   : > { %v6475_v24 = vadd.f32 %v6474_v39, %v6473_v45  ;;  %v6462_v60 = vadd.f32 %v6461_v22, %v6460_v62 }
 0x904   : > { %v6476_v38 = vrot.slane %v6475_v24, 2  ;;  %v6463_v18 = vrot.slane %v6462_v60, 2 }
 0x906   : > { %v6477_v32 = vadd.f32 %v6476_v38, %v6475_v24  ;;  %v6464_v54 = vadd.f32 %v6463_v18, %v6462_v60 }
 0x908   : > { %v6478_v52 = vrot.slane %v6477_v32, 1  ;;  %v6465_v3 = vrot.slane %v6464_v54, 1 }
 0x90a   : > { %v6479_v7 = vadd.f32 %v6478_v52, %v6477_v32  ;;  %v6466_v10 = vadd.f32 %v6465_v3, %v6464_v54 }
 0x90c   : > { %v6483_v42 = vadd.f32 %v6479_v7, %v15113_v33  ;;  %v6482_v30 = vadd.f32 %v6481_v23, %v6466_v10  ;;  %v15123_v23 = vld [vmem:[#allocation6_spill] sm:$0xff] }
 0x90e   : > { %v6485_v58 = vrot.slane %v6483_v42, 2 }
 0x910   : > { %12041 = vrcp.f32 %v6485_v58 }
 0x91d   : > { %v12042_v36 = vpop.eup %12041 }
 0x91e   : > { %v13925_v49 = vmul.f32 %v12042_v36, %v6482_v30  ;;  %v15124_v30 = vld [vmem:[#allocation8_spill] sm:$0xff]  ;;  %v15125_v36 = vld [vmem:[#allocation11_spill] sm:$0xff] }
 0x920   : > { %v6492_v34 = vrot.slane %v13925_v49, %v15117_v13 }
 0x922   : > { %v6493_v61 = vmul.f32 %v15118_v27, %v6492_v34  ;;  %v6494_v15 = vmul.f32 %v15119_v21, %v6492_v34  ;;  %v6495_v56 = vmul.f32 %v13934_v4, %v6492_v34  ;;  %v6496_v2 = vmul.f32 %v13940_v57, %v6492_v34  ;;  %v15126_v34 = vld [vmem:[#allocation13_spill] sm:$0xff]  ;;  %v15127_v27 = vld [vmem:[#allocation16_spill] sm:$0xff]  ;;  %v15129_v21 = vld [vmem:[#allocation22_spill] sm:$0xff] }
 0x924   : > { %v13943_v0 = vand.u32 4294901760, %v6493_v61  ;;  %v13945_v48 = vand.u32 4294901760, %v6494_v15  ;;  %v13947_v45 = vand.u32 4294901760, %v6495_v56  ;;  %v13949_v62 = vand.u32 4294901760, %v6496_v2 }
 0x926   : > { %11509 = vmatprep.mubr.f32.mxu1 %v13943_v0  ;;  %v13953_v39 = vsub.f32 %v6494_v15, %v13945_v48  ;;  %v6579_v24 = vsub.f32 %v6493_v61, %v13943_v0  ;;  %v13957_v22 = vsub.f32 %v6495_v56, %v13947_v45  ;;  %v13960_v38 = vsub.f32 %v6496_v2, %v13949_v62  ;;  %v15128_v61 = vld [vmem:[#allocation19_spill] sm:$0xff]  ;;  %v15130_v15 = vld [vmem:[#allocation24_spill] sm:$0xff] }
 0x927   : > { %11510 = vmatmul.mubr.f32.vlgmr.msra.gmra.mxu1 %v13945_v48  ;;  %v15131_v56 = vld [vmem:[#allocation27_spill] sm:$0xff]  ;;  %v15132_v2 = vld [vmem:[#allocation32_spill] sm:$0xff] }
 0x928   : > { %11554 = vmatpush3.msra.mxu1 %v12191_v6  ;;  %11512 = vmatprep.mubr.f32.mxu1 %v13947_v45  ;;  %v6580_v32 = vand.u32 4294901760, %v6579_v24  ;;  %v6590_v60 = vand.u32 4294901760, %v13953_v39  ;;  %v6600_v52 = vand.u32 4294901760, %v13957_v22  ;;  %v6610_v18 = vand.u32 4294901760, %v13960_v38 }
 0x929   : > { %11555 = vmatprep.subr.mxu1 %v12201_v9 }
 0x92a   : > { %11556 = vmatpush3.msra.mxu1 %v12201_v9  ;;  %v6581_v7 = vsub.f32 %v6579_v24, %v6580_v32  ;;  %v6591_v42 = vsub.f32 %v13953_v39, %v6590_v60  ;;  %v6601_v58 = vsub.f32 %v13957_v22, %v6600_v52  ;;  %v6611_v43 = vsub.f32 %v13960_v38, %v6610_v18 }
 0x92b   : > { %11557 = vmatprep.subr.mxu1 %v12213_v12  ;;  %11513 = vmatmul.mubr.f32.gmra.mxu1 %v13949_v62 }
 0x92c   : > { %11558 = vmatpush3.msra.mxu1 %v12213_v12  ;;  %11585 = vmatprep.mubr.f32.mxu1 %v6580_v32  ;;  %v6582_v54 = vand.u32 4294901760, %v6581_v7  ;;  %v6592_v3 = vand.u32 4294901760, %v6591_v42  ;;  %v6602_v46 = vand.u32 4294901760, %v6601_v58  ;;  %v6612_v10 = vand.u32 4294901760, %v6611_v43  ;;  %v15134_v32 = vld [vmem:[#allocation38_spill] sm:$0xff]  ;;  %v15135_v7 = vld [vmem:[#allocation41_spill] sm:$0xff] }
 0x92d   : > { %11559 = vmatprep.subr.mxu1 %v12219_v16  ;;  %v15138_v42 = vld [vmem:[#allocation9_spill] sm:$0xff]  ;;  %v15144_v58 = vld [vmem:[#allocation26_spill] sm:$0xff] }
 0x92e   : > { %11560 = vmatpush3.msra.mxu1 %v12219_v16  ;;  %11471 = vmatprep.mubr.f32.mxu0 %v6582_v54  ;;  %v15145_v54 = vld [vmem:[#allocation29_spill] sm:$0xff] }
 0x92f   : > { %11561 = vmatprep.subr.mxu1 %v12243_v26  ;;  %11472 = vmatmul.mubr.f32.vlgmr.msra.gmra.mxu0 %v6592_v3  ;;  %v15146_v3 = vld [vmem:[#allocation30_spill] sm:$0xff]  ;;  %v15147_v43 = vld [vmem:[#allocation33_spill] sm:$0xff] }
 0x930   : > { %11516 = vmatpush3.msra.mxu0 %v12211_v11  ;;  %11562 = vmatpush3.msra.mxu1 %v12243_v26 }
 0x931   : > { %11474 = vmatprep.mubr.f32.mxu0 %v6602_v46  ;;  %11517 = vmatprep.subr.mxu0 %v15122_v35  ;;  %v15148_v46 = vld [vmem:[#allocation37_spill] sm:$0xff] }
 0x932   : > { %11563 = vmatprep.subr.mxu1 %v12255_v31  ;;  %11518 = vmatpush3.msra.mxu0 %v15122_v35 }
 0x933   : > { %11564 = vmatpush3.msra.mxu1 %v12255_v31  ;;  %11519 = vmatprep.subr.mxu0 %v15123_v23 }
 0x934   : > { %11565 = vmatprep.subr.mxu1 %v12273_v37  ;;  %11475 = vmatmul.mubr.f32.gmra.mxu0 %v6612_v10  ;;  %v15149_v10 = vld [vmem:[#allocation40_spill] sm:$0xff] }
 0x935   : > { %11520 = vmatpush3.msra.mxu0 %v15123_v23  ;;  %11566 = vmatpush3.msra.mxu1 %v12273_v37 }
 0x936   : > { %11521 = vmatprep.subr.mxu0 %v15124_v30  ;;  %11547 = vmatprep.mubr.f32.mxu0 %v6579_v24  ;;  %v15133_v24 = vld [vmem:[#allocation35_spill] sm:$0xff] }
 0x937   : > { %11567 = vmatprep.subr.mxu1 %v12287_v44  ;;  %11522 = vmatpush3.msra.mxu0 %v15124_v30 }
 0x938   : > { %11568 = vmatpush3.msra.mxu1 %v12287_v44  ;;  %11523 = vmatprep.subr.mxu0 %v15125_v36 }
 0x939   : > { %11569 = vmatprep.subr.mxu1 %v12303_v50  ;;  %11524 = vmatpush3.msra.mxu0 %v15125_v36 }
 0x93a   : > { %11570 = vmatpush3.msra.mxu1 %v12303_v50  ;;  %11525 = vmatprep.subr.mxu0 %v15126_v34 }
 0x93b   : > { %11571 = vmatprep.subr.mxu1 %v12311_v53  ;;  %11526 = vmatpush3.msra.mxu0 %v15126_v34 }
 0x93c   : > { %11572 = vmatpush3.msra.mxu1 %v12311_v53  ;;  %11527 = vmatprep.subr.mxu0 %v15127_v27 }
 0x93d   : > { %11573 = vmatprep.subr.mxu1 %v12336_v59  ;;  %11528 = vmatpush3.msra.mxu0 %v15127_v27 }
 0x93e   : > { %11574 = vmatpush3.msra.mxu1 %v12336_v59  ;;  %11529 = vmatprep.subr.mxu0 %v15128_v61 }
 0x93f   : > { %11575 = vmatprep.subr.mxu1 %v12373_v1  ;;  %11530 = vmatpush3.msra.mxu0 %v15128_v61 }
 0x940   : > { %11576 = vmatpush3.msra.mxu1 %v12373_v1  ;;  %11531 = vmatprep.subr.mxu0 %v15129_v21 }
 0x941   : > { %11577 = vmatprep.subr.mxu1 %v12391_v28  ;;  %11532 = vmatpush3.msra.mxu0 %v15129_v21 }
 0x942   : > { %11578 = vmatpush3.msra.mxu1 %v12391_v28  ;;  %11533 = vmatprep.subr.mxu0 %v15130_v15 }
 0x943   : > { %11579 = vmatprep.subr.mxu1 %v12413_v40  ;;  %11534 = vmatpush3.msra.mxu0 %v15130_v15 }
 0x944   : > { %11580 = vmatpush3.msra.mxu1 %v12413_v40  ;;  %11535 = vmatprep.subr.mxu0 %v15131_v56 }
 0x945   : > { %11581 = vmatprep.subr.mxu1 %v12433_v55  ;;  %11536 = vmatpush3.msra.mxu0 %v15131_v56 }
 0x946   : > { %11582 = vmatpush3.msra.mxu1 %v12433_v55  ;;  %11537 = vmatprep.subr.mxu0 %v15132_v2 }
 0x947   : > { %11583 = vmatprep.subr.mxu1 %v12452_v29  ;;  %11538 = vmatpush3.msra.mxu0 %v15132_v2 }
 0x948   : > { %11584 = vmatpush3.msra.mxu1 %v12452_v29  ;;  %11539 = vmatprep.subr.mxu0 %v15133_v24 }
 0x949   : > { %11586 = vmatmul.mubr.f32.vlgmr.msra.gmra.mxu1 %v6590_v60  ;;  %11629 = vmatprep.subr.mxu1 %v12191_v6  ;;  %v15136_v60 = vld [vmem:[#allocation44_spill] sm:$0xff] }
 0x94a   : > { %11540 = vmatpush3.msra.mxu0 %v15133_v24  ;;  %11588 = vmatprep.mubr.f32.mxu1 %v6600_v52  ;;  %v15137_v52 = vld [vmem:[#allocation5_spill] sm:$0xff] }
 0x94b   : > { %11630 = vmatpush3.msra.mxu1 %v12191_v6  ;;  %11541 = vmatprep.subr.mxu0 %v15134_v32 }
 0x94c   : > { %11631 = vmatprep.subr.mxu1 %v12201_v9  ;;  %11542 = vmatpush3.msra.mxu0 %v15134_v32 }
 0x94d   : > { %11632 = vmatpush3.msra.mxu1 %v12201_v9  ;;  %11543 = vmatprep.subr.mxu0 %v15135_v7 }
 0x94e   : > { %11589 = vmatmul.mubr.f32.gmra.mxu1 %v6610_v18  ;;  %11633 = vmatprep.subr.mxu1 %v12213_v12  ;;  %v15141_v18 = vld [vmem:[#allocation15_spill] sm:$0xff] }
 0x94f   : > { %11544 = vmatpush3.msra.mxu0 %v15135_v7  ;;  %11634 = vmatpush3.msra.mxu1 %v12213_v12 }
 0x950   : > { %11661 = vmatprep.mubr.f32.mxu1 %v13943_v0  ;;  %11545 = vmatprep.subr.mxu0 %v15136_v60 }
 0x951   : > { %11635 = vmatprep.subr.mxu1 %v12219_v16  ;;  %11546 = vmatpush3.msra.mxu0 %v15136_v60 }
 0x952   : > { %11636 = vmatpush3.msra.mxu1 %v12219_v16  ;;  %11548 = vmatmul.mubr.f32.vlgmr.msra.gmra.mxu0 %v13953_v39  ;;  %v15139_v39 = vld [vmem:[#allocation10_spill] sm:$0xff] }
 0x953   : > { %11591 = vmatprep.subr.mxu0 %v15137_v52  ;;  %11637 = vmatprep.subr.mxu1 %v12243_v26 }
 0x954   : > { %11550 = vmatprep.mubr.f32.mxu0 %v13957_v22  ;;  %11592 = vmatpush3.msra.mxu0 %v15137_v52  ;;  %v15140_v22 = vld [vmem:[#allocation12_spill] sm:$0xff] }
 0x955   : > { %11638 = vmatpush3.msra.mxu1 %v12243_v26  ;;  %11593 = vmatprep.subr.mxu0 %v15138_v42 }
 0x956   : > { %11639 = vmatprep.subr.mxu1 %v12255_v31  ;;  %11594 = vmatpush3.msra.mxu0 %v15138_v42 }
 0x957   : > { %11640 = vmatpush3.msra.mxu1 %v12255_v31  ;;  %11551 = vmatmul.mubr.f32.gmra.mxu0 %v13960_v38  ;;  %v15142_v38 = vld [vmem:[#allocation18_spill] sm:$0xff] }
 0x958   : > { %11595 = vmatprep.subr.mxu0 %v15139_v39  ;;  %11641 = vmatprep.subr.mxu1 %v12273_v37 }
 0x959   : > { %11596 = vmatpush3.msra.mxu0 %v15139_v39  ;;  %11623 = vmatprep.mubr.f32.mxu0 %v13943_v0  ;;  %v15143_v0 = vld [vmem:[#allocation21_spill] sm:$0xff] }
 0x95a   : > { %11642 = vmatpush3.msra.mxu1 %v12273_v37  ;;  %11597 = vmatprep.subr.mxu0 %v15140_v22 }
 0x95b   : > { %11643 = vmatprep.subr.mxu1 %v12287_v44  ;;  %11598 = vmatpush3.msra.mxu0 %v15140_v22 }
 0x95c   : > { %11644 = vmatpush3.msra.mxu1 %v12287_v44  ;;  %11599 = vmatprep.subr.mxu0 %v15141_v18 }
 0x95d   : > { %11645 = vmatprep.subr.mxu1 %v12303_v50  ;;  %11600 = vmatpush3.msra.mxu0 %v15141_v18 }
 0x95e   : > { %11646 = vmatpush3.msra.mxu1 %v12303_v50  ;;  %11601 = vmatprep.subr.mxu0 %v15142_v38 }
 0x95f   : > { %11647 = vmatprep.subr.mxu1 %v12311_v53  ;;  %11602 = vmatpush3.msra.mxu0 %v15142_v38 }
 0x960   : > { %11648 = vmatpush3.msra.mxu1 %v12311_v53  ;;  %11603 = vmatprep.subr.mxu0 %v15143_v0 }
 0x961   : > { %11649 = vmatprep.subr.mxu1 %v12336_v59  ;;  %11604 = vmatpush3.msra.mxu0 %v15143_v0 }
 0x962   : > { %11650 = vmatpush3.msra.mxu1 %v12336_v59  ;;  %11605 = vmatprep.subr.mxu0 %v15144_v58 }
 0x963   : > { %11651 = vmatprep.subr.mxu1 %v12373_v1  ;;  %11606 = vmatpush3.msra.mxu0 %v15144_v58 }
 0x964   : > { %11652 = vmatpush3.msra.mxu1 %v12373_v1  ;;  %11607 = vmatprep.subr.mxu0 %v15145_v54 }
 0x965   : > { %11653 = vmatprep.subr.mxu1 %v12391_v28  ;;  %11608 = vmatpush3.msra.mxu0 %v15145_v54  ;;  %v15152_v54 = vld [vmem:[#allocation46_spill] sm:$0xff] }
 0x966   : > { %11654 = vmatpush3.msra.mxu1 %v12391_v28  ;;  %11609 = vmatprep.subr.mxu0 %v15146_v3 }
 0x967   : > { %11655 = vmatprep.subr.mxu1 %v12413_v40  ;;  %11610 = vmatpush3.msra.mxu0 %v15146_v3  ;;  %v15150_v3 = vld [vmem:[#allocation43_spill] sm:$0xff] }
 0x968   : > { %11656 = vmatpush3.msra.mxu1 %v12413_v40  ;;  %11611 = vmatprep.subr.mxu0 %v15147_v43 }
 0x969   : > { %11657 = vmatprep.subr.mxu1 %v12433_v55  ;;  %11612 = vmatpush3.msra.mxu0 %v15147_v43  ;;  %v15151_v43 = vld [vmem:[#allocation7_spill] sm:$0xff] }
 0x96a   : > { %11658 = vmatpush3.msra.mxu1 %v12433_v55  ;;  %11613 = vmatprep.subr.mxu0 %v15148_v46 }
 0x96b   : > { %11659 = vmatprep.subr.mxu1 %v12452_v29  ;;  %11614 = vmatpush3.msra.mxu0 %v15148_v46  ;;  %v15153_v46 = vld [vmem:[#allocation48_spill] sm:$0xff] }
 0x96c   : > { %11660 = vmatpush3.msra.mxu1 %v12452_v29  ;;  %11615 = vmatprep.subr.mxu0 %v15149_v10 }
 0x96d   : > { %11662 = vmatmul.mubr.f32.vlgmr.msra.gmra.mxu1 %v13945_v48  ;;  %11616 = vmatpush3.msra.mxu0 %v15149_v10 }
 0x96e   : > { %11664 = vmatprep.mubr.f32.mxu1 %v13947_v45  ;;  %11617 = vmatprep.subr.mxu0 %v15150_v3 }
 0x96f   : > { %11618 = vmatpush3.msra.mxu0 %v15150_v3  ;;  %11675 = vmatprep.subr.mxu1 %v15151_v43 }
 0x970   : > { %11619 = vmatprep.subr.mxu0 %v15152_v54  ;;  %11676 = vmatpush3.msra.mxu1 %v15151_v43 }
 0x971   : > { %11665 = vmatmul.mubr.f32.gmra.mxu1 %v13949_v62  ;;  %11620 = vmatpush3.msra.mxu0 %v15152_v54 }
 0x972   : > { %11621 = vmatprep.subr.mxu0 %v15153_v46  ;;  %11691 = vmatprep.subr.mxu1 %v12183_v5 }
 0x973   : > { %11622 = vmatpush3.msra.mxu0 %v15153_v46 }
 0x974   : > { %11624 = vmatmul.mubr.f32.vlgmr.msra.gmra.mxu0 %v13945_v48  ;;  %11667 = vmatprep.subr.mxu0 %v12183_v5 }
 0x975   : > { %11626 = vmatprep.mubr.f32.mxu0 %v13947_v45  ;;  %11668 = vmatpush3.msra.mxu0 %v12183_v5 }
 0x976   : > { %11683 = vmatprep.subr.mxu0 %v14908_v8 }
 0x978   : > { %11627 = vmatmul.mubr.f32.gmra.mxu0 %v13949_v62 }
 0x9e7   : > { %v11511_v43 = vpop.f32.mrf.mxu1 }
 0x9e9   : > { %v6765_v54 = vpop.f32.mrf.mxu1 }
 0x9eb   : > { %v11514_v10 = vpop.f32.mrf.mxu1 }
 0x9ed   : > { %v6777_v0 = vpop.f32.mrf.mxu1 }
 0x9ef   : > { %v11473_v3 = vpop.f32.mrf.mxu0 }
 0x9f0   : > { %v6772_v45 = vadd.f32 %v11511_v43, %v11473_v3 }
 0x9f1   : > { %v6584_v58 = vpop.f32.mrf.mxu0 }
 0x9f2   : > { %v6766_v7 = vadd.f32 %v6765_v54, %v6584_v58 }
 0x9f4   : > { %v11476_v38 = vpop.f32.mrf.mxu0 }
 0x9f5   : > { %v6784_v62 = vadd.f32 %v11514_v10, %v11476_v38 }
 0x9f6   : > { %v6604_v18 = vpop.f32.mrf.mxu0 }
 0x9f7   : > { %v6778_v15 = vadd.f32 %v6777_v0, %v6604_v18 }
 0xa09   : > { %v11587_v46 = vpop.f32.mrf.mxu1 }
 0xa0b   : > { %v6997_v48 = vpop.f32.mrf.mxu1 }
 0xa0e   : > { %v11590_v39 = vpop.f32.mrf.mxu1 }
 0xa10   : > { %v7013_v52 = vpop.f32.mrf.mxu1 }
 0xa12   : > { %v11549_v22 = vpop.f32.mrf.mxu0 }
 0xa13   : > { %v6895_v32 = vadd.f32 %v11549_v22, %v6772_v45 }
 0xa14   : > { %v6887_v42 = vpop.f32.mrf.mxu0 }
 0xa15   : > { %v6888_v2 = vadd.f32 %v6887_v42, %v6766_v7  ;;  %v7006_v61 = vadd.f32 %v11587_v46, %v6895_v32 }
 0xa17   : > { %v11552_v60 = vpop.f32.mrf.mxu0  ;;  %v6998_v23 = vadd.f32 %v6997_v48, %v6888_v2 }
 0xa18   : > { %v6909_v21 = vadd.f32 %v11552_v60, %v6784_v62 }
 0xa19   : > { %v6901_v56 = vpop.f32.mrf.mxu0 }
 0xa1a   : > { %v6902_v36 = vadd.f32 %v6901_v56, %v6778_v15  ;;  %v7022_v3 = vadd.f32 %v11590_v39, %v6909_v21 }
 0xa1c   : > { %v7014_v7 = vadd.f32 %v7013_v52, %v6902_v36 }
 0xa2d   : > { %v11663_v24 = vpop.f32.mrf.mxu1 }
 0xa2f   : > { %v7245_v27 = vpop.f32.mrf.mxu1 }
 0xa31   : > { %v11666_v43 = vpop.f32.mrf.mxu1 }
 0xa33   : > { %v7257_v15 = vpop.f32.mrf.mxu1 }
 0xa34   : > { %v11625_v34 = vpop.f32.mrf.mxu0 }
 0xa35   : > { %v7147_v30 = vadd.f32 %v11625_v34, %v7006_v61 }
 0xa36   : > { %v7140_v35 = vpop.f32.mrf.mxu0 }
 0xa37   : > { %v7252_v57 = vadd.f32 %v11663_v24, %v7147_v30  ;;  %v7141_v4 = vadd.f32 %v7140_v35, %v6998_v23 }
 0xa38   : > { %v11628_v13 = vpop.f32.mrf.mxu0 }
 0xa39   : > { %v7271_v22 = vsel %vm316_vm2, %v7252_v57, 0  ;;  %v7246_v58 = vadd.f32 %v7245_v27, %v7141_v4  ;;  %v7159_v38 = vadd.f32 %v11628_v13, %v7022_v3  ;;  %v15161_v3 = vld [vmem:[#allocation51_spill] sm:$0xff] }
 0xa3a   : > { %v7355_v42 = vand.u32 4294901760, %v7271_v22  ;;  %v7152_v18 = vpop.f32.mrf.mxu0 }
 0xa3b   : > { %v7268_v32 = vsel %vm316_vm2, %v7246_v58, 0  ;;  %v7264_v60 = vadd.f32 %v11666_v43, %v7159_v38  ;;  %v7153_v0 = vadd.f32 %v7152_v18, %v7014_v7  ;;  %v15162_v43 = vld [vmem:[#allocation52_spill] sm:$0xff] }
 0xa3c   : > { %v7356_v34 = vsub.f32 %v7271_v22, %v7355_v42  ;;  %v7345_v61 = vand.u32 4294901760, %v7268_v32 }
 0xa3d   : > { %v7277_v30 = vsel %vm316_vm2, %v7264_v60, 0  ;;  %v7258_v35 = vadd.f32 %v7257_v15, %v7153_v0 }
 0xa3e   : > { %v7357_v23 = vand.u32 4294901760, %v7356_v34  ;;  %v7346_v21 = vsub.f32 %v7268_v32, %v7345_v61  ;;  %v7375_v56 = vand.u32 4294901760, %v7277_v30  ;;  %11677 = vmatprep.mubr.f32.mxu1 %v7345_v61 }
 0xa3f   : > { %v7274_v4 = vsel %vm316_vm2, %v7258_v35, 0  ;;  %11678 = vmatmul.mubr.f32.vlgmr.msra.gmra.mxu1 %v7355_v42 }
 0xa40   : > { %v7376_v13 = vsub.f32 %v7277_v30, %v7375_v56  ;;  %v7365_v57 = vand.u32 4294901760, %v7274_v4  ;;  %v7347_v36 = vand.u32 4294901760, %v7346_v21  ;;  %11692 = vmatpush3.msra.mxu1 %v12183_v5  ;;  %v7358_v27 = vsub.f32 %v7356_v34, %v7357_v23 }
 0xa41   : > { %11707 = vmatprep.subr.mxu1 %v12183_v5 }
 0xa42   : > { %v7366_v2 = vsub.f32 %v7274_v4, %v7365_v57  ;;  %11680 = vmatprep.mubr.f32.mxu1 %v7365_v57  ;;  %v7348_v24 = vsub.f32 %v7346_v21, %v7347_v36  ;;  %v7377_v52 = vand.u32 4294901760, %v7376_v13  ;;  %v7359_v46 = vand.u32 4294901760, %v7358_v27 }
 0xa43   : > { %11681 = vmatmul.mubr.f32.gmra.mxu1 %v7375_v56 }
 0xa44   : > { %11693 = vmatprep.mubr.f32.mxu1 %v7347_v36  ;;  %v7349_v39 = vand.u32 4294901760, %v7348_v24  ;;  %v7367_v54 = vand.u32 4294901760, %v7366_v2  ;;  %v7378_v10 = vsub.f32 %v7376_v13, %v7377_v52 }
 0xa46   : > { %11669 = vmatprep.mubr.f32.mxu0 %v7349_v39  ;;  %v7368_v48 = vsub.f32 %v7366_v2, %v7367_v54  ;;  %v7379_v62 = vand.u32 4294901760, %v7378_v10 }
 0xa47   : > { %11670 = vmatmul.mubr.f32.vlgmr.msra.gmra.mxu0 %v7359_v46  ;;  %11694 = vmatmul.mubr.f32.vlgmr.msra.gmra.mxu1 %v7357_v23 }
 0xa48   : > { %11684 = vmatpush3.msra.mxu0 %v14908_v8  ;;  %11696 = vmatprep.mubr.f32.mxu1 %v7367_v54  ;;  %v7369_v45 = vand.u32 4294901760, %v7368_v48 }
 0xa49   : > { %11699 = vmatprep.subr.mxu0 %v14909_v41  ;;  %11708 = vmatpush3.msra.mxu1 %v12183_v5 }
 0xa4a   : > { %11672 = vmatprep.mubr.f32.mxu0 %v7369_v45  ;;  %11753 = vmatprep.subr.mxu1 %v14910_v63 }
 0xa4b   : > { %11673 = vmatmul.mubr.f32.gmra.mxu0 %v7379_v62  ;;  %11697 = vmatmul.mubr.f32.gmra.mxu1 %v7377_v52 }
 0xa4c   : > { %11685 = vmatprep.mubr.f32.mxu0 %v7346_v21  ;;  %11709 = vmatprep.mubr.f32.mxu1 %v7345_v61 }
 0xa4f   : > { %11686 = vmatmul.mubr.f32.vlgmr.msra.gmra.mxu0 %v7356_v34  ;;  %11710 = vmatmul.mubr.f32.vlgmr.msra.gmra.mxu1 %v7355_v42 }
 0xa50   : > { %11700 = vmatpush3.msra.mxu0 %v14909_v41  ;;  %11688 = vmatprep.mubr.f32.mxu0 %v7366_v2 }
 0xa51   : > { %11712 = vmatprep.mubr.f32.mxu1 %v7365_v57  ;;  %11754 = vmatpush3.msra.mxu1 %v14910_v63  ;;  %v15154_v63 = vld [vmem:[#allocation36_spill] sm:$0xff] }
 0xa52   : > { %11755 = vmatprep.subr.mxu1 %v14911_v14  ;;  %11715 = vmatprep.subr.mxu0 %v12191_v6 }
 0xa53   : > { %11689 = vmatmul.mubr.f32.gmra.mxu0 %v7376_v13  ;;  %11713 = vmatmul.mubr.f32.gmra.mxu1 %v7375_v56 }
 0xa54   : > { %11701 = vmatprep.mubr.f32.mxu0 %v7345_v61  ;;  %11756 = vmatpush3.msra.mxu1 %v14911_v14  ;;  %v15155_v14 = vld [vmem:[#allocation39_spill] sm:$0xff] }
 0xa55   : > { %11757 = vmatprep.subr.mxu1 %v14912_v25 }
 0xa56   : > { %11758 = vmatpush3.msra.mxu1 %v14912_v25  ;;  %v15156_v25 = vld [vmem:[#allocation42_spill] sm:$0xff] }
 0xa57   : > { %11702 = vmatmul.mubr.f32.vlgmr.msra.gmra.mxu0 %v7355_v42  ;;  %11759 = vmatprep.subr.mxu1 %v14913_v19 }
 0xa58   : > { %11704 = vmatprep.mubr.f32.mxu0 %v7365_v57  ;;  %11760 = vmatpush3.msra.mxu1 %v14913_v19  ;;  %v15157_v19 = vld [vmem:[#allocation45_spill] sm:$0xff] }
 0xa59   : > { %11761 = vmatprep.subr.mxu1 %v14966_v47  ;;  %11716 = vmatpush3.msra.mxu0 %v12191_v6 }
 0xa5a   : > { %11762 = vmatpush3.msra.mxu1 %v14966_v47  ;;  %11717 = vmatprep.subr.mxu0 %v12201_v9  ;;  %v15158_v47 = vld [vmem:[#allocation47_spill] sm:$0xff] }
 0xa5b   : > { %11705 = vmatmul.mubr.f32.gmra.mxu0 %v7375_v56  ;;  %11763 = vmatprep.subr.mxu1 %v15028_v20 }
 0xa5c   : > { %11718 = vmatpush3.msra.mxu0 %v12201_v9  ;;  %11764 = vmatpush3.msra.mxu1 %v15028_v20  ;;  %v15159_v20 = vld [vmem:[#allocation49_spill] sm:$0xff] }
 0xa5d   : > { %11719 = vmatprep.subr.mxu0 %v12213_v12  ;;  %11765 = vmatprep.subr.mxu1 %v15091_v17 }
 0xa5e   : > { %11720 = vmatpush3.msra.mxu0 %v12213_v12  ;;  %11766 = vmatpush3.msra.mxu1 %v15091_v17  ;;  %v15160_v17 = vld [vmem:[#allocation50_spill] sm:$0xff] }
 0xa5f   : > { %11721 = vmatprep.subr.mxu0 %v12219_v16  ;;  %11767 = vmatprep.subr.mxu1 %v15154_v63 }
 0xa60   : > { %11722 = vmatpush3.msra.mxu0 %v12219_v16  ;;  %11768 = vmatpush3.msra.mxu1 %v15154_v63 }
 0xa61   : > { %11723 = vmatprep.subr.mxu0 %v12243_v26  ;;  %11769 = vmatprep.subr.mxu1 %v15155_v14 }
 0xa62   : > { %11724 = vmatpush3.msra.mxu0 %v12243_v26  ;;  %11770 = vmatpush3.msra.mxu1 %v15155_v14 }
 0xa63   : > { %11725 = vmatprep.subr.mxu0 %v12255_v31  ;;  %11771 = vmatprep.subr.mxu1 %v15156_v25 }
 0xa64   : > { %11726 = vmatpush3.msra.mxu0 %v12255_v31  ;;  %11772 = vmatpush3.msra.mxu1 %v15156_v25 }
 0xa65   : > { %11727 = vmatprep.subr.mxu0 %v12273_v37  ;;  %11773 = vmatprep.subr.mxu1 %v15157_v19 }
 0xa66   : > { %11728 = vmatpush3.msra.mxu0 %v12273_v37  ;;  %11774 = vmatpush3.msra.mxu1 %v15157_v19 }
 0xa67   : > { %11729 = vmatprep.subr.mxu0 %v12287_v44  ;;  %11775 = vmatprep.subr.mxu1 %v15158_v47 }
 0xa68   : > { %11730 = vmatpush3.msra.mxu0 %v12287_v44  ;;  %11776 = vmatpush3.msra.mxu1 %v15158_v47  ;;  %v14205_v47 = vld [vmem:[%s14542_s3 + $0x8] sm:$0xff] }
 0xa69   : > { %11731 = vmatprep.subr.mxu0 %v12303_v50  ;;  %11777 = vmatprep.subr.mxu1 %v15159_v20 }
 0xa6a   : > { %11732 = vmatpush3.msra.mxu0 %v12303_v50  ;;  %11778 = vmatpush3.msra.mxu1 %v15159_v20 }
 0xa6b   : > { %11733 = vmatprep.subr.mxu0 %v12311_v53  ;;  %11779 = vmatprep.subr.mxu1 %v15160_v17 }
 0xa6c   : > { %11734 = vmatpush3.msra.mxu0 %v12311_v53  ;;  %11780 = vmatpush3.msra.mxu1 %v15160_v17 }
 0xa6d   : > { %11735 = vmatprep.subr.mxu0 %v12336_v59  ;;  %11781 = vmatprep.subr.mxu1 %v15161_v3 }
 0xa6e   : > { %11736 = vmatpush3.msra.mxu0 %v12336_v59  ;;  %11782 = vmatpush3.msra.mxu1 %v15161_v3 }
 0xa6f   : > { %11737 = vmatprep.subr.mxu0 %v12373_v1  ;;  %11783 = vmatprep.subr.mxu1 %v15162_v43 }
 0xa70   : > { %11738 = vmatpush3.msra.mxu0 %v12373_v1  ;;  %11784 = vmatpush3.msra.mxu1 %v15162_v43 }
 0xa71   : > { %11739 = vmatprep.subr.mxu0 %v12391_v28  ;;  %11829 = vmatprep.subr.mxu1 %v12191_v6 }
 0xa72   : > { %11740 = vmatpush3.msra.mxu0 %v12391_v28 }
 0xa73   : > { %11741 = vmatprep.subr.mxu0 %v12413_v40 }
 0xa74   : > { %11742 = vmatpush3.msra.mxu0 %v12413_v40 }
 0xa75   : > { %11743 = vmatprep.subr.mxu0 %v12433_v55 }
 0xa76   : > { %11744 = vmatpush3.msra.mxu0 %v12433_v55 }
 0xa77   : > { %11745 = vmatprep.subr.mxu0 %v12452_v29 }
 0xa78   : > { %11746 = vmatpush3.msra.mxu0 %v12452_v29 }
 0xa79   : > { %11791 = vmatprep.subr.mxu0 %v12211_v11 }
 0xaff   : > { %v11679_v22 = vpop.f32.mrf.mxu1 }
 0xb01   : > { %v7457_v58 = vpop.f32.mrf.mxu1 }
 0xb03   : > { %v11682_v38 = vpop.f32.mrf.mxu1 }
 0xb05   : > { %v7469_v7 = vpop.f32.mrf.mxu1 }
 0xb07   : > { %v11671_v42 = vpop.f32.mrf.mxu0  ;;  %v11695_v18 = vpop.f32.mrf.mxu1 }
 0xb08   : > { %v7464_v35 = vadd.f32 %v11679_v22, %v11671_v42 }
 0xb09   : > { %v7351_v32 = vpop.f32.mrf.mxu0  ;;  %v7644_v60 = vpop.f32.mrf.mxu1 }
 0xb0a   : > { %v7458_v21 = vadd.f32 %v7457_v58, %v7351_v32  ;;  %v14211_v58 = vld [vmem:[%s14542_s3 + $0x28] sm:$0xff] }
 0xb0b   : > { %v11674_v0 = vpop.f32.mrf.mxu0  ;;  %v11698_v15 = vpop.f32.mrf.mxu1 }
 0xb0c   : > { %v7476_v57 = vadd.f32 %v11682_v38, %v11674_v0  ;;  %v14223_v0 = vld [vmem:[%s14542_s3 + $0x20] sm:$0xff] }
 0xb0d   : > { %v7371_v34 = vpop.f32.mrf.mxu0  ;;  %v7660_v61 = vpop.f32.mrf.mxu1 }
 0xb0e   : > { %v7470_v2 = vadd.f32 %v7469_v7, %v7371_v34  ;;  %v14217_v7 = vld [vmem:[%s14542_s3] sm:$0xff]  ;;  %v14229_v34 = vld [vmem:[%s14542_s3 + $0x18] sm:$0xff] }
 0xb0f   : > { %v11687_v30 = vpop.f32.mrf.mxu0  ;;  %v11711_v4 = vpop.f32.mrf.mxu1 }
 0xb10   : > { %v7557_v56 = vadd.f32 %v11687_v30, %v7464_v35  ;;  %v14235_v35 = vld [vmem:[%s14542_s3 + $0x38] sm:$0xff] }
 0xb11   : > { %v7549_v23 = vpop.f32.mrf.mxu0  ;;  %v7832_v39 = vpop.f32.mrf.mxu1 }
 0xb12   : > { %v7550_v36 = vadd.f32 %v7549_v23, %v7458_v21  ;;  %v7653_v52 = vadd.f32 %v11695_v18, %v7557_v56  ;;  %v14241_v21 = vld [vmem:[%s14542_s3 + $0x10] sm:$0xff] }
 0xb13   : > { %v11690_v13 = vpop.f32.mrf.mxu0  ;;  %v11714_v25 = vpop.f32.mrf.mxu1 }
 0xb14   : > { %v7571_v24 = vadd.f32 %v11690_v13, %v7476_v57  ;;  %v7645_v48 = vadd.f32 %v7644_v60, %v7550_v36 }
 0xb15   : > { %v7563_v27 = vpop.f32.mrf.mxu0  ;;  %v7844_v60 = vpop.f32.mrf.mxu1 }
 0xb16   : > { %v7564_v46 = vadd.f32 %v7563_v27, %v7470_v2  ;;  %v7669_v14 = vadd.f32 %v11698_v15, %v7571_v24  ;;  %v14253_v27 = vld [vmem:[%s14542_s3 + $0x40] sm:$0xff] }
 0xb17   : > { %v11703_v54 = vpop.f32.mrf.mxu0  ;;  %v14259_v24 = vld [vmem:[%s14542_s3 + $0x60] sm:$0xff] }
 0xb18   : > { %v7749_v10 = vadd.f32 %v11703_v54, %v7653_v52  ;;  %v7661_v43 = vadd.f32 %v7660_v61, %v7564_v46  ;;  %v14265_v54 = vld [vmem:[%s14542_s3 + $0x48] sm:$0xff] }
 0xb19   : > { %v7742_v45 = vpop.f32.mrf.mxu0 }
 0xb1a   : > { %v7839_v62 = vadd.f32 %v11711_v4, %v7749_v10  ;;  %v7743_v63 = vadd.f32 %v7742_v45, %v7645_v48  ;;  %v14247_v4 = vld [vmem:[%s14542_s3 + $0x30] sm:$0xff]  ;;  %v14271_v10 = vld [vmem:[%s14542_s3 + $0x68] sm:$0xff] }
 0xb1b   : > { %v11706_v19 = vpop.f32.mrf.mxu0 }
 0xb1c   : > { %v7855_v20 = vsub.f32 %v7839_v62, %v14205_v47  ;;  %v7833_v17 = vadd.f32 %v7832_v39, %v7743_v63  ;;  %v7761_v3 = vadd.f32 %v11706_v19, %v7669_v14  ;;  %v14277_v14 = vld [vmem:[%s14542_s3 + $0x50] sm:$0xff] }
 0xb1d   : > { %v7754_v22 = vpop.f32.mrf.mxu0  ;;  %v14283_v19 = vld [vmem:[%s14542_s3 + $0x70] sm:$0xff] }
 0xb1e   : > { %v7859_v38 = vmul.f32 %v14211_v58, %v7855_v20  ;;  %v7854_v42 = vsub.f32 %v7833_v17, %v14217_v7  ;;  %v7851_v18 = vadd.f32 %v11714_v25, %v7761_v3  ;;  %v7755_v32 = vadd.f32 %v7754_v22, %v7661_v43  ;;  %v14289_v17 = vld [vmem:[%s14542_s3 + $0x78] sm:$0xff] }
 0xb20   : > { %v7858_v15 = vmul.f32 %v14223_v0, %v7854_v42  ;;  %v7857_v61 = vsub.f32 %v7851_v18, %v14229_v34  ;;  %v7845_v30 = vadd.f32 %v7844_v60, %v7755_v32  ;;  %12043 = vtanh.f32 %v7859_v38  ;;  %v14295_v38 = vld [vmem:[%s14542_s3 + $0x58] sm:$0xff] }
 0xb22   : > { %12045 = vtanh.f32 %v7858_v15  ;;  %v7861_v23 = vmul.f32 %v14235_v35, %v7857_v61  ;;  %v7856_v56 = vsub.f32 %v7845_v30, %v14241_v21 }
 0xb24   : > { %v7860_v13 = vmul.f32 %v14247_v4, %v7856_v56  ;;  %12047 = vtanh.f32 %v7861_v23 }
 0xb26   : > { %12049 = vtanh.f32 %v7860_v13 }
 0xb2d   : > { %v12044_v57 = vpop.eup %12043 }
 0xb2e   : > { %v7867_v46 = vmul.f32 %v14265_v54, %v12044_v57  ;;  %v7880_v48 = vmul.f32 %v14271_v10, %v12044_v57 }
 0xb2f   : > { %v12046_v36 = vpop.eup %12045 }
 0xb30   : > { %v7866_v2 = vmul.f32 %v14253_v27, %v12046_v36  ;;  %v7879_v52 = vmul.f32 %v14259_v24, %v12046_v36 }
 0xb31   : > { %v12048_v39 = vpop.eup %12047 }
 0xb32   : > { %v7870_v62 = vadd.f32 %v7867_v46, %v7866_v2  ;;  %v7883_v63 = vadd.f32 %v7880_v48, %v7879_v52  ;;  %v7882_v3 = vmul.f32 %v14289_v17, %v12048_v39  ;;  %v7869_v42 = vmul.f32 %v14295_v38, %v12048_v39  ;;  %v14302_v39 = vld [vmem:[%s14543_s4] sm:$0x7] }
 0xb33   : > { %v12050_v45 = vpop.eup %12049 }
 0xb34   : > { %v7868_v25 = vmul.f32 %v14277_v14, %v12050_v45  ;;  %v7881_v20 = vmul.f32 %v14283_v19, %v12050_v45  ;;  %v7892_v45 = vmul.f32 %v14302_v39, %v13925_v49 }
 0xb36   : > { %v7871_v43 = vadd.f32 %v7870_v62, %v7868_v25  ;;  %v7884_v22 = vadd.f32 %v7883_v63, %v7881_v20  ;;  %v7893_v63 = vadd.f32 %v7892_v45, %v15116_v51 }
 0xb38   : > { %v7885_v18 = vadd.f32 %v7884_v22, %v7882_v3  ;;  %v7872_v32 = vadd.f32 %v7871_v43, %v7869_v42  ;;  %v15163_v43 = vld [vmem:[#allocation23_spill] sm:$0xff]  ;;  %v12106_v42 = vld [vmem:[%s14544_s5] sm:$0xff] }
 0xb3a   : > { %v7886_v60 = vrot.slane %v7885_v18, 4  ;;  %v7873_v61 = vrot.slane %v7872_v32, 4 }
 0xb3c   : > { %v7887_v15 = vadd.f32 %v7886_v60, %v7885_v18  ;;  %v7874_v56 = vadd.f32 %v7873_v61, %v7872_v32  ;;  %v12107_v32 = vld [vmem:[%s14544_s5 + $0x8] sm:$0xff]  ;;  %v15164_v60 = vld [vmem:[#allocation28_spill] sm:$0xff]  ;;  %v15165_v61 = vld [vmem:[#allocation34_spill] sm:$0xff] }
 0xb3e   : > { %v7888_v30 = vrot.slane %v7887_v15, 2  ;;  %v7875_v2 = vrot.slane %v7874_v56, 2 }
 0xb40   : > { %v7889_v23 = vadd.f32 %v7888_v30, %v7887_v15  ;;  %v7876_v46 = vadd.f32 %v7875_v2, %v7874_v56 }
 0xb42   : > { %v7890_v13 = vrot.slane %v7889_v23, 1  ;;  %v7877_v48 = vrot.slane %v7876_v46, 1 }
 0xb44   : > { %v7891_v57 = vadd.f32 %v7890_v13, %v7889_v23  ;;  %v7878_v62 = vadd.f32 %v7877_v48, %v7876_v46 }
 0xb46   : > { %v7895_v36 = vadd.f32 %v7891_v57, %v15113_v33  ;;  %v7894_v25 = vadd.f32 %v7893_v63, %v7878_v62 }
 0xb48   : > { %v7897_v52 = vrot.slane %v7895_v36, 2 }
 0xb4a   : > { %12051 = vrcp.f32 %v7897_v52 }
 0xb57   : > { %v12052_v20 = vpop.eup %12051 }
 0xb58   : > { %v14307_v3 = vmul.f32 %v12052_v20, %v7894_v25 }
 0xb5a   : > { %v7904_v22 = vrot.slane %v14307_v3, %v15163_v43 }
 0xb5c   : > { %v7905_v18 = vmul.f32 %v12106_v42, %v7904_v22  ;;  %v7906_v49 = vmul.f32 %v12107_v32, %v7904_v22  ;;  %v7907_v15 = vmul.f32 %v15164_v60, %v7904_v22  ;;  %v7908_v30 = vmul.f32 %v15165_v61, %v7904_v22  ;;  %v15169_v61 = vld [vmem:[#allocation11_spill] sm:$0xff] }
 0xb5e   : > { %v14319_v23 = vand.u32 4294901760, %v7905_v18  ;;  %v14321_v56 = vand.u32 4294901760, %v7906_v49  ;;  %v14323_v13 = vand.u32 4294901760, %v7907_v15  ;;  %v14325_v57 = vand.u32 4294901760, %v7908_v30 }
 0xb60   : > { %11785 = vmatprep.mubr.f32.mxu1 %v14319_v23  ;;  %v14329_v36 = vsub.f32 %v7906_v49, %v14321_v56  ;;  %v7991_v2 = vsub.f32 %v7905_v18, %v14319_v23  ;;  %v14333_v52 = vsub.f32 %v7907_v15, %v14323_v13  ;;  %v14337_v46 = vsub.f32 %v7908_v30, %v14325_v57  ;;  %v15166_v49 = vld [vmem:[#allocation4_spill] sm:$0xff]  ;;  %v15167_v15 = vld [vmem:[#allocation6_spill] sm:$0xff]  ;;  %v15170_v30 = vld [vmem:[#allocation13_spill] sm:$0xff] }
 0xb61   : > { %11786 = vmatmul.mubr.f32.vlgmr.msra.gmra.mxu1 %v14321_v56 }
 0xb62   : > { %11830 = vmatpush3.msra.mxu1 %v12191_v6  ;;  %11788 = vmatprep.mubr.f32.mxu1 %v14323_v13  ;;  %v7992_v48 = vand.u32 4294901760, %v7991_v2  ;;  %v8002_v45 = vand.u32 4294901760, %v14329_v36  ;;  %v8012_v62 = vand.u32 4294901760, %v14333_v52  ;;  %v8022_v20 = vand.u32 4294901760, %v14337_v46 }
 0xb63   : > { %11831 = vmatprep.subr.mxu1 %v12201_v9 }
 0xb64   : > { %11832 = vmatpush3.msra.mxu1 %v12201_v9  ;;  %v7993_v63 = vsub.f32 %v7991_v2, %v7992_v48  ;;  %v8003_v25 = vsub.f32 %v14329_v36, %v8002_v45  ;;  %v8013_v43 = vsub.f32 %v14333_v52, %v8012_v62  ;;  %v8023_v18 = vsub.f32 %v14337_v46, %v8022_v20 }
 0xb65   : > { %11833 = vmatprep.subr.mxu1 %v12213_v12  ;;  %11789 = vmatmul.mubr.f32.gmra.mxu1 %v14325_v57 }
 0xb66   : > { %11834 = vmatpush3.msra.mxu1 %v12213_v12  ;;  %11861 = vmatprep.mubr.f32.mxu1 %v7992_v48  ;;  %v7994_v22 = vand.u32 4294901760, %v7993_v63  ;;  %v8004_v42 = vand.u32 4294901760, %v8003_v25  ;;  %v8014_v32 = vand.u32 4294901760, %v8013_v43  ;;  %v8024_v60 = vand.u32 4294901760, %v8023_v18  ;;  %v15172_v48 = vld [vmem:[#allocation19_spill] sm:$0xff]  ;;  %v15173_v63 = vld [vmem:[#allocation22_spill] sm:$0xff] }
 0xb67   : > { %11835 = vmatprep.subr.mxu1 %v12219_v16  ;;  %v15174_v25 = vld [vmem:[#allocation24_spill] sm:$0xff]  ;;  %v15175_v43 = vld [vmem:[#allocation27_spill] sm:$0xff]  ;;  %v15178_v18 = vld [vmem:[#allocation38_spill] sm:$0xff] }
 0xb68   : > { %11836 = vmatpush3.msra.mxu1 %v12219_v16  ;;  %11747 = vmatprep.mubr.f32.mxu0 %v7994_v22  ;;  %v15176_v22 = vld [vmem:[#allocation32_spill] sm:$0xff] }
 0xb69   : > { %11837 = vmatprep.subr.mxu1 %v12243_v26  ;;  %11748 = vmatmul.mubr.f32.vlgmr.msra.gmra.mxu0 %v8004_v42  ;;  %v15177_v42 = vld [vmem:[#allocation35_spill] sm:$0xff] }
 0xb6a   : > { %11792 = vmatpush3.msra.mxu0 %v12211_v11  ;;  %11838 = vmatpush3.msra.mxu1 %v12243_v26  ;;  %v15168_v11 = vld [vmem:[#allocation8_spill] sm:$0xff] }
 0xb6b   : > { %11750 = vmatprep.mubr.f32.mxu0 %v8014_v32  ;;  %11793 = vmatprep.subr.mxu0 %v15166_v49  ;;  %v15179_v32 = vld [vmem:[#allocation41_spill] sm:$0xff] }
 0xb6c   : > { %11839 = vmatprep.subr.mxu1 %v12255_v31  ;;  %11794 = vmatpush3.msra.mxu0 %v15166_v49 }
 0xb6d   : > { %11840 = vmatpush3.msra.mxu1 %v12255_v31  ;;  %11795 = vmatprep.subr.mxu0 %v15167_v15 }
 0xb6e   : > { %11841 = vmatprep.subr.mxu1 %v12273_v37  ;;  %11751 = vmatmul.mubr.f32.gmra.mxu0 %v8024_v60 }
 0xb6f   : > { %11796 = vmatpush3.msra.mxu0 %v15167_v15  ;;  %11842 = vmatpush3.msra.mxu1 %v12273_v37 }
 0xb70   : > { %11797 = vmatprep.subr.mxu0 %v15168_v11  ;;  %11823 = vmatprep.mubr.f32.mxu0 %v7991_v2  ;;  %v15171_v2 = vld [vmem:[#allocation16_spill] sm:$0xff] }
 0xb71   : > { %11843 = vmatprep.subr.mxu1 %v12287_v44  ;;  %11798 = vmatpush3.msra.mxu0 %v15168_v11 }
 0xb72   : > { %11844 = vmatpush3.msra.mxu1 %v12287_v44  ;;  %11799 = vmatprep.subr.mxu0 %v15169_v61 }
 0xb73   : > { %11845 = vmatprep.subr.mxu1 %v12303_v50  ;;  %11800 = vmatpush3.msra.mxu0 %v15169_v61 }
 0xb74   : > { %11846 = vmatpush3.msra.mxu1 %v12303_v50  ;;  %11801 = vmatprep.subr.mxu0 %v15170_v30 }
 0xb75   : > { %11847 = vmatprep.subr.mxu1 %v12311_v53  ;;  %11802 = vmatpush3.msra.mxu0 %v15170_v30 }
 0xb76   : > { %11848 = vmatpush3.msra.mxu1 %v12311_v53  ;;  %11803 = vmatprep.subr.mxu0 %v15171_v2 }
 0xb77   : > { %11849 = vmatprep.subr.mxu1 %v12336_v59  ;;  %11804 = vmatpush3.msra.mxu0 %v15171_v2 }
 0xb78   : > { %11850 = vmatpush3.msra.mxu1 %v12336_v59  ;;  %11805 = vmatprep.subr.mxu0 %v15172_v48 }
 0xb79   : > { %11851 = vmatprep.subr.mxu1 %v12373_v1  ;;  %11806 = vmatpush3.msra.mxu0 %v15172_v48 }
 0xb7a   : > { %11852 = vmatpush3.msra.mxu1 %v12373_v1  ;;  %11807 = vmatprep.subr.mxu0 %v15173_v63 }
 0xb7b   : > { %11853 = vmatprep.subr.mxu1 %v12391_v28  ;;  %11808 = vmatpush3.msra.mxu0 %v15173_v63 }
 0xb7c   : > { %11854 = vmatpush3.msra.mxu1 %v12391_v28  ;;  %11809 = vmatprep.subr.mxu0 %v15174_v25 }
 0xb7d   : > { %11855 = vmatprep.subr.mxu1 %v12413_v40  ;;  %11810 = vmatpush3.msra.mxu0 %v15174_v25 }
 0xb7e   : > { %11856 = vmatpush3.msra.mxu1 %v12413_v40  ;;  %11811 = vmatprep.subr.mxu0 %v15175_v43 }
 0xb7f   : > { %11857 = vmatprep.subr.mxu1 %v12433_v55  ;;  %11812 = vmatpush3.msra.mxu0 %v15175_v43 }
 0xb80   : > { %11858 = vmatpush3.msra.mxu1 %v12433_v55  ;;  %11813 = vmatprep.subr.mxu0 %v15176_v22 }
 0xb81   : > { %11859 = vmatprep.subr.mxu1 %v12452_v29  ;;  %11814 = vmatpush3.msra.mxu0 %v15176_v22 }
 0xb82   : > { %11860 = vmatpush3.msra.mxu1 %v12452_v29  ;;  %11815 = vmatprep.subr.mxu0 %v15177_v42 }
 0xb83   : > { %11862 = vmatmul.mubr.f32.vlgmr.msra.gmra.mxu1 %v8002_v45  ;;  %11905 = vmatprep.subr.mxu1 %v12191_v6 }
 0xb84   : > { %11816 = vmatpush3.msra.mxu0 %v15177_v42  ;;  %11864 = vmatprep.mubr.f32.mxu1 %v8012_v62 }
 0xb85   : > { %11906 = vmatpush3.msra.mxu1 %v12191_v6  ;;  %11817 = vmatprep.subr.mxu0 %v15178_v18  ;;  %v15180_v6 = vld [vmem:[#allocation44_spill] sm:$0xff] }
 0xb86   : > { %11907 = vmatprep.subr.mxu1 %v12201_v9  ;;  %11818 = vmatpush3.msra.mxu0 %v15178_v18 }
 0xb87   : > { %11908 = vmatpush3.msra.mxu1 %v12201_v9  ;;  %11819 = vmatprep.subr.mxu0 %v15179_v32  ;;  %v15181_v9 = vld [vmem:[#allocation5_spill] sm:$0xff] }
 0xb88   : > { %11865 = vmatmul.mubr.f32.gmra.mxu1 %v8022_v20  ;;  %11909 = vmatprep.subr.mxu1 %v12213_v12 }
 0xb89   : > { %11820 = vmatpush3.msra.mxu0 %v15179_v32  ;;  %11910 = vmatpush3.msra.mxu1 %v12213_v12  ;;  %v15182_v12 = vld [vmem:[#allocation9_spill] sm:$0xff] }
 0xb8a   : > { %11937 = vmatprep.mubr.f32.mxu1 %v14319_v23  ;;  %11821 = vmatprep.subr.mxu0 %v15180_v6 }
 0xb8b   : > { %11911 = vmatprep.subr.mxu1 %v12219_v16  ;;  %11822 = vmatpush3.msra.mxu0 %v15180_v6 }
 0xb8c   : > { %11912 = vmatpush3.msra.mxu1 %v12219_v16  ;;  %11824 = vmatmul.mubr.f32.vlgmr.msra.gmra.mxu0 %v14329_v36  ;;  %v15183_v16 = vld [vmem:[#allocation10_spill] sm:$0xff] }
 0xb8d   : > { %11867 = vmatprep.subr.mxu0 %v15181_v9  ;;  %11913 = vmatprep.subr.mxu1 %v12243_v26  ;;  %v15186_v36 = vld [vmem:[#allocation18_spill] sm:$0xff] }
 0xb8e   : > { %11826 = vmatprep.mubr.f32.mxu0 %v14333_v52  ;;  %11868 = vmatpush3.msra.mxu0 %v15181_v9 }
 0xb8f   : > { %11914 = vmatpush3.msra.mxu1 %v12243_v26  ;;  %11869 = vmatprep.subr.mxu0 %v15182_v12  ;;  %v15184_v26 = vld [vmem:[#allocation12_spill] sm:$0xff] }
 0xb90   : > { %11915 = vmatprep.subr.mxu1 %v12255_v31  ;;  %11870 = vmatpush3.msra.mxu0 %v15182_v12 }
 0xb91   : > { %11916 = vmatpush3.msra.mxu1 %v12255_v31  ;;  %11827 = vmatmul.mubr.f32.gmra.mxu0 %v14337_v46  ;;  %v15185_v31 = vld [vmem:[#allocation15_spill] sm:$0xff] }
 0xb92   : > { %11871 = vmatprep.subr.mxu0 %v15183_v16  ;;  %11917 = vmatprep.subr.mxu1 %v12273_v37 }
 0xb93   : > { %11872 = vmatpush3.msra.mxu0 %v15183_v16  ;;  %11899 = vmatprep.mubr.f32.mxu0 %v14319_v23  ;;  %v15196_v23 = vld [vmem:[#allocation46_spill] sm:$0xff] }
 0xb94   : > { %11918 = vmatpush3.msra.mxu1 %v12273_v37  ;;  %11873 = vmatprep.subr.mxu0 %v15184_v26  ;;  %v15187_v37 = vld [vmem:[#allocation21_spill] sm:$0xff] }
 0xb95   : > { %11919 = vmatprep.subr.mxu1 %v12287_v44  ;;  %11874 = vmatpush3.msra.mxu0 %v15184_v26 }
 0xb96   : > { %11920 = vmatpush3.msra.mxu1 %v12287_v44  ;;  %11875 = vmatprep.subr.mxu0 %v15185_v31  ;;  %v15188_v44 = vld [vmem:[#allocation26_spill] sm:$0xff] }
 0xb97   : > { %11921 = vmatprep.subr.mxu1 %v12303_v50  ;;  %11876 = vmatpush3.msra.mxu0 %v15185_v31 }
 0xb98   : > { %11922 = vmatpush3.msra.mxu1 %v12303_v50  ;;  %11877 = vmatprep.subr.mxu0 %v15186_v36  ;;  %v15189_v50 = vld [vmem:[#allocation29_spill] sm:$0xff] }
 0xb99   : > { %11923 = vmatprep.subr.mxu1 %v12311_v53  ;;  %11878 = vmatpush3.msra.mxu0 %v15186_v36 }
 0xb9a   : > { %11924 = vmatpush3.msra.mxu1 %v12311_v53  ;;  %11879 = vmatprep.subr.mxu0 %v15187_v37  ;;  %v15190_v53 = vld [vmem:[#allocation30_spill] sm:$0xff] }
 0xb9b   : > { %11925 = vmatprep.subr.mxu1 %v12336_v59  ;;  %11880 = vmatpush3.msra.mxu0 %v15187_v37 }
 0xb9c   : > { %11926 = vmatpush3.msra.mxu1 %v12336_v59  ;;  %11881 = vmatprep.subr.mxu0 %v15188_v44  ;;  %v15191_v59 = vld [vmem:[#allocation33_spill] sm:$0xff] }
 0xb9d   : > { %11927 = vmatprep.subr.mxu1 %v12373_v1  ;;  %11882 = vmatpush3.msra.mxu0 %v15188_v44 }
 0xb9e   : > { %11928 = vmatpush3.msra.mxu1 %v12373_v1  ;;  %11883 = vmatprep.subr.mxu0 %v15189_v50  ;;  %v15192_v1 = vld [vmem:[#allocation37_spill] sm:$0xff] }
 0xb9f   : > { %11929 = vmatprep.subr.mxu1 %v12391_v28  ;;  %11884 = vmatpush3.msra.mxu0 %v15189_v50 }
 0xba0   : > { %11930 = vmatpush3.msra.mxu1 %v12391_v28  ;;  %11885 = vmatprep.subr.mxu0 %v15190_v53  ;;  %v15193_v28 = vld [vmem:[#allocation40_spill] sm:$0xff] }
 0xba1   : > { %11931 = vmatprep.subr.mxu1 %v12413_v40  ;;  %11886 = vmatpush3.msra.mxu0 %v15190_v53 }
 0xba2   : > { %11932 = vmatpush3.msra.mxu1 %v12413_v40  ;;  %11887 = vmatprep.subr.mxu0 %v15191_v59  ;;  %v15194_v40 = vld [vmem:[#allocation43_spill] sm:$0xff] }
 0xba3   : > { %11933 = vmatprep.subr.mxu1 %v12433_v55  ;;  %11888 = vmatpush3.msra.mxu0 %v15191_v59 }
 0xba4   : > { %11934 = vmatpush3.msra.mxu1 %v12433_v55  ;;  %11889 = vmatprep.subr.mxu0 %v15192_v1  ;;  %v15195_v55 = vld [vmem:[#allocation7_spill] sm:$0xff] }
 0xba5   : > { %11935 = vmatprep.subr.mxu1 %v12452_v29  ;;  %11890 = vmatpush3.msra.mxu0 %v15192_v1 }
 0xba6   : > { %11936 = vmatpush3.msra.mxu1 %v12452_v29  ;;  %11891 = vmatprep.subr.mxu0 %v15193_v28  ;;  %v15197_v29 = vld [vmem:[#allocation48_spill] sm:$0xff] }
 0xba7   : > { %11938 = vmatmul.mubr.f32.vlgmr.msra.gmra.mxu1 %v14321_v56  ;;  %11892 = vmatpush3.msra.mxu0 %v15193_v28 }
 0xba8   : > { %11940 = vmatprep.mubr.f32.mxu1 %v14323_v13  ;;  %11893 = vmatprep.subr.mxu0 %v15194_v40 }
 0xba9   : > { %11894 = vmatpush3.msra.mxu0 %v15194_v40  ;;  %11951 = vmatprep.subr.mxu1 %v15195_v55 }
 0xbaa   : > { %11895 = vmatprep.subr.mxu0 %v15196_v23  ;;  %11952 = vmatpush3.msra.mxu1 %v15195_v55 }
 0xbab   : > { %11941 = vmatmul.mubr.f32.gmra.mxu1 %v14325_v57  ;;  %11896 = vmatpush3.msra.mxu0 %v15196_v23 }
 0xbac   : > { %11897 = vmatprep.subr.mxu0 %v15197_v29  ;;  %11967 = vmatprep.subr.mxu1 %v12183_v5 }
 0xbad   : > { %11898 = vmatpush3.msra.mxu0 %v15197_v29 }
 0xbae   : > { %11900 = vmatmul.mubr.f32.vlgmr.msra.gmra.mxu0 %v14321_v56  ;;  %11943 = vmatprep.subr.mxu0 %v12183_v5 }
 0xbaf   : > { %11902 = vmatprep.mubr.f32.mxu0 %v14323_v13  ;;  %11944 = vmatpush3.msra.mxu0 %v12183_v5 }
 0xbb0   : > { %11959 = vmatprep.subr.mxu0 %v14908_v8 }
 0xbb2   : > { %11903 = vmatmul.mubr.f32.gmra.mxu0 %v14325_v57 }
 0xc21   : > { %v11787_v52 = vpop.f32.mrf.mxu1 }
 0xc23   : > { %v8177_v46 = vpop.f32.mrf.mxu1 }
 0xc25   : > { %v11790_v62 = vpop.f32.mrf.mxu1 }
 0xc27   : > { %v8189_v49 = vpop.f32.mrf.mxu1 }
 0xc29   : > { %v11749_v45 = vpop.f32.mrf.mxu0 }
 0xc2a   : > { %v8184_v13 = vadd.f32 %v11787_v52, %v11749_v45 }
 0xc2b   : > { %v7996_v20 = vpop.f32.mrf.mxu0 }
 0xc2c   : > { %v8178_v25 = vadd.f32 %v8177_v46, %v7996_v20 }
 0xc2e   : > { %v11752_v60 = vpop.f32.mrf.mxu0 }
 0xc2f   : > { %v8196_v57 = vadd.f32 %v11790_v62, %v11752_v60 }
 0xc30   : > { %v8016_v11 = vpop.f32.mrf.mxu0 }
 0xc31   : > { %v8190_v32 = vadd.f32 %v8189_v49, %v8016_v11 }
 0xc43   : > { %v11863_v15 = vpop.f32.mrf.mxu1 }
 0xc45   : > { %v8409_v56 = vpop.f32.mrf.mxu1 }
 0xc48   : > { %v11866_v30 = vpop.f32.mrf.mxu1 }
 0xc4a   : > { %v8425_v48 = vpop.f32.mrf.mxu1 }
 0xc4c   : > { %v11825_v61 = vpop.f32.mrf.mxu0 }
 0xc4d   : > { %v8307_v43 = vadd.f32 %v11825_v61, %v8184_v13 }
 0xc4e   : > { %v8299_v2 = vpop.f32.mrf.mxu0 }
 0xc4f   : > { %v8300_v42 = vadd.f32 %v8299_v2, %v8178_v25  ;;  %v8418_v9 = vadd.f32 %v11863_v15, %v8307_v43 }
 0xc51   : > { %v11828_v63 = vpop.f32.mrf.mxu0  ;;  %v8410_v36 = vadd.f32 %v8409_v56, %v8300_v42 }
 0xc52   : > { %v8321_v6 = vadd.f32 %v11828_v63, %v8196_v57 }
 0xc53   : > { %v8313_v18 = vpop.f32.mrf.mxu0 }
 0xc54   : > { %v8314_v26 = vadd.f32 %v8313_v18, %v8190_v32  ;;  %v8434_v53 = vadd.f32 %v11866_v30, %v8321_v6 }
 0xc56   : > { %v8426_v23 = vadd.f32 %v8425_v48, %v8314_v26 }
 0xc67   : > { %v11939_v22 = vpop.f32.mrf.mxu1 }
 0xc69   : > { %v8657_v12 = vpop.f32.mrf.mxu1 }
 0xc6b   : > { %v11942_v59 = vpop.f32.mrf.mxu1 }
 0xc6d   : > { %v8669_v20 = vpop.f32.mrf.mxu1 }
 0xc6e   : > { %v11901_v16 = vpop.f32.mrf.mxu0 }
 0xc6f   : > { %v8559_v31 = vadd.f32 %v11901_v16, %v8418_v9 }
 0xc70   : > { %v8552_v37 = vpop.f32.mrf.mxu0 }
 0xc71   : > { %v8664_v44 = vadd.f32 %v11939_v22, %v8559_v31  ;;  %v8553_v50 = vadd.f32 %v8552_v37, %v8410_v36 }
 0xc72   : > { %v11904_v1 = vpop.f32.mrf.mxu0 }
 0xc73   : > { %v8683_v28 = vsel %vm316_vm2, %v8664_v44, 0  ;;  %v8658_v40 = vadd.f32 %v8657_v12, %v8553_v50  ;;  %v8571_v55 = vadd.f32 %v11904_v1, %v8434_v53 }
 0xc74   : > { %v8767_v29 = vand.u32 4294901760, %v8683_v28  ;;  %v8564_v52 = vpop.f32.mrf.mxu0 }
 0xc75   : > { %v8680_v46 = vsel %vm316_vm2, %v8658_v40, 0  ;;  %v8676_v45 = vadd.f32 %v11942_v59, %v8571_v55  ;;  %v8565_v62 = vadd.f32 %v8564_v52, %v8426_v23 }
 0xc76   : > { %v8768_v49 = vsub.f32 %v8683_v28, %v8767_v29  ;;  %v8757_v60 = vand.u32 4294901760, %v8680_v46 }
 0xc77   : > { %v8689_v15 = vsel %vm316_vm2, %v8676_v45, 0  ;;  %v8670_v11 = vadd.f32 %v8669_v20, %v8565_v62 }
 0xc78   : > { %v8769_v56 = vand.u32 4294901760, %v8768_v49  ;;  %v8758_v61 = vsub.f32 %v8680_v46, %v8757_v60  ;;  %v8787_v30 = vand.u32 4294901760, %v8689_v15  ;;  %11953 = vmatprep.mubr.f32.mxu1 %v8757_v60 }
 0xc79   : > { %v8686_v2 = vsel %vm316_vm2, %v8670_v11, 0  ;;  %11954 = vmatmul.mubr.f32.vlgmr.msra.gmra.mxu1 %v8767_v29 }
 0xc7a   : > { %v8788_v13 = vsub.f32 %v8689_v15, %v8787_v30  ;;  %v8777_v48 = vand.u32 4294901760, %v8686_v2  ;;  %v8759_v63 = vand.u32 4294901760, %v8758_v61  ;;  %11968 = vmatpush3.msra.mxu1 %v12183_v5  ;;  %v8770_v25 = vsub.f32 %v8768_v49, %v8769_v56 }
 0xc7b   : > { %11983 = vmatprep.subr.mxu1 %v12183_v5 }
 0xc7c   : > { %v8778_v43 = vsub.f32 %v8686_v2, %v8777_v48  ;;  %11956 = vmatprep.mubr.f32.mxu1 %v8777_v48  ;;  %v8760_v22 = vsub.f32 %v8758_v61, %v8759_v63  ;;  %v8789_v57 = vand.u32 4294901760, %v8788_v13  ;;  %v8771_v32 = vand.u32 4294901760, %v8770_v25 }
 0xc7d   : > { %11957 = vmatmul.mubr.f32.gmra.mxu1 %v8787_v30 }
 0xc7e   : > { %11969 = vmatprep.mubr.f32.mxu1 %v8759_v63  ;;  %v8761_v42 = vand.u32 4294901760, %v8760_v22  ;;  %v8779_v18 = vand.u32 4294901760, %v8778_v43  ;;  %v8790_v6 = vsub.f32 %v8788_v13, %v8789_v57 }
 0xc80   : > { %11945 = vmatprep.mubr.f32.mxu0 %v8761_v42  ;;  %v8780_v9 = vsub.f32 %v8778_v43, %v8779_v18  ;;  %v8791_v16 = vand.u32 4294901760, %v8790_v6 }
 0xc81   : > { %11946 = vmatmul.mubr.f32.vlgmr.msra.gmra.mxu0 %v8771_v32  ;;  %11970 = vmatmul.mubr.f32.vlgmr.msra.gmra.mxu1 %v8769_v56 }
 0xc82   : > { %11960 = vmatpush3.msra.mxu0 %v14908_v8  ;;  %11972 = vmatprep.mubr.f32.mxu1 %v8779_v18  ;;  %v8781_v12 = vand.u32 4294901760, %v8780_v9 }
 0xc83   : > { %11975 = vmatprep.subr.mxu0 %v14909_v41  ;;  %11984 = vmatpush3.msra.mxu1 %v12183_v5 }
 0xc84   : > { %11948 = vmatprep.mubr.f32.mxu0 %v8781_v12 }
 0xc85   : > { %11949 = vmatmul.mubr.f32.gmra.mxu0 %v8791_v16  ;;  %11973 = vmatmul.mubr.f32.gmra.mxu1 %v8789_v57 }
 0xc86   : > { %11961 = vmatprep.mubr.f32.mxu0 %v8758_v61  ;;  %11985 = vmatprep.mubr.f32.mxu1 %v8757_v60 }
 0xc89   : > { %11962 = vmatmul.mubr.f32.vlgmr.msra.gmra.mxu0 %v8768_v49  ;;  %11986 = vmatmul.mubr.f32.vlgmr.msra.gmra.mxu1 %v8767_v29 }
 0xc8a   : > { %11976 = vmatpush3.msra.mxu0 %v14909_v41  ;;  %11964 = vmatprep.mubr.f32.mxu0 %v8778_v43 }
 0xc8b   : > { %11988 = vmatprep.mubr.f32.mxu1 %v8777_v48 }
 0xc8d   : > { %11965 = vmatmul.mubr.f32.gmra.mxu0 %v8788_v13  ;;  %11989 = vmatmul.mubr.f32.gmra.mxu1 %v8787_v30 }
 0xc8e   : > { %11977 = vmatprep.mubr.f32.mxu0 %v8757_v60 }
 0xc91   : > { %11978 = vmatmul.mubr.f32.vlgmr.msra.gmra.mxu0 %v8767_v29 }
 0xc92   : > { %11980 = vmatprep.mubr.f32.mxu0 %v8777_v48 }
 0xc95   : > { %11981 = vmatmul.mubr.f32.gmra.mxu0 %v8787_v30 }
 0xd39   : > { %v11955_v8 = vpop.f32.mrf.mxu1 }
 0xd3b   : > { %v8869_v26 = vpop.f32.mrf.mxu1 }
 0xd3d   : > { %v11958_v5 = vpop.f32.mrf.mxu1 }
 0xd3f   : > { %v8881_v31 = vpop.f32.mrf.mxu1 }
 0xd41   : > { %v11947_v36 = vpop.f32.mrf.mxu0  ;;  %v11971_v37 = vpop.f32.mrf.mxu1 }
 0xd42   : > { %v8876_v40 = vadd.f32 %v11955_v8, %v11947_v36 }
 0xd43   : > { %v8763_v44 = vpop.f32.mrf.mxu0  ;;  %v9056_v50 = vpop.f32.mrf.mxu1 }
 0xd44   : > { %v8870_v23 = vadd.f32 %v8869_v26, %v8763_v44 }
 0xd45   : > { %v11950_v53 = vpop.f32.mrf.mxu0  ;;  %v11974_v59 = vpop.f32.mrf.mxu1 }
 0xd46   : > { %v8888_v45 = vadd.f32 %v11958_v5, %v11950_v53 }
 0xd47   : > { %v8783_v1 = vpop.f32.mrf.mxu0  ;;  %v9072_v41 = vpop.f32.mrf.mxu1 }
 0xd48   : > { %v8882_v49 = vadd.f32 %v8881_v31, %v8783_v1 }
 0xd49   : > { %v11963_v28 = vpop.f32.mrf.mxu0  ;;  %v11987_v29 = vpop.f32.mrf.mxu1 }
 0xd4a   : > { %v8969_v52 = vadd.f32 %v11963_v28, %v8876_v40 }
 0xd4b   : > { %v8961_v55 = vpop.f32.mrf.mxu0  ;;  %v9244_v11 = vpop.f32.mrf.mxu1 }
 0xd4c   : > { %v8962_v62 = vadd.f32 %v8961_v55, %v8870_v23  ;;  %v9065_v15 = vadd.f32 %v11971_v37, %v8969_v52 }
 0xd4d   : > { %v11966_v46 = vpop.f32.mrf.mxu0  ;;  %v11990_v43 = vpop.f32.mrf.mxu1 }
 0xd4e   : > { %v8983_v60 = vadd.f32 %v11966_v46, %v8888_v45  ;;  %v9057_v2 = vadd.f32 %v9056_v50, %v8962_v62 }
 0xd4f   : > { %v8975_v20 = vpop.f32.mrf.mxu0  ;;  %v9256_v26 = vpop.f32.mrf.mxu1 }
 0xd50   : > { %v8976_v61 = vadd.f32 %v8975_v20, %v8882_v49  ;;  %v9081_v25 = vadd.f32 %v11974_v59, %v8983_v60 }
 0xd51   : > { %v11979_v56 = vpop.f32.mrf.mxu0 }
 0xd52   : > { %v9161_v30 = vadd.f32 %v11979_v56, %v9065_v15  ;;  %v9073_v32 = vadd.f32 %v9072_v41, %v8976_v61 }
 0xd53   : > { %v9154_v13 = vpop.f32.mrf.mxu0 }
 0xd54   : > { %v9251_v48 = vadd.f32 %v11987_v29, %v9161_v30  ;;  %v9155_v63 = vadd.f32 %v9154_v13, %v9057_v2 }
 0xd55   : > { %v11982_v22 = vpop.f32.mrf.mxu0 }
 0xd56   : > { %v9267_v57 = vsub.f32 %v9251_v48, %v14205_v47  ;;  %v9245_v42 = vadd.f32 %v9244_v11, %v9155_v63  ;;  %v9173_v18 = vadd.f32 %v11982_v22, %v9081_v25 }
 0xd57   : > { %v9166_v6 = vpop.f32.mrf.mxu0 }
 0xd58   : > { %v9271_v9 = vmul.f32 %v14211_v58, %v9267_v57  ;;  %v9266_v12 = vsub.f32 %v9245_v42, %v14217_v7  ;;  %v9263_v16 = vadd.f32 %v11990_v43, %v9173_v18  ;;  %v9167_v8 = vadd.f32 %v9166_v6, %v9073_v32 }
 0xd5a   : > { %v9270_v5 = vmul.f32 %v14223_v0, %v9266_v12  ;;  %v9269_v31 = vsub.f32 %v9263_v16, %v14229_v34  ;;  %v9257_v36 = vadd.f32 %v9256_v26, %v9167_v8  ;;  %12053 = vtanh.f32 %v9271_v9 }
 0xd5c   : > { %12055 = vtanh.f32 %v9270_v5  ;;  %v9273_v47 = vmul.f32 %v14235_v35, %v9269_v31  ;;  %v9268_v37 = vsub.f32 %v9257_v36, %v14241_v21 }
 0xd5e   : > { %v9272_v44 = vmul.f32 %v14247_v4, %v9268_v37  ;;  %12057 = vtanh.f32 %v9273_v47 }
 0xd60   : > { %12059 = vtanh.f32 %v9272_v44 }
 0xd67   : > { %v12054_v58 = vpop.eup %12053 }
 0xd68   : > { %v9279_v34 = vmul.f32 %v14265_v54, %v12054_v58  ;;  %v9292_v59 = vmul.f32 %v14271_v10, %v12054_v58 }
 0xd69   : > { %v12056_v7 = vpop.eup %12055 }
 0xd6a   : > { %v9278_v50 = vmul.f32 %v14253_v27, %v12056_v7  ;;  %v9291_v53 = vmul.f32 %v14259_v24, %v12056_v7 }
 0xd6b   : > { %v12058_v0 = vpop.eup %12057 }
 0xd6c   : > { %v9282_v41 = vadd.f32 %v9279_v34, %v9278_v50  ;;  %v9295_v35 = vadd.f32 %v9292_v59, %v9291_v53  ;;  %v9294_v28 = vmul.f32 %v14289_v17, %v12058_v0  ;;  %v9281_v27 = vmul.f32 %v14295_v38, %v12058_v0 }
 0xd6d   : > { %v12060_v1 = vpop.eup %12059  ;;  %v9304_v38 = vmul.f32 %v14302_v39, %v14307_v3 }
 0xd6e   : > { %v9280_v21 = vmul.f32 %v14277_v14, %v12060_v1  ;;  %v9293_v4 = vmul.f32 %v14283_v19, %v12060_v1 }
 0xd6f   : > { %v9305_v11 = vadd.f32 %v9304_v38, %v15116_v51 }
 0xd70   : > { %v9283_v40 = vadd.f32 %v9282_v41, %v9280_v21  ;;  %v9296_v55 = vadd.f32 %v9295_v35, %v9293_v4 }
 0xd72   : > { %v9297_v23 = vadd.f32 %v9296_v55, %v9294_v28  ;;  %v9284_v24 = vadd.f32 %v9283_v40, %v9281_v27 }
 0xd74   : > { %v9298_v52 = vrot.slane %v9297_v23, 4  ;;  %v9285_v54 = vrot.slane %v9284_v24, 4 }
 0xd76   : > { %v9299_v29 = vadd.f32 %v9298_v52, %v9297_v23  ;;  %v9286_v45 = vadd.f32 %v9285_v54, %v9284_v24 }
 0xd78   : > { %v9300_v46 = vrot.slane %v9299_v29, 2  ;;  %v9287_v14 = vrot.slane %v9286_v45, 2 }
 0xd7a   : > { %v9301_v10 = vadd.f32 %v9300_v46, %v9299_v29  ;;  %v9288_v17 = vadd.f32 %v9287_v14, %v9286_v45 }
 0xd7c   : > { %v9302_v62 = vrot.slane %v9301_v10, 1  ;;  %v9289_v60 = vrot.slane %v9288_v17, 1 }
 0xd7e   : > { %v9303_v20 = vadd.f32 %v9302_v62, %v9301_v10  ;;  %v9290_v15 = vadd.f32 %v9289_v60, %v9288_v17 }
 0xd80   : > { %v9307_v19 = vadd.f32 %v9303_v20, %v15113_v33  ;;  %v9306_v56 = vadd.f32 %v9305_v11, %v9290_v15 }
 0xd82   : > { %v9309_v49 = vrot.slane %v9307_v19, 2 }
 0xd84   : > { %12061 = vrcp.f32 %v9309_v49 }
 0xd91   : > { %v12062_v61 = vpop.eup %12061 }
 0xd92   : > { %v9312_v30 = vmul.f32 %v12062_v61, %v9306_v56 }
 0xd94   : > { %9313 = vst [vmem:[%s312_s10] sm:$0x1] %v9312_v30 }
 0xd95 PF: > { %s18_s27 = sadd.s32 1, %s12115_s27  }
 0xd96   : > { %p15_p4 = scmp.ge.s32.totalorder %s18_s27, 4  }
 0xd98   :  { %17 = sbr.rel (!%p15_p4) target bundleno = 1 (0x1), region = 91 }

</bundles_post_ra>
